<compile_context>
chip_gen: v5e
topology: v5e:2x2
jax: 0.10.0
libtpu: 0.0.40
codegen_flags: <defaults>
</compile_context>

<pallas_src>
import math
from functools import partial, lru_cache

import jax
import jax.numpy as jnp
from jax.experimental import pallas as pl
from jax.experimental.pallas import tpu as pltpu


_ROW_BUDGET = 2048                  # target rows per VMEM tile
_VMEM_LIMIT = 48 * 1024 * 1024      # fits v7x's 64 MiB VMEM with headroom


# -----------------------------------------------------------------------------
# Pallas kernels
# -----------------------------------------------------------------------------
def _conv_tap_kernel(x_ref, w_ref, b_ref, o_ref, *, k, Wp, rows_out, act):
    """One grid step computes one (batch, row-tile) output block.

    x_ref: (1, 1, tile_rows, Cin)  -- W-padded, row-flattened input tile
                                      (includes the row halo for 3x3 convs).
    w_ref: (k*k, Cin, Cout)        -- resident weights.
    b_ref: (1, Cout)               -- bias.
    o_ref: (1, 1, rows_out, Cout)  -- output block, used as the f32 accumulator.

    Tap (dy, dx) of the conv is simply the contiguous row range
    [dy*Wp + dx, dy*Wp + dx + rows_out) of the flattened tile, so each tap is a
    plain 2-D VMEM slice feeding a 2-D MXU matmul (no reshapes, no extra HBM
    traffic).
    """
    for t in range(k * k):
        dy, dx = divmod(t, k)
        s = dy * Wp + dx
        tap = x_ref[0, 0, s:s + rows_out, :]
        part = jnp.dot(tap, w_ref[t], preferred_element_type=jnp.float32)
        if t == 0:
            o_ref[0, 0] = part
        else:
            o_ref[0, 0] += part

    y = o_ref[0, 0] + b_ref[...]
    if act == "lrelu":
        y = jnp.where(y >= 0, y, 0.2 * y)
    elif act == "sigmoid":
        # sigmoid is already bounded in [0, 1]; the original clamp is redundant
        y = 1.0 / (1.0 + jnp.exp(-y))
    o_ref[0, 0] = y


def _affine_kernel(a_ref, o_ref, *, scale, shift):
    o_ref[...] = a_ref[...] * scale + shift


def _combine_kernel(a_ref, b_ref, o_ref, *, wa, wb):
    o_ref[...] = a_ref[...] * wa + b_ref[...] * wb


# -----------------------------------------------------------------------------
# pallas_call builders (cached per configuration)
# -----------------------------------------------------------------------------
@lru_cache(maxsize=None)
def _build_conv(N, n_rt, tile_rows, rows_out, Cin, Cout, k, Wp, act):
    kern = partial(_conv_tap_kernel, k=k, Wp=Wp, rows_out=rows_out, act=act)
    call = pl.pallas_call(
        kern,
        out_shape=jax.ShapeDtypeStruct((N, n_rt, rows_out, Cout), jnp.float32),
        grid=(N, n_rt),
        in_specs=[
            pl.BlockSpec((1, 1, tile_rows, Cin), lambda n, r: (n, r, 0, 0)),
            pl.BlockSpec((k * k, Cin, Cout), lambda n, r: (0, 0, 0)),
            pl.BlockSpec((1, Cout), lambda n, r: (0, 0)),
        ],
        out_specs=pl.BlockSpec((1, 1, rows_out, Cout), lambda n, r: (n, r, 0, 0)),
        compiler_params=pltpu.CompilerParams(
            dimension_semantics=("parallel", "parallel"),
            vmem_limit_bytes=_VMEM_LIMIT),
    )
    return jax.jit(call)


@lru_cache(maxsize=None)
def _build_affine(P, C, TP, scale, shift):
    kern = partial(_affine_kernel, scale=scale, shift=shift)
    call = pl.pallas_call(
        kern,
        out_shape=jax.ShapeDtypeStruct((P, C), jnp.float32),
        grid=(pl.cdiv(P, TP),),
        in_specs=[pl.BlockSpec((TP, C), lambda i: (i, 0))],
        out_specs=pl.BlockSpec((TP, C), lambda i: (i, 0)),
        compiler_params=pltpu.CompilerParams(
            dimension_semantics=("parallel",),
            vmem_limit_bytes=_VMEM_LIMIT),
    )
    return jax.jit(call)


@lru_cache(maxsize=None)
def _build_combine(P, C, TP, wa, wb):
    kern = partial(_combine_kernel, wa=wa, wb=wb)
    call = pl.pallas_call(
        kern,
        out_shape=jax.ShapeDtypeStruct((P, C), jnp.float32),
        grid=(pl.cdiv(P, TP),),
        in_specs=[pl.BlockSpec((TP, C), lambda i: (i, 0)),
                  pl.BlockSpec((TP, C), lambda i: (i, 0))],
        out_specs=pl.BlockSpec((TP, C), lambda i: (i, 0)),
        compiler_params=pltpu.CompilerParams(
            dimension_semantics=("parallel",),
            vmem_limit_bytes=_VMEM_LIMIT),
    )
    return jax.jit(call)


# -----------------------------------------------------------------------------
# tiling helpers
# -----------------------------------------------------------------------------
def _pick_row_tile(H, Wp, budget=_ROW_BUDGET):
    """Largest divisor TH of H with TH * Wp <= budget (>= 1)."""
    best = 1
    for th in range(1, H + 1):
        if H % th == 0 and th * Wp <= budget:
            best = th
    return best


def _pick_p_tile(P, budget=_ROW_BUDGET):
    if P <= budget:
        return P
    for t in (2048, 1024, 512, 256, 128, 64, 8):
        if P % t == 0:
            return t
    return budget   # partial trailing block handled by Pallas


# -----------------------------------------------------------------------------
# Pallas-backed ops (glue does only padding / slicing / reshapes)
# -----------------------------------------------------------------------------
def conv2d_pallas(x, w, b, *, act="none"):
    """x: (N,H,W,Cin) f32, w: (k,k,Cin,Cout) HWIO, b: (Cout,). stride=1, 'same'."""
    N, H, W, Cin = x.shape
    k, kw, _, Cout = w.shape
    assert k == kw, "only square kernels supported"
    p = (k - 1) // 2
    Wp = W + 2 * p

    TH = _pick_row_tile(H, Wp)
    n_rt = H // TH
    rows_out = TH * Wp
    tile_rows = (TH + 2 * p) * Wp + 2 * p   # halo rows + slack for corner taps

    xp = jnp.pad(x, ((0, 0), (p, p), (p, p), (0, 0))) if p else x
    xf = xp.reshape(N, (H + 2 * p) * Wp, Cin)
    if p:
        xf = jnp.pad(xf, ((0, 0), (0, 2 * p), (0, 0)))   # slack rows (zeros)

    if p == 0 or n_rt == 1:
        # exact partition / whole image: a free reshape, no extra HBM pass
        xt = xf.reshape(N, n_rt, tile_rows, Cin)
    else:
        # row tiles with a 1-row halo (small (TH+2)/TH overhead only)
        xt = jnp.stack([xf[:, r * TH * Wp: r * TH * Wp + tile_rows, :]
                        for r in range(n_rt)], axis=1)

    f = _build_conv(N, n_rt, tile_rows, rows_out, Cin, Cout, k, Wp, act)
    out = f(xt, w.reshape(k * k, Cin, Cout), b.reshape(1, Cout))

    out = out.reshape(N, n_rt, TH, Wp, Cout)
    if p:
        out = out[:, :, :, :W, :]            # drop the W-padding columns
    return out.reshape(N, H, W, Cout)


def combine_pallas(a, b, trade):
    """(a + trade*b) / (1 + trade) as a tiled elementwise Pallas kernel."""
    N, H, W, C = a.shape
    P = N * H * W
    TP = _pick_p_tile(P)
    inv = 1.0 / (1.0 + float(trade))
    a2 = a.reshape(P, C)
    if isinstance(b, (int, float)):
        # scalar mid (e.g. 0): pure scale+shift, no zero tensor materialized
        f = _build_affine(P, C, TP, inv, float(trade) * inv * float(b))
        out = f(a2)
    else:
        f = _build_combine(P, C, TP, inv, float(trade) * inv)
        out = f(a2, b.reshape(P, C))
    return out.reshape(N, H, W, C)


# -----------------------------------------------------------------------------
# Pure-JAX reference ops (for correctness checking only)
# -----------------------------------------------------------------------------
def conv2d_ref(x, w, b, *, act="none"):
    y = jax.lax.conv_general_dilated(
        x, w, window_strides=(1, 1), padding="SAME",
        dimension_numbers=("NHWC", "HWIO", "NHWC")) + b
    if act == "lrelu":
        y = jnp.where(y >= 0, y, 0.2 * y)
    elif act == "sigmoid":
        y = jnp.clip(jax.nn.sigmoid(y), 0.0, 1.0)
    return y


def combine_ref(a, b, trade):
    return (a + trade * b) / (1.0 + trade)


# -----------------------------------------------------------------------------
# Parameter init (xavier_normal weights, zero bias -- matches weight_init)
# -----------------------------------------------------------------------------
def make_conv(key, cin, cout, k):
    fan_in, fan_out = cin * k * k, cout * k * k
    std = math.sqrt(2.0 / (fan_in + fan_out))
    w = std * jax.random.normal(key, (k, k, cin, cout), jnp.float32)
    b = jnp.zeros((cout,), jnp.float32)
    return w, b


def init_sdb(key, num_feat, ngc):
    ks = jax.random.split(key, 5)
    return {
        "conv1": make_conv(ks[0], num_feat, ngc, 3),
        "conv2": make_conv(ks[1], num_feat + ngc, ngc, 3),
        "conv3": make_conv(ks[2], num_feat + 2 * ngc, ngc, 3),
        "conv4": make_conv(ks[3], num_feat + 3 * ngc, ngc, 3),
        "conv5": make_conv(ks[4], num_feat + 4 * ngc, num_feat, 3),
    }


def init_csdb(key, num_feat, ngc):
    return [init_sdb(k, num_feat, ngc) for k in jax.random.split(key, 3)]


def init_sdped(key, num_in_ch, num_out_ch, num_feat, num_grow_ch, num_mid, num_block):
    # 3 head convs + 2 per block + 6 tail convs = 9 + 2*num_block keys
    keys = iter(jax.random.split(key, 9 + 2 * num_block))
    p = {"conv_first_1": make_conv(next(keys), num_in_ch, num_feat, 3),
         "conv_first_2": make_conv(next(keys), num_feat, num_feat, 3),
         "fuse_first": make_conv(next(keys), num_feat, num_mid, 1),
         "csdb": [], "fuse_list": []}
    for _ in range(num_block):
        p["csdb"].append(init_csdb(next(keys), num_feat, num_grow_ch))
        p["fuse_list"].append(make_conv(next(keys), num_feat, num_mid, 1))
    p["conv_body_1"] = make_conv(next(keys), num_feat, num_feat, 3)
    p["conv_body_2"] = make_conv(next(keys), num_feat, num_feat, 3)
    p["body_fuse"] = make_conv(next(keys), num_feat, num_mid, 1)
    p["fuse1"] = make_conv(next(keys), num_mid * (num_block + 2), 256, 3)
    p["fuse2"] = make_conv(next(keys), 256, 512, 1)
    p["fuse3"] = make_conv(next(keys), 512, num_out_ch, 1)
    return p


# -----------------------------------------------------------------------------
# Forward pass (parametrized over the conv / combine implementation)
# -----------------------------------------------------------------------------
def sdb_forward(p, x, mid, trade, conv, comb):
    x1 = comb(conv(x, *p["conv1"], act="lrelu"), mid[0], trade)
    x2 = comb(conv(jnp.concatenate([x, x1], -1), *p["conv2"], act="lrelu"), mid[1], trade)
    x3 = comb(conv(jnp.concatenate([x, x1, x2], -1), *p["conv3"], act="lrelu"), mid[2], trade)
    x4 = comb(conv(jnp.concatenate([x, x1, x2, x3], -1), *p["conv4"], act="lrelu"), mid[3], trade)
    x5 = comb(conv(jnp.concatenate([x, x1, x2, x3, x4], -1), *p["conv5"], act="none"), x, trade)
    return x5, [x1, x2, x3, x4]


def csdb_forward(p, x, trade, conv, comb):
    mid = [0, 0, 0, 0]
    out1, mid = sdb_forward(p[0], x, mid, trade, conv, comb)
    out2, mid = sdb_forward(p[1], out1, mid, trade, conv, comb)
    out3, _ = sdb_forward(p[2], out2, mid, trade, conv, comb)
    return out3


def sdped_forward(params, x_nchw, num_block, trade, conv, comb):
    x = jnp.transpose(x_nchw, (0, 2, 3, 1))      # NCHW -> NHWC
    feat = conv(x, *params["conv_first_1"], act="lrelu")
    feat = conv(feat, *params["conv_first_2"], act="lrelu")
    mids = [conv(feat, *params["fuse_first"], act="none")]
    for i in range(num_block):
        feat = csdb_forward(params["csdb"][i], feat, trade, conv, comb)
        mids.append(conv(feat, *params["fuse_list"][i], act="none"))
    feat = conv(feat, *params["conv_body_1"], act="lrelu")
    feat = conv(feat, *params["conv_body_2"], act="lrelu")
    mids.append(conv(feat, *params["body_fuse"], act="none"))
    out = jnp.concatenate(mids, -1)
    out = conv(out, *params["fuse1"], act="lrelu")
    out = conv(out, *params["fuse2"], act="lrelu")
    out = conv(out, *params["fuse3"], act="sigmoid")   # sigmoid (clamp redundant)
    return jnp.transpose(out, (0, 3, 1, 2))      # NHWC -> NCHW


# -----------------------------------------------------------------------------
if __name__ == "__main__":
    # Small-but-faithful config (module constructor args).
    num_in_ch, num_out_ch = 3, 1
    num_feat, num_grow_ch = 32, 16
    num_mid, num_block = 8, 2
    trade_SDB = 1.0
    N, H, W = 2, 16, 16

    root = jax.random.PRNGKey(0)
    kp, kx = jax.random.split(root)
    params = init_sdped(kp, num_in_ch, num_out_ch,
                        num_feat, num_grow_ch, num_mid, num_block)
    x = jax.random.normal(kx, (N, num_in_ch, H, W), jnp.float32)

    out = sdped_forward(params, x, num_block, trade_SDB,
                        conv2d_pallas, combine_pallas)
    out = jax.block_until_ready(out)

    assert out.shape == (N, num_out_ch, H, W), out.shape
    assert bool(jnp.all(jnp.isfinite(out)))
    assert bool(jnp.all((out >= 0.0) & (out <= 1.0)))

    # Pure-JAX reference check.
    ref = sdped_forward(params, x, num_block, trade_SDB,
                        conv2d_ref, combine_ref)
    ref = jax.block_until_ready(ref)
    err = float(jnp.max(jnp.abs(out - ref)))
    if err > 2e-3:
        raise SystemExit("mismatch vs reference: max abs diff = %g" % err)
    print("KERNEL_OK")
</pallas_src>

<mosaic_0001>
module attributes {stable_mosaic.version = 11 : i64} {
  func.func @_conv_tap_kernel(%arg0: i32, %arg1: i32, %arg2: memref<1x1x326x3xf32, #tpu.memory_space<vmem>>, %arg3: memref<9x3x32xf32, #tpu.memory_space<vmem>>, %arg4: memref<1x32xf32, #tpu.memory_space<vmem>>, %arg5: memref<1x1x288x32xf32, #tpu.memory_space<vmem>>) attributes {dimension_semantics = [#tpu.dimension_semantics<parallel>, #tpu.dimension_semantics<parallel>], iteration_bounds = array<i64: 2, 1>, scalar_prefetch = 0 : i64, scratch_operands = 0 : i64, tpu.core_type = #tpu.core_type<tc>, window_params = [{transform_indices = @transform_0, window_bounds = array<i64: 1, 1, 326, 3>}, {pipeline_mode = #tpu.pipeline_mode<synchronous>, transform_indices = @transform_1, window_bounds = array<i64: 9, 3, 32>}, {pipeline_mode = #tpu.pipeline_mode<synchronous>, transform_indices = @transform_2, window_bounds = array<i64: 1, 32>}, {transform_indices = @transform_3, window_bounds = array<i64: 1, 1, 288, 32>}]} {
    %c0 = arith.constant 0 : index
    %c0_0 = arith.constant 0 : index
    %c0_1 = arith.constant 0 : index
    %c0_2 = arith.constant 0 : index
    %0 = vector.load %arg2[%c0, %c0_0, %c0_1, %c0_2] : memref<1x1x326x3xf32, #tpu.memory_space<vmem>>, vector<1x1x288x3xf32>
    %1 = vector.shape_cast %0 : vector<1x1x288x3xf32> to vector<288x3xf32>
    %c0_3 = arith.constant 0 : index
    %c0_4 = arith.constant 0 : index
    %c0_5 = arith.constant 0 : index
    %2 = vector.load %arg3[%c0_3, %c0_4, %c0_5] : memref<9x3x32xf32, #tpu.memory_space<vmem>>, vector<1x3x32xf32>
    %3 = vector.shape_cast %2 : vector<1x3x32xf32> to vector<3x32xf32>
    %cst = arith.constant dense<0.000000e+00> : vector<288x32xf32>
    %4 = tpu.matmul %1, %3, %cst {dimension_numbers = #tpu.dot_dimension_numbers<[1], [0], [0], [1], [0, 0, 1, 1], [], []>} : vector<288x3xf32>, vector<3x32xf32>, vector<288x32xf32> -> vector<288x32xf32>
    %c0_6 = arith.constant 0 : index
    %c0_7 = arith.constant 0 : index
    %c0_8 = arith.constant 0 : index
    %c0_9 = arith.constant 0 : index
    %5 = vector.load %arg5[%c0_6, %c0_7, %c0_8, %c0_9] : memref<1x1x288x32xf32, #tpu.memory_space<vmem>>, vector<1x1x288x32xf32>
    %6 = vector.shape_cast %5 : vector<1x1x288x32xf32> to vector<288x32xf32>
    %7 = vector.shape_cast %4 : vector<288x32xf32> to vector<1x1x288x32xf32>
    tpu.vector_store %arg5[%c0_6, %c0_7, %c0_8, %c0_9], %7 {strides = array<i32>} : memref<1x1x288x32xf32, #tpu.memory_space<vmem>>, vector<1x1x288x32xf32>,
    %c0_10 = arith.constant 0 : index
    %c0_11 = arith.constant 0 : index
    %c1 = arith.constant 1 : index
    %c0_12 = arith.constant 0 : index
    %8 = vector.load %arg2[%c0_10, %c0_11, %c1, %c0_12] : memref<1x1x326x3xf32, #tpu.memory_space<vmem>>, vector<1x1x288x3xf32>
    %9 = vector.shape_cast %8 : vector<1x1x288x3xf32> to vector<288x3xf32>
    %c1_13 = arith.constant 1 : index
    %c0_14 = arith.constant 0 : index
    %c0_15 = arith.constant 0 : index
    %10 = vector.load %arg3[%c1_13, %c0_14, %c0_15] : memref<9x3x32xf32, #tpu.memory_space<vmem>>, vector<1x3x32xf32>
    %11 = vector.shape_cast %10 : vector<1x3x32xf32> to vector<3x32xf32>
    %cst_16 = arith.constant dense<0.000000e+00> : vector<288x32xf32>
    %12 = tpu.matmul %9, %11, %cst_16 {dimension_numbers = #tpu.dot_dimension_numbers<[1], [0], [0], [1], [0, 0, 1, 1], [], []>} : vector<288x3xf32>, vector<3x32xf32>, vector<288x32xf32> -> vector<288x32xf32>
    %c0_17 = arith.constant 0 : index
    %c0_18 = arith.constant 0 : index
    %c0_19 = arith.constant 0 : index
    %c0_20 = arith.constant 0 : index
    %13 = vector.load %arg5[%c0_17, %c0_18, %c0_19, %c0_20] : memref<1x1x288x32xf32, #tpu.memory_space<vmem>>, vector<1x1x288x32xf32>
    %14 = vector.shape_cast %13 : vector<1x1x288x32xf32> to vector<288x32xf32>
    %15 = arith.addf %14, %12 : vector<288x32xf32>
    %c0_21 = arith.constant 0 : index
    %c0_22 = arith.constant 0 : index
    %c0_23 = arith.constant 0 : index
    %c0_24 = arith.constant 0 : index
    %16 = vector.load %arg5[%c0_21, %c0_22, %c0_23, %c0_24] : memref<1x1x288x32xf32, #tpu.memory_space<vmem>>, vector<1x1x288x32xf32>
    %17 = vector.shape_cast %16 : vector<1x1x288x32xf32> to vector<288x32xf32>
    %18 = vector.shape_cast %15 : vector<288x32xf32> to vector<1x1x288x32xf32>
    tpu.vector_store %arg5[%c0_21, %c0_22, %c0_23, %c0_24], %18 {strides = array<i32>} : memref<1x1x288x32xf32, #tpu.memory_space<vmem>>, vector<1x1x288x32xf32>,
    %c0_25 = arith.constant 0 : index
    %c0_26 = arith.constant 0 : index
    %c2 = arith.constant 2 : index
    %c0_27 = arith.constant 0 : index
    %19 = vector.load %arg2[%c0_25, %c0_26, %c2, %c0_27] : memref<1x1x326x3xf32, #tpu.memory_space<vmem>>, vector<1x1x288x3xf32>
    %20 = vector.shape_cast %19 : vector<1x1x288x3xf32> to vector<288x3xf32>
    %c2_28 = arith.constant 2 : index
    %c0_29 = arith.constant 0 : index
    %c0_30 = arith.constant 0 : index
    %21 = vector.load %arg3[%c2_28, %c0_29, %c0_30] : memref<9x3x32xf32, #tpu.memory_space<vmem>>, vector<1x3x32xf32>
    %22 = vector.shape_cast %21 : vector<1x3x32xf32> to vector<3x32xf32>
    %cst_31 = arith.constant dense<0.000000e+00> : vector<288x32xf32>
    %23 = tpu.matmul %20, %22, %cst_31 {dimension_numbers = #tpu.dot_dimension_numbers<[1], [0], [0], [1], [0, 0, 1, 1], [], []>} : vector<288x3xf32>, vector<3x32xf32>, vector<288x32xf32> -> vector<288x32xf32>
    %c0_32 = arith.constant 0 : index
    %c0_33 = arith.constant 0 : index
    %c0_34 = arith.constant 0 : index
    %c0_35 = arith.constant 0 : index
    %24 = vector.load %arg5[%c0_32, %c0_33, %c0_34, %c0_35] : memref<1x1x288x32xf32, #tpu.memory_space<vmem>>, vector<1x1x288x32xf32>
    %25 = vector.shape_cast %24 : vector<1x1x288x32xf32> to vector<288x32xf32>
    %26 = arith.addf %25, %23 : vector<288x32xf32>
    %c0_36 = arith.constant 0 : index
    %c0_37 = arith.constant 0 : index
    %c0_38 = arith.constant 0 : index
    %c0_39 = arith.constant 0 : index
    %27 = vector.load %arg5[%c0_36, %c0_37, %c0_38, %c0_39] : memref<1x1x288x32xf32, #tpu.memory_space<vmem>>, vector<1x1x288x32xf32>
    %28 = vector.shape_cast %27 : vector<1x1x288x32xf32> to vector<288x32xf32>
    %29 = vector.shape_cast %26 : vector<288x32xf32> to vector<1x1x288x32xf32>
    tpu.vector_store %arg5[%c0_36, %c0_37, %c0_38, %c0_39], %29 {strides = array<i32>} : memref<1x1x288x32xf32, #tpu.memory_space<vmem>>, vector<1x1x288x32xf32>,
    %c0_40 = arith.constant 0 : index
    %c0_41 = arith.constant 0 : index
    %c18 = arith.constant 18 : index
    %c0_42 = arith.constant 0 : index
    %30 = vector.load %arg2[%c0_40, %c0_41, %c18, %c0_42] : memref<1x1x326x3xf32, #tpu.memory_space<vmem>>, vector<1x1x288x3xf32>
    %31 = vector.shape_cast %30 : vector<1x1x288x3xf32> to vector<288x3xf32>
    %c3 = arith.constant 3 : index
    %c0_43 = arith.constant 0 : index
    %c0_44 = arith.constant 0 : index
    %32 = vector.load %arg3[%c3, %c0_43, %c0_44] : memref<9x3x32xf32, #tpu.memory_space<vmem>>, vector<1x3x32xf32>
    %33 = vector.shape_cast %32 : vector<1x3x32xf32> to vector<3x32xf32>
    %cst_45 = arith.constant dense<0.000000e+00> : vector<288x32xf32>
    %34 = tpu.matmul %31, %33, %cst_45 {dimension_numbers = #tpu.dot_dimension_numbers<[1], [0], [0], [1], [0, 0, 1, 1], [], []>} : vector<288x3xf32>, vector<3x32xf32>, vector<288x32xf32> -> vector<288x32xf32>
    %c0_46 = arith.constant 0 : index
    %c0_47 = arith.constant 0 : index
    %c0_48 = arith.constant 0 : index
    %c0_49 = arith.constant 0 : index
    %35 = vector.load %arg5[%c0_46, %c0_47, %c0_48, %c0_49] : memref<1x1x288x32xf32, #tpu.memory_space<vmem>>, vector<1x1x288x32xf32>
    %36 = vector.shape_cast %35 : vector<1x1x288x32xf32> to vector<288x32xf32>
    %37 = arith.addf %36, %34 : vector<288x32xf32>
    %c0_50 = arith.constant 0 : index
    %c0_51 = arith.constant 0 : index
    %c0_52 = arith.constant 0 : index
    %c0_53 = arith.constant 0 : index
    %38 = vector.load %arg5[%c0_50, %c0_51, %c0_52, %c0_53] : memref<1x1x288x32xf32, #tpu.memory_space<vmem>>, vector<1x1x288x32xf32>
    %39 = vector.shape_cast %38 : vector<1x1x288x32xf32> to vector<288x32xf32>
    %40 = vector.shape_cast %37 : vector<288x32xf32> to vector<1x1x288x32xf32>
    tpu.vector_store %arg5[%c0_50, %c0_51, %c0_52, %c0_53], %40 {strides = array<i32>} : memref<1x1x288x32xf32, #tpu.memory_space<vmem>>, vector<1x1x288x32xf32>,
    %c0_54 = arith.constant 0 : index
    %c0_55 = arith.constant 0 : index
    %c19 = arith.constant 19 : index
    %c0_56 = arith.constant 0 : index
    %41 = vector.load %arg2[%c0_54, %c0_55, %c19, %c0_56] : memref<1x1x326x3xf32, #tpu.memory_space<vmem>>, vector<1x1x288x3xf32>
    %42 = vector.shape_cast %41 : vector<1x1x288x3xf32> to vector<288x3xf32>
    %c4 = arith.constant 4 : index
    %c0_57 = arith.constant 0 : index
    %c0_58 = arith.constant 0 : index
    %43 = vector.load %arg3[%c4, %c0_57, %c0_58] : memref<9x3x32xf32, #tpu.memory_space<vmem>>, vector<1x3x32xf32>
    %44 = vector.shape_cast %43 : vector<1x3x32xf32> to vector<3x32xf32>
    %cst_59 = arith.constant dense<0.000000e+00> : vector<288x32xf32>
    %45 = tpu.matmul %42, %44, %cst_59 {dimension_numbers = #tpu.dot_dimension_numbers<[1], [0], [0], [1], [0, 0, 1, 1], [], []>} : vector<288x3xf32>, vector<3x32xf32>, vector<288x32xf32> -> vector<288x32xf32>
    %c0_60 = arith.constant 0 : index
    %c0_61 = arith.constant 0 : index
    %c0_62 = arith.constant 0 : index
    %c0_63 = arith.constant 0 : index
    %46 = vector.load %arg5[%c0_60, %c0_61, %c0_62, %c0_63] : memref<1x1x288x32xf32, #tpu.memory_space<vmem>>, vector<1x1x288x32xf32>
    %47 = vector.shape_cast %46 : vector<1x1x288x32xf32> to vector<288x32xf32>
    %48 = arith.addf %47, %45 : vector<288x32xf32>
    %c0_64 = arith.constant 0 : index
    %c0_65 = arith.constant 0 : index
    %c0_66 = arith.constant 0 : index
    %c0_67 = arith.constant 0 : index
    %49 = vector.load %arg5[%c0_64, %c0_65, %c0_66, %c0_67] : memref<1x1x288x32xf32, #tpu.memory_space<vmem>>, vector<1x1x288x32xf32>
    %50 = vector.shape_cast %49 : vector<1x1x288x32xf32> to vector<288x32xf32>
    %51 = vector.shape_cast %48 : vector<288x32xf32> to vector<1x1x288x32xf32>
    tpu.vector_store %arg5[%c0_64, %c0_65, %c0_66, %c0_67], %51 {strides = array<i32>} : memref<1x1x288x32xf32, #tpu.memory_space<vmem>>, vector<1x1x288x32xf32>,
    %c0_68 = arith.constant 0 : index
    %c0_69 = arith.constant 0 : index
    %c20 = arith.constant 20 : index
    %c0_70 = arith.constant 0 : index
    %52 = vector.load %arg2[%c0_68, %c0_69, %c20, %c0_70] : memref<1x1x326x3xf32, #tpu.memory_space<vmem>>, vector<1x1x288x3xf32>
    %53 = vector.shape_cast %52 : vector<1x1x288x3xf32> to vector<288x3xf32>
    %c5 = arith.constant 5 : index
    %c0_71 = arith.constant 0 : index
    %c0_72 = arith.constant 0 : index
    %54 = vector.load %arg3[%c5, %c0_71, %c0_72] : memref<9x3x32xf32, #tpu.memory_space<vmem>>, vector<1x3x32xf32>
    %55 = vector.shape_cast %54 : vector<1x3x32xf32> to vector<3x32xf32>
    %cst_73 = arith.constant dense<0.000000e+00> : vector<288x32xf32>
    %56 = tpu.matmul %53, %55, %cst_73 {dimension_numbers = #tpu.dot_dimension_numbers<[1], [0], [0], [1], [0, 0, 1, 1], [], []>} : vector<288x3xf32>, vector<3x32xf32>, vector<288x32xf32> -> vector<288x32xf32>
    %c0_74 = arith.constant 0 : index
    %c0_75 = arith.constant 0 : index
    %c0_76 = arith.constant 0 : index
    %c0_77 = arith.constant 0 : index
    %57 = vector.load %arg5[%c0_74, %c0_75, %c0_76, %c0_77] : memref<1x1x288x32xf32, #tpu.memory_space<vmem>>, vector<1x1x288x32xf32>
    %58 = vector.shape_cast %57 : vector<1x1x288x32xf32> to vector<288x32xf32>
    %59 = arith.addf %58, %56 : vector<288x32xf32>
    %c0_78 = arith.constant 0 : index
    %c0_79 = arith.constant 0 : index
    %c0_80 = arith.constant 0 : index
    %c0_81 = arith.constant 0 : index
    %60 = vector.load %arg5[%c0_78, %c0_79, %c0_80, %c0_81] : memref<1x1x288x32xf32, #tpu.memory_space<vmem>>, vector<1x1x288x32xf32>
    %61 = vector.shape_cast %60 : vector<1x1x288x32xf32> to vector<288x32xf32>
    %62 = vector.shape_cast %59 : vector<288x32xf32> to vector<1x1x288x32xf32>
    tpu.vector_store %arg5[%c0_78, %c0_79, %c0_80, %c0_81], %62 {strides = array<i32>} : memref<1x1x288x32xf32, #tpu.memory_space<vmem>>, vector<1x1x288x32xf32>,
    %c0_82 = arith.constant 0 : index
    %c0_83 = arith.constant 0 : index
    %c36 = arith.constant 36 : index
    %c0_84 = arith.constant 0 : index
    %63 = vector.load %arg2[%c0_82, %c0_83, %c36, %c0_84] : memref<1x1x326x3xf32, #tpu.memory_space<vmem>>, vector<1x1x288x3xf32>
    %64 = vector.shape_cast %63 : vector<1x1x288x3xf32> to vector<288x3xf32>
    %c6 = arith.constant 6 : index
    %c0_85 = arith.constant 0 : index
    %c0_86 = arith.constant 0 : index
    %65 = vector.load %arg3[%c6, %c0_85, %c0_86] : memref<9x3x32xf32, #tpu.memory_space<vmem>>, vector<1x3x32xf32>
    %66 = vector.shape_cast %65 : vector<1x3x32xf32> to vector<3x32xf32>
    %cst_87 = arith.constant dense<0.000000e+00> : vector<288x32xf32>
    %67 = tpu.matmul %64, %66, %cst_87 {dimension_numbers = #tpu.dot_dimension_numbers<[1], [0], [0], [1], [0, 0, 1, 1], [], []>} : vector<288x3xf32>, vector<3x32xf32>, vector<288x32xf32> -> vector<288x32xf32>
    %c0_88 = arith.constant 0 : index
    %c0_89 = arith.constant 0 : index
    %c0_90 = arith.constant 0 : index
    %c0_91 = arith.constant 0 : index
    %68 = vector.load %arg5[%c0_88, %c0_89, %c0_90, %c0_91] : memref<1x1x288x32xf32, #tpu.memory_space<vmem>>, vector<1x1x288x32xf32>
    %69 = vector.shape_cast %68 : vector<1x1x288x32xf32> to vector<288x32xf32>
    %70 = arith.addf %69, %67 : vector<288x32xf32>
    %c0_92 = arith.constant 0 : index
    %c0_93 = arith.constant 0 : index
    %c0_94 = arith.constant 0 : index
    %c0_95 = arith.constant 0 : index
    %71 = vector.load %arg5[%c0_92, %c0_93, %c0_94, %c0_95] : memref<1x1x288x32xf32, #tpu.memory_space<vmem>>, vector<1x1x288x32xf32>
    %72 = vector.shape_cast %71 : vector<1x1x288x32xf32> to vector<288x32xf32>
    %73 = vector.shape_cast %70 : vector<288x32xf32> to vector<1x1x288x32xf32>
    tpu.vector_store %arg5[%c0_92, %c0_93, %c0_94, %c0_95], %73 {strides = array<i32>} : memref<1x1x288x32xf32, #tpu.memory_space<vmem>>, vector<1x1x288x32xf32>,
    %c0_96 = arith.constant 0 : index
    %c0_97 = arith.constant 0 : index
    %c37 = arith.constant 37 : index
    %c0_98 = arith.constant 0 : index
    %74 = vector.load %arg2[%c0_96, %c0_97, %c37, %c0_98] : memref<1x1x326x3xf32, #tpu.memory_space<vmem>>, vector<1x1x288x3xf32>
    %75 = vector.shape_cast %74 : vector<1x1x288x3xf32> to vector<288x3xf32>
    %c7 = arith.constant 7 : index
    %c0_99 = arith.constant 0 : index
    %c0_100 = arith.constant 0 : index
    %76 = vector.load %arg3[%c7, %c0_99, %c0_100] : memref<9x3x32xf32, #tpu.memory_space<vmem>>, vector<1x3x32xf32>
    %77 = vector.shape_cast %76 : vector<1x3x32xf32> to vector<3x32xf32>
    %cst_101 = arith.constant dense<0.000000e+00> : vector<288x32xf32>
    %78 = tpu.matmul %75, %77, %cst_101 {dimension_numbers = #tpu.dot_dimension_numbers<[1], [0], [0], [1], [0, 0, 1, 1], [], []>} : vector<288x3xf32>, vector<3x32xf32>, vector<288x32xf32> -> vector<288x32xf32>
    %c0_102 = arith.constant 0 : index
    %c0_103 = arith.constant 0 : index
    %c0_104 = arith.constant 0 : index
    %c0_105 = arith.constant 0 : index
    %79 = vector.load %arg5[%c0_102, %c0_103, %c0_104, %c0_105] : memref<1x1x288x32xf32, #tpu.memory_space<vmem>>, vector<1x1x288x32xf32>
    %80 = vector.shape_cast %79 : vector<1x1x288x32xf32> to vector<288x32xf32>
    %81 = arith.addf %80, %78 : vector<288x32xf32>
    %c0_106 = arith.constant 0 : index
    %c0_107 = arith.constant 0 : index
    %c0_108 = arith.constant 0 : index
    %c0_109 = arith.constant 0 : index
    %82 = vector.load %arg5[%c0_106, %c0_107, %c0_108, %c0_109] : memref<1x1x288x32xf32, #tpu.memory_space<vmem>>, vector<1x1x288x32xf32>
    %83 = vector.shape_cast %82 : vector<1x1x288x32xf32> to vector<288x32xf32>
    %84 = vector.shape_cast %81 : vector<288x32xf32> to vector<1x1x288x32xf32>
    tpu.vector_store %arg5[%c0_106, %c0_107, %c0_108, %c0_109], %84 {strides = array<i32>} : memref<1x1x288x32xf32, #tpu.memory_space<vmem>>, vector<1x1x288x32xf32>,
    %c0_110 = arith.constant 0 : index
    %c0_111 = arith.constant 0 : index
    %c38 = arith.constant 38 : index
    %c0_112 = arith.constant 0 : index
    %85 = vector.load %arg2[%c0_110, %c0_111, %c38, %c0_112] : memref<1x1x326x3xf32, #tpu.memory_space<vmem>>, vector<1x1x288x3xf32>
    %86 = vector.shape_cast %85 : vector<1x1x288x3xf32> to vector<288x3xf32>
    %c8 = arith.constant 8 : index
    %c0_113 = arith.constant 0 : index
    %c0_114 = arith.constant 0 : index
    %87 = vector.load %arg3[%c8, %c0_113, %c0_114] : memref<9x3x32xf32, #tpu.memory_space<vmem>>, vector<1x3x32xf32>
    %88 = vector.shape_cast %87 : vector<1x3x32xf32> to vector<3x32xf32>
    %cst_115 = arith.constant dense<0.000000e+00> : vector<288x32xf32>
    %89 = tpu.matmul %86, %88, %cst_115 {dimension_numbers = #tpu.dot_dimension_numbers<[1], [0], [0], [1], [0, 0, 1, 1], [], []>} : vector<288x3xf32>, vector<3x32xf32>, vector<288x32xf32> -> vector<288x32xf32>
    %c0_116 = arith.constant 0 : index
    %c0_117 = arith.constant 0 : index
    %c0_118 = arith.constant 0 : index
    %c0_119 = arith.constant 0 : index
    %90 = vector.load %arg5[%c0_116, %c0_117, %c0_118, %c0_119] : memref<1x1x288x32xf32, #tpu.memory_space<vmem>>, vector<1x1x288x32xf32>
    %91 = vector.shape_cast %90 : vector<1x1x288x32xf32> to vector<288x32xf32>
    %92 = arith.addf %91, %89 : vector<288x32xf32>
    %c0_120 = arith.constant 0 : index
    %c0_121 = arith.constant 0 : index
    %c0_122 = arith.constant 0 : index
    %c0_123 = arith.constant 0 : index
    %93 = vector.load %arg5[%c0_120, %c0_121, %c0_122, %c0_123] : memref<1x1x288x32xf32, #tpu.memory_space<vmem>>, vector<1x1x288x32xf32>
    %94 = vector.shape_cast %93 : vector<1x1x288x32xf32> to vector<288x32xf32>
    %95 = vector.shape_cast %92 : vector<288x32xf32> to vector<1x1x288x32xf32>
    tpu.vector_store %arg5[%c0_120, %c0_121, %c0_122, %c0_123], %95 {strides = array<i32>} : memref<1x1x288x32xf32, #tpu.memory_space<vmem>>, vector<1x1x288x32xf32>,
    %c0_124 = arith.constant 0 : index
    %c0_125 = arith.constant 0 : index
    %c0_126 = arith.constant 0 : index
    %c0_127 = arith.constant 0 : index
    %96 = vector.load %arg5[%c0_124, %c0_125, %c0_126, %c0_127] : memref<1x1x288x32xf32, #tpu.memory_space<vmem>>, vector<1x1x288x32xf32>
    %97 = vector.shape_cast %96 : vector<1x1x288x32xf32> to vector<288x32xf32>
    %c0_128 = arith.constant 0 : index
    %c0_129 = arith.constant 0 : index
    %98 = vector.load %arg4[%c0_128, %c0_129] : memref<1x32xf32, #tpu.memory_space<vmem>>, vector<1x32xf32>
    %99 = vector.broadcast %98 : vector<1x32xf32> to vector<288x32xf32>
    %100 = arith.addf %97, %99 : vector<288x32xf32>
    %cst_130 = arith.constant 0.000000e+00 : f32
    %101 = vector.broadcast %cst_130 : f32 to vector<288x32xf32>
    %102 = arith.cmpf oge, %100, %101 : vector<288x32xf32>
    %cst_131 = arith.constant 2.000000e-01 : f32
    %103 = vector.broadcast %cst_131 : f32 to vector<288x32xf32>
    %104 = arith.mulf %103, %100 : vector<288x32xf32>
    %105 = arith.select %102, %100, %104 : vector<288x32xi1>, vector<288x32xf32>
    %c0_132 = arith.constant 0 : index
    %c0_133 = arith.constant 0 : index
    %c0_134 = arith.constant 0 : index
    %c0_135 = arith.constant 0 : index
    %106 = vector.load %arg5[%c0_132, %c0_133, %c0_134, %c0_135] : memref<1x1x288x32xf32, #tpu.memory_space<vmem>>, vector<1x1x288x32xf32>
    %107 = vector.shape_cast %106 : vector<1x1x288x32xf32> to vector<288x32xf32>
    %108 = vector.shape_cast %105 : vector<288x32xf32> to vector<1x1x288x32xf32>
    tpu.vector_store %arg5[%c0_132, %c0_133, %c0_134, %c0_135], %108 {strides = array<i32>} : memref<1x1x288x32xf32, #tpu.memory_space<vmem>>, vector<1x1x288x32xf32>,
    return
  }
  func.func @transform_0(%arg0: i32, %arg1: i32) -> (i32, i32, i32, i32) {
    %c0_i32 = arith.constant 0 : i32
    %c0_i32_0 = arith.constant 0 : i32
    %c0_i32_1 = arith.constant 0 : i32
    return %arg0, %arg1, %c0_i32, %c0_i32_0 : i32, i32, i32, i32
  }
  func.func @transform_1(%arg0: i32, %arg1: i32) -> (i32, i32, i32) {
    %c0_i32 = arith.constant 0 : i32
    %c0_i32_0 = arith.constant 0 : i32
    %c0_i32_1 = arith.constant 0 : i32
    %c0_i32_2 = arith.constant 0 : i32
    return %c0_i32, %c0_i32_0, %c0_i32_1 : i32, i32, i32
  }
  func.func @transform_2(%arg0: i32, %arg1: i32) -> (i32, i32) {
    %c0_i32 = arith.constant 0 : i32
    %c0_i32_0 = arith.constant 0 : i32
    %c0_i32_1 = arith.constant 0 : i32
    return %c0_i32, %c0_i32_0 : i32, i32
  }
  func.func @transform_3(%arg0: i32, %arg1: i32) -> (i32, i32, i32, i32) {
    %c0_i32 = arith.constant 0 : i32
    %c0_i32_0 = arith.constant 0 : i32
    %c0_i32_1 = arith.constant 0 : i32
    return %arg0, %arg1, %c0_i32, %c0_i32_0 : i32, i32, i32, i32
  }
}

</mosaic_0001>

<bundles_post_ra>
// kernel: tpu_custom_call.1
= control target key start
LH: loop header
LB: loop body
LE: loop exit
PB: predicated region body
PF: predicated region fallthrough
CT: control target
= control target key end

     0   :  { %s4312_s12 = smov 0   ;;  %s4314_s13 = smov 0   ;;  %s6304_s0 = inlined_call_operand.vmem [shape: f32[2,1,326,3], index: 0, kind: input, shape index: {}]   ;;  %s6305_s1 = inlined_call_operand.vmem [shape: f32[9,3,32], index: 1, kind: input, shape index: {}]   ;;  %s6306_s2 = inlined_call_operand.vmem [shape: f32[1,32], index: 2, kind: input, shape index: {}]   ;;  %s6307_s3 = inlined_call_operand.vmem [shape: f32[2,1,288,32], index: 3, kind: output, shape index: {}]  }
   0x1   :  { %s4316_s14 = smov 0  }
   0x2 LB: > { %s25_s15 = sadd.s32 1, %s4286_s13  ;;  %p3891_p0 = scmp.ge.s32.totalorder %s4290_s14, 1  ;;  %s4290_s14 = sphi %s4316_s14, %s13_s14   ;;  %s4286_s13 = sphi %s4314_s13, %s6309_s13   ;;  %s4282_s12 = sphi %s4312_s12, %s6308_s12  }
   0x3   : > { %p27_p1 = scmp.ge.s32.totalorder %s25_s15, 2  ;;  %p157_p2 = scmp.lt.s32.totalorder %s4290_s14, 3 }
   0x5   : > { %s6311_s15 = smov (%p27_p1, %s25_s15), 0  ;;  %p158_p3 = pnand %p3891_p0, %p157_p2 }
   0x6   : > { %p189_p4 = scmp.lt.s32.totalorder (!%p158_p3), %s4282_s12, 1 }
   0x7   : > { %161 = sbr.rel (%p158_p3) target bundleno = 830 (0x33e), region = 32 }
   0xc   : > { %v243_v0 = vld [vmem:[%s6305_s1] sm:$0x7]  ;;  %vm353_vm0 = vcmask 1042432   ;;  %v3931_v1 = vld [vmem:[%s6305_s1 + $0x4] sm:$0x7]  ;;  %s6313_s12 = smov (!%p189_p4, %s4282_s12), 1 }
   0xd   : > { %4237 = vmatpush.msk.msra.mxu1 %vm353_vm0, %v243_v0  ;;  %4238 = vmatpush.msk.msra.mxu2 %vm353_vm0, %v243_v0  ;;  %v3969_v2 = vld [vmem:[%s6305_s1 + $0x8] sm:$0x7]  ;;  %v4007_v3 = vld [vmem:[%s6305_s1 + $0xc] sm:$0x7]  ;;  %v4045_v4 = vld [vmem:[%s6305_s1 + $0x10] sm:$0x7] }
   0xe   : > { %4239 = vmatpush.msk.msra.mxu3 %vm353_vm0, %v243_v0  ;;  %3894 = vmatpush.msk.msra.mxu0 %vm353_vm0, %v243_v0  ;;  %s4240_s26 = smul.u32 328, %s6313_s12  ;;  %vm244_vm1 = vcmask 23552   ;;  %v4083_v29 = vld [vmem:[%s6305_s1 + $0x14] sm:$0x7]  ;;  %v4121_v30 = vld [vmem:[%s6305_s1 + $0x18] sm:$0x7] }
   0xf   : > { %3932 = vmatpush.msk.msrb.mxu1 %vm353_vm0, %v3931_v1  ;;  %3970 = vmatpush.msk.msrb.mxu2 %vm353_vm0, %v3969_v2  ;;  %v4159_v35 = vld [vmem:[%s6305_s1 + $0x1c] sm:$0x7]  ;;  %v4197_v44 = vld [vmem:[%s6305_s1 + $0x20] sm:$0x7]  ;;  %s4241_s11 = smul.u32 288, %s6313_s12  ;;  %vm482_vm2 = vcmask 261120  }
  0x10   : > { %4008 = vmatpush.msk.msrb.mxu3 %vm353_vm0, %v4007_v3  ;;  %4046 = vmatpush.msk.msrb.mxu0 %vm353_vm0, %v4045_v4  ;;  %s4359_s29 = scalar_lea.vmem %s6304_s0, %s4240_s26 }
  0x11   : > { %v216_v5 = vld [vmem:[%s4359_s29 + $0x48] sm:$0xff]  ;;  %v225_v6 = vld [vmem:[%s4359_s29 + $0x90] sm:$0xff]  ;;  %v234_v7 = vld [vmem:[%s4359_s29 + $0xd8] sm:$0xff]  ;;  %s4503_s18 = scalar_lea.vmem %s6307_s3, %s4241_s11 }
  0x12   : > { %3904 = vmatmul.msk.f32.vlgmr.msra.gmra.mxu1 %vm244_vm1, %v216_v5  ;;  %3913 = vmatmul.msk.f32.vlgmr.msra.gmra.mxu2 %vm244_vm1, %v225_v6  ;;  %v207_v8 = vld [vmem:[%s4359_s29] sm:$0xff]  ;;  %v217_v9 = vld [vmem:[%s4359_s29 + $0x50] sm:$0xff]  ;;  %v226_v10 = vld [vmem:[%s4359_s29 + $0x98] sm:$0xff] }
  0x13   : > { %3922 = vmatmul.msk.f32.vlgmr.msra.gmra.mxu3 %vm244_vm1, %v234_v7  ;;  %3895 = vmatmul.msk.f32.vlgmr.msra.gmra.mxu0 %vm244_vm1, %v207_v8  ;;  %v235_v11 = vld [vmem:[%s4359_s29 + $0xe0] sm:$0xff]  ;;  %v208_v12 = vld [vmem:[%s4359_s29 + $0x8] sm:$0xff]  ;;  %v218_v13 = vld [vmem:[%s4359_s29 + $0x58] sm:$0xff] }
  0x14   : > { %v227_v14 = vld [vmem:[%s4359_s29 + $0xa0] sm:$0xff]  ;;  %v236_v15 = vld [vmem:[%s4359_s29 + $0xe8] sm:$0xff]  ;;  %v209_v16 = vld [vmem:[%s4359_s29 + $0x10] sm:$0xff]  ;;  %4084 = vmatpush.msk.msra.mxu1 %vm353_vm0, %v4083_v29  ;;  %4122 = vmatpush.msk.msra.mxu2 %vm353_vm0, %v4121_v30 }
  0x15   : > { %v219_v17 = vld [vmem:[%s4359_s29 + $0x60] sm:$0xff]  ;;  %v228_v18 = vld [vmem:[%s4359_s29 + $0xa8] sm:$0xff]  ;;  %v237_v19 = vld [vmem:[%s4359_s29 + $0xf0] sm:$0xff]  ;;  %4160 = vmatpush.msk.msra.mxu3 %vm353_vm0, %v4159_v35  ;;  %4198 = vmatpush.msk.msra.mxu0 %vm353_vm0, %v4197_v44 }
  0x16   : > { %v210_v20 = vld [vmem:[%s4359_s29 + $0x18] sm:$0xff]  ;;  %v220_v21 = vld [vmem:[%s4359_s29 + $0x68] sm:$0xff]  ;;  %v229_v22 = vld [vmem:[%s4359_s29 + $0xb0] sm:$0xff] }
  0x17   : > { %v238_v23 = vld [vmem:[%s4359_s29 + $0xf8] sm:$0xff]  ;;  %v211_v24 = vld [vmem:[%s4359_s29 + $0x20] sm:$0xff]  ;;  %v221_v25 = vld [vmem:[%s4359_s29 + $0x70] sm:$0xff] }
  0x18   : > { %v230_v26 = vld [vmem:[%s4359_s29 + $0xb8] sm:$0xff]  ;;  %v239_v27 = vld [vmem:[%s4359_s29 + $0x100] sm:$0xff]  ;;  %v212_v28 = vld [vmem:[%s4359_s29 + $0x28] sm:$0xff] }
  0x19   : > { %v222_v31 = vld [vmem:[%s4359_s29 + $0x78] sm:$0xff]  ;;  %v231_v32 = vld [vmem:[%s4359_s29 + $0xc0] sm:$0xff]  ;;  %v240_v33 = vld [vmem:[%s4359_s29 + $0x108] sm:$0xff] }
  0x1a   : > { %3905 = vmatmul.msk.f32.gmra.mxu1 %vm244_vm1, %v217_v9  ;;  %3914 = vmatmul.msk.f32.gmra.mxu2 %vm244_vm1, %v226_v10  ;;  %v213_v34 = vld [vmem:[%s4359_s29 + $0x30] sm:$0xff]  ;;  %v223_v36 = vld [vmem:[%s4359_s29 + $0x80] sm:$0xff]  ;;  %v232_v37 = vld [vmem:[%s4359_s29 + $0xc8] sm:$0xff] }
  0x1b   : > { %3923 = vmatmul.msk.f32.gmra.mxu3 %vm244_vm1, %v235_v11  ;;  %3896 = vmatmul.msk.f32.gmra.mxu0 %vm244_vm1, %v208_v12  ;;  %v241_v38 = vld [vmem:[%s4359_s29 + $0x110] sm:$0xff]  ;;  %v214_v39 = vld [vmem:[%s4359_s29 + $0x38] sm:$0xff]  ;;  %v224_v40 = vld [vmem:[%s4359_s29 + $0x88] sm:$0xff] }
  0x1c   : > { %v233_v41 = vld [vmem:[%s4359_s29 + $0xd0] sm:$0xff]  ;;  %v242_v42 = vld [vmem:[%s4359_s29 + $0x118] sm:$0xff]  ;;  %v215_v43 = vld [vmem:[%s4359_s29 + $0x40] sm:$0xff] }
  0x1d   : > { %v519_v45 = vld [vmem:[%s4359_s29 + $0x1] sm:$0xff]  ;;  %v1283_v47 = vld [vmem:[%s4359_s29 + $0x12] sm:$0xff]  ;;  %v520_v49 = vld [vmem:[%s4359_s29 + $0x9] sm:$0xff] }
  0x1e   : > { %v901_v46 = vld [vmem:[%s4359_s29 + $0x2] sm:$0xff]  ;;  %v1665_v48 = vld [vmem:[%s4359_s29 + $0x13] sm:$0xff]  ;;  %v902_v50 = vld [vmem:[%s4359_s29 + $0xa] sm:$0xff] }
  0x1f   : > { %v1284_v51 = vld [vmem:[%s4359_s29 + $0x1a] sm:$0xff]  ;;  %v521_v53 = vld [vmem:[%s4359_s29 + $0x11] sm:$0xff]  ;;  %v1285_v54 = vld [vmem:[%s4359_s29 + $0x22] sm:$0xff] }
  0x20   : > { %v1666_v52 = vld [vmem:[%s4359_s29 + $0x1b] sm:$0xff]  ;;  %v1667_v55 = vld [vmem:[%s4359_s29 + $0x23] sm:$0xff]  ;;  %v1668_v58 = vld [vmem:[%s4359_s29 + $0x2b] sm:$0xff] }
  0x21   : > { %v522_v56 = vld [vmem:[%s4359_s29 + $0x19] sm:$0xff]  ;;  %v1286_v57 = vld [vmem:[%s4359_s29 + $0x2a] sm:$0xff]  ;;  %v523_v59 = vld [vmem:[%s4359_s29 + $0x21] sm:$0xff] }
  0x22   : > { %3906 = vmatmul.msk.f32.gmra.mxu1 %vm244_vm1, %v218_v13  ;;  %3915 = vmatmul.msk.f32.gmra.mxu2 %vm244_vm1, %v227_v14  ;;  %v1287_v60 = vld [vmem:[%s4359_s29 + $0x32] sm:$0xff]  ;;  %v524_v62 = vld [vmem:[%s4359_s29 + $0x29] sm:$0xff]  ;;  %v1288_v63 = vld [vmem:[%s4359_s29 + $0x3a] sm:$0xff] }
  0x23   : > { %3924 = vmatmul.msk.f32.gmra.mxu3 %vm244_vm1, %v236_v15  ;;  %3897 = vmatmul.msk.f32.gmra.mxu0 %vm244_vm1, %v209_v16  ;;  %v1669_v61 = vld [vmem:[%s4359_s29 + $0x33] sm:$0xff]  ;;  %v1670_v0 = vld [vmem:[%s4359_s29 + $0x3b] sm:$0xff]  ;;  %v1671_v3 = vld [vmem:[%s4359_s29 + $0x43] sm:$0xff] }
  0x24   : > { %v525_v1 = vld [vmem:[%s4359_s29 + $0x31] sm:$0xff]  ;;  %v1289_v2 = vld [vmem:[%s4359_s29 + $0x42] sm:$0xff]  ;;  %v526_v5 = vld [vmem:[%s4359_s29 + $0x39] sm:$0xff] }
  0x25   : > { %v1290_v6 = vld [vmem:[%s4359_s29 + $0x4a] sm:$0xff]  ;;  %v527_v12 = vld [vmem:[%s4359_s29 + $0x41] sm:$0xff]  ;;  %v1291_v13 = vld [vmem:[%s4359_s29 + $0x52] sm:$0xff] }
  0x26   : > { %v1672_v8 = vld [vmem:[%s4359_s29 + $0x4b] sm:$0xff]  ;;  %v1673_v15 = vld [vmem:[%s4359_s29 + $0x53] sm:$0xff]  ;;  %v1675_v29 = vld [vmem:[%s4359_s29 + $0x63] sm:$0xff] }
  0x2a   : > { %3907 = vmatmul.msk.f32.gmra.mxu1 %vm244_vm1, %v219_v17  ;;  %3916 = vmatmul.msk.f32.gmra.mxu2 %vm244_vm1, %v228_v18 }
  0x2b   : > { %3925 = vmatmul.msk.f32.gmra.mxu3 %vm244_vm1, %v237_v19  ;;  %3898 = vmatmul.msk.f32.gmra.mxu0 %vm244_vm1, %v210_v20  ;;  %v528_v19 = vld [vmem:[%s4359_s29 + $0x49] sm:$0xff]  ;;  %v1292_v20 = vld [vmem:[%s4359_s29 + $0x5a] sm:$0xff] }
  0x32   : > { %3908 = vmatmul.msk.f32.gmra.mxu1 %vm244_vm1, %v220_v21  ;;  %3917 = vmatmul.msk.f32.gmra.mxu2 %vm244_vm1, %v229_v22  ;;  %v1674_v22 = vld [vmem:[%s4359_s29 + $0x5b] sm:$0xff] }
  0x33   : > { %3926 = vmatmul.msk.f32.gmra.mxu3 %vm244_vm1, %v238_v23  ;;  %3899 = vmatmul.msk.f32.gmra.mxu0 %vm244_vm1, %v211_v24 }
  0x3a   : > { %3909 = vmatmul.msk.f32.gmra.mxu1 %vm244_vm1, %v221_v25  ;;  %3918 = vmatmul.msk.f32.gmra.mxu2 %vm244_vm1, %v230_v26  ;;  %v529_v26 = vld [vmem:[%s4359_s29 + $0x51] sm:$0xff] }
  0x3b   : > { %3927 = vmatmul.msk.f32.gmra.mxu3 %vm244_vm1, %v239_v27  ;;  %3900 = vmatmul.msk.f32.gmra.mxu0 %vm244_vm1, %v212_v28  ;;  %v1293_v27 = vld [vmem:[%s4359_s29 + $0x62] sm:$0xff] }
  0x42   : > { %3910 = vmatmul.msk.f32.gmra.mxu1 %vm244_vm1, %v222_v31  ;;  %3919 = vmatmul.msk.f32.gmra.mxu2 %vm244_vm1, %v231_v32 }
  0x43   : > { %3928 = vmatmul.msk.f32.gmra.mxu3 %vm244_vm1, %v240_v33  ;;  %3901 = vmatmul.msk.f32.gmra.mxu0 %vm244_vm1, %v213_v34  ;;  %v530_v33 = vld [vmem:[%s4359_s29 + $0x59] sm:$0xff]  ;;  %v1294_v34 = vld [vmem:[%s4359_s29 + $0x6a] sm:$0xff] }
  0x4a   : > { %3911 = vmatmul.msk.f32.gmra.mxu1 %vm244_vm1, %v223_v36  ;;  %3920 = vmatmul.msk.f32.gmra.mxu2 %vm244_vm1, %v232_v37  ;;  %v1676_v36 = vld [vmem:[%s4359_s29 + $0x6b] sm:$0xff] }
  0x4b   : > { %3929 = vmatmul.msk.f32.gmra.mxu3 %vm244_vm1, %v241_v38  ;;  %3902 = vmatmul.msk.f32.gmra.mxu0 %vm244_vm1, %v214_v39 }
  0x52   : > { %3912 = vmatmul.msk.f32.gmra.mxu1 %vm244_vm1, %v224_v40  ;;  %3921 = vmatmul.msk.f32.gmra.mxu2 %vm244_vm1, %v233_v41  ;;  %v531_v40 = vld [vmem:[%s4359_s29 + $0x61] sm:$0xff]  ;;  %v1295_v41 = vld [vmem:[%s4359_s29 + $0x72] sm:$0xff] }
  0x53   : > { %3930 = vmatmul.msk.f32.gmra.mxu3 %vm244_vm1, %v242_v42  ;;  %3903 = vmatmul.msk.f32.gmra.mxu0 %vm244_vm1, %v215_v43  ;;  %v1677_v43 = vld [vmem:[%s4359_s29 + $0x73] sm:$0xff] }
  0x5a   : > { %3933 = vmatmul.msk.f32.vlgmr.msrb.gmra.mxu1 %vm244_vm1, %v519_v45  ;;  %3971 = vmatmul.msk.f32.vlgmr.msrb.gmra.mxu2 %vm244_vm1, %v901_v46 }
  0x5b   : > { %4009 = vmatmul.msk.f32.vlgmr.msrb.gmra.mxu3 %vm244_vm1, %v1283_v47  ;;  %4047 = vmatmul.msk.f32.vlgmr.msrb.gmra.mxu0 %vm244_vm1, %v1665_v48  ;;  %v1296_v48 = vld [vmem:[%s4359_s29 + $0x7a] sm:$0xff] }
  0x62   : > { %3934 = vmatmul.msk.f32.gmra.mxu1 %vm244_vm1, %v520_v49  ;;  %3972 = vmatmul.msk.f32.gmra.mxu2 %vm244_vm1, %v902_v50  ;;  %v1678_v50 = vld [vmem:[%s4359_s29 + $0x7b] sm:$0xff] }
  0x63   : > { %4010 = vmatmul.msk.f32.gmra.mxu3 %vm244_vm1, %v1284_v51  ;;  %4048 = vmatmul.msk.f32.gmra.mxu0 %vm244_vm1, %v1666_v52 }
  0x6a   : > { %3935 = vmatmul.msk.f32.gmra.mxu1 %vm244_vm1, %v521_v53  ;;  %3973 = vmatmul.msk.f32.gmra.mxu2 %vm244_vm1, %v1283_v47  ;;  %v532_v47 = vld [vmem:[%s4359_s29 + $0x69] sm:$0xff] }
  0x6b   : > { %4011 = vmatmul.msk.f32.gmra.mxu3 %vm244_vm1, %v1285_v54  ;;  %4049 = vmatmul.msk.f32.gmra.mxu0 %vm244_vm1, %v1667_v55  ;;  %v1297_v55 = vld [vmem:[%s4359_s29 + $0x82] sm:$0xff] }
  0x72   : > { %3936 = vmatmul.msk.f32.gmra.mxu1 %vm244_vm1, %v522_v56  ;;  %3974 = vmatmul.msk.f32.gmra.mxu2 %vm244_vm1, %v1284_v51 }
  0x73   : > { %4012 = vmatmul.msk.f32.gmra.mxu3 %vm244_vm1, %v1286_v57  ;;  %4050 = vmatmul.msk.f32.gmra.mxu0 %vm244_vm1, %v1668_v58 }
  0x7a   : > { %3937 = vmatmul.msk.f32.gmra.mxu1 %vm244_vm1, %v523_v59  ;;  %3975 = vmatmul.msk.f32.gmra.mxu2 %vm244_vm1, %v1285_v54  ;;  %v533_v54 = vld [vmem:[%s4359_s29 + $0x71] sm:$0xff] }
  0x7b   : > { %4013 = vmatmul.msk.f32.gmra.mxu3 %vm244_vm1, %v1287_v60  ;;  %4051 = vmatmul.msk.f32.gmra.mxu0 %vm244_vm1, %v1669_v61  ;;  %v534_v61 = vld [vmem:[%s4359_s29 + $0x79] sm:$0xff] }
  0x82   : > { %3938 = vmatmul.msk.f32.gmra.mxu1 %vm244_vm1, %v524_v62  ;;  %3976 = vmatmul.msk.f32.gmra.mxu2 %vm244_vm1, %v1286_v57  ;;  %v1679_v57 = vld [vmem:[%s4359_s29 + $0x83] sm:$0xff] }
  0x83   : > { %4014 = vmatmul.msk.f32.gmra.mxu3 %vm244_vm1, %v1288_v63  ;;  %4052 = vmatmul.msk.f32.gmra.mxu0 %vm244_vm1, %v1670_v0  ;;  %v1298_v62 = vld [vmem:[%s4359_s29 + $0x8a] sm:$0xff] }
  0x84   : > { %v1680_v0 = vld [vmem:[%s4359_s29 + $0x8b] sm:$0xff] }
  0x8a   : > { %3939 = vmatmul.msk.f32.gmra.mxu1 %vm244_vm1, %v525_v1  ;;  %3977 = vmatmul.msk.f32.gmra.mxu2 %vm244_vm1, %v1287_v60 }
  0x8b   : > { %4015 = vmatmul.msk.f32.gmra.mxu3 %vm244_vm1, %v1289_v2  ;;  %4053 = vmatmul.msk.f32.gmra.mxu0 %vm244_vm1, %v1671_v3 }
  0x8f   : > { %v401_v4 = vpop.f32.mrf.mxu1 }
  0x90   : > { %492 = vst.msk [vmem:[%s4503_s18 + $0x48] sm:$0xff] %vm482_vm2, %v401_v4  ;;  %v374_v7 = vpop.f32.mrf.mxu0 }
  0x91   : > { %483 = vst.msk [vmem:[%s4503_s18] sm:$0xff] %vm482_vm2, %v374_v7  ;;  %v1299_v7 = vld [vmem:[%s4359_s29 + $0x92] sm:$0xff] }
  0x92   : > { %3940 = vmatmul.msk.f32.gmra.mxu1 %vm244_vm1, %v526_v5  ;;  %3978 = vmatmul.msk.f32.gmra.mxu2 %vm244_vm1, %v1288_v63  ;;  %v535_v5 = vld [vmem:[%s4359_s29 + $0x81] sm:$0xff] }
  0x93   : > { %4016 = vmatmul.msk.f32.gmra.mxu3 %vm244_vm1, %v1290_v6  ;;  %4054 = vmatmul.msk.f32.gmra.mxu0 %vm244_vm1, %v1672_v8 }
  0x95   : > { %v428_v9 = vpop.f32.mrf.mxu2 }
  0x96   : > { %501 = vst.msk [vmem:[%s4503_s18 + $0x90] sm:$0xff] %vm482_vm2, %v428_v9  ;;  %v455_v10 = vpop.f32.mrf.mxu3  ;;  %v1681_v9 = vld [vmem:[%s4359_s29 + $0x93] sm:$0xff] }
  0x97   : > { %v404_v11 = vpop.f32.mrf.mxu1  ;;  %510 = vst.msk [vmem:[%s4503_s18 + $0xd8] sm:$0xff] %vm482_vm2, %v455_v10 }
  0x98   : > { %493 = vst.msk [vmem:[%s4503_s18 + $0x50] sm:$0xff] %vm482_vm2, %v404_v11  ;;  %v377_v14 = vpop.f32.mrf.mxu0  ;;  %v793_v4 = vld [vmem:[%s4503_s18] sm:$0xff] }
  0x99   : > { %484 = vst.msk [vmem:[%s4503_s18 + $0x8] sm:$0xff] %vm482_vm2, %v377_v14  ;;  %v536_v14 = vld [vmem:[%s4359_s29 + $0x89] sm:$0xff] }
  0x9a   : > { %3941 = vmatmul.msk.f32.gmra.mxu1 %vm244_vm1, %v527_v12  ;;  %3979 = vmatmul.msk.f32.gmra.mxu2 %vm244_vm1, %v1289_v2 }
  0x9b   : > { %4017 = vmatmul.msk.f32.gmra.mxu3 %vm244_vm1, %v1291_v13  ;;  %4055 = vmatmul.msk.f32.gmra.mxu0 %vm244_vm1, %v1673_v15 }
  0x9d   : > { %v431_v16 = vpop.f32.mrf.mxu2 }
  0x9e   : > { %502 = vst.msk [vmem:[%s4503_s18 + $0x98] sm:$0xff] %vm482_vm2, %v431_v16  ;;  %v458_v17 = vpop.f32.mrf.mxu3  ;;  %v1300_v16 = vld [vmem:[%s4359_s29 + $0x9a] sm:$0xff] }
  0x9f   : > { %v407_v18 = vpop.f32.mrf.mxu1  ;;  %511 = vst.msk [vmem:[%s4503_s18 + $0xe0] sm:$0xff] %vm482_vm2, %v458_v17 }
  0xa0   : > { %494 = vst.msk [vmem:[%s4503_s18 + $0x58] sm:$0xff] %vm482_vm2, %v407_v18  ;;  %v380_v21 = vpop.f32.mrf.mxu0 }
  0xa1   : > { %485 = vst.msk [vmem:[%s4503_s18 + $0x10] sm:$0xff] %vm482_vm2, %v380_v21 }
  0xa2   : > { %3942 = vmatmul.msk.f32.gmra.mxu1 %vm244_vm1, %v528_v19  ;;  %3980 = vmatmul.msk.f32.gmra.mxu2 %vm244_vm1, %v1290_v6 }
  0xa3   : > { %4018 = vmatmul.msk.f32.gmra.mxu3 %vm244_vm1, %v1292_v20  ;;  %4056 = vmatmul.msk.f32.gmra.mxu0 %vm244_vm1, %v1674_v22 }
  0xa5   : > { %v434_v23 = vpop.f32.mrf.mxu2 }
  0xa6   : > { %503 = vst.msk [vmem:[%s4503_s18 + $0xa0] sm:$0xff] %vm482_vm2, %v434_v23  ;;  %v461_v24 = vpop.f32.mrf.mxu3 }
  0xa7   : > { %v410_v25 = vpop.f32.mrf.mxu1  ;;  %512 = vst.msk [vmem:[%s4503_s18 + $0xe8] sm:$0xff] %vm482_vm2, %v461_v24 }
  0xa8   : > { %495 = vst.msk [vmem:[%s4503_s18 + $0x60] sm:$0xff] %vm482_vm2, %v410_v25  ;;  %v383_v28 = vpop.f32.mrf.mxu0  ;;  %v795_v24 = vld [vmem:[%s4503_s18 + $0x10] sm:$0xff] }
  0xa9   : > { %486 = vst.msk [vmem:[%s4503_s18 + $0x18] sm:$0xff] %vm482_vm2, %v383_v28  ;;  %v537_v25 = vld [vmem:[%s4359_s29 + $0x91] sm:$0xff] }
  0xaa   : > { %3943 = vmatmul.msk.f32.gmra.mxu1 %vm244_vm1, %v529_v26  ;;  %3981 = vmatmul.msk.f32.gmra.mxu2 %vm244_vm1, %v1291_v13  ;;  %v794_v13 = vld [vmem:[%s4503_s18 + $0x8] sm:$0xff] }
  0xab   : > { %4019 = vmatmul.msk.f32.gmra.mxu3 %vm244_vm1, %v1293_v27  ;;  %4057 = vmatmul.msk.f32.gmra.mxu0 %vm244_vm1, %v1675_v29 }
  0xad   : > { %v437_v30 = vpop.f32.mrf.mxu2 }
  0xae   : > { %504 = vst.msk [vmem:[%s4503_s18 + $0xa8] sm:$0xff] %vm482_vm2, %v437_v30  ;;  %v464_v31 = vpop.f32.mrf.mxu3 }
  0xaf   : > { %v413_v32 = vpop.f32.mrf.mxu1  ;;  %513 = vst.msk [vmem:[%s4503_s18 + $0xf0] sm:$0xff] %vm482_vm2, %v464_v31  ;;  %v1683_v31 = vld [vmem:[%s4359_s29 + $0xa3] sm:$0xff] }
  0xb0   : > { %496 = vst.msk [vmem:[%s4503_s18 + $0x68] sm:$0xff] %vm482_vm2, %v413_v32  ;;  %v386_v35 = vpop.f32.mrf.mxu0 }
  0xb1   : > { %487 = vst.msk [vmem:[%s4503_s18 + $0x20] sm:$0xff] %vm482_vm2, %v386_v35 }
  0xb2   : > { %3944 = vmatmul.msk.f32.gmra.mxu1 %vm244_vm1, %v530_v33  ;;  %3982 = vmatmul.msk.f32.gmra.mxu2 %vm244_vm1, %v1292_v20  ;;  %v1682_v20 = vld [vmem:[%s4359_s29 + $0x9b] sm:$0xff] }
  0xb3   : > { %4020 = vmatmul.msk.f32.gmra.mxu3 %vm244_vm1, %v1294_v34  ;;  %4058 = vmatmul.msk.f32.gmra.mxu0 %vm244_vm1, %v1676_v36 }
  0xb5   : > { %v440_v37 = vpop.f32.mrf.mxu2 }
  0xb6   : > { %505 = vst.msk [vmem:[%s4503_s18 + $0xb0] sm:$0xff] %vm482_vm2, %v440_v37  ;;  %v467_v38 = vpop.f32.mrf.mxu3  ;;  %v796_v37 = vld [vmem:[%s4503_s18 + $0x18] sm:$0xff] }
  0xb7   : > { %v416_v39 = vpop.f32.mrf.mxu1  ;;  %514 = vst.msk [vmem:[%s4503_s18 + $0xf8] sm:$0xff] %vm482_vm2, %v467_v38  ;;  %v538_v38 = vld [vmem:[%s4359_s29 + $0x99] sm:$0xff] }
  0xb8   : > { %497 = vst.msk [vmem:[%s4503_s18 + $0x70] sm:$0xff] %vm482_vm2, %v416_v39  ;;  %v389_v42 = vpop.f32.mrf.mxu0 }
  0xb9   : > { %488 = vst.msk [vmem:[%s4503_s18 + $0x28] sm:$0xff] %vm482_vm2, %v389_v42 }
  0xba   : > { %3945 = vmatmul.msk.f32.gmra.mxu1 %vm244_vm1, %v531_v40  ;;  %3983 = vmatmul.msk.f32.gmra.mxu2 %vm244_vm1, %v1293_v27  ;;  %v1301_v27 = vld [vmem:[%s4359_s29 + $0xa2] sm:$0xff]  ;;  %v1302_v40 = vld [vmem:[%s4359_s29 + $0xaa] sm:$0xff] }
  0xbb   : > { %4021 = vmatmul.msk.f32.gmra.mxu3 %vm244_vm1, %v1295_v41  ;;  %4059 = vmatmul.msk.f32.gmra.mxu0 %vm244_vm1, %v1677_v43 }
  0xbd   : > { %v443_v44 = vpop.f32.mrf.mxu2 }
  0xbe   : > { %506 = vst.msk [vmem:[%s4503_s18 + $0xb8] sm:$0xff] %vm482_vm2, %v443_v44  ;;  %v470_v45 = vpop.f32.mrf.mxu3  ;;  %v1684_v44 = vld [vmem:[%s4359_s29 + $0xab] sm:$0xff] }
  0xbf   : > { %v419_v46 = vpop.f32.mrf.mxu1  ;;  %515 = vst.msk [vmem:[%s4503_s18 + $0x100] sm:$0xff] %vm482_vm2, %v470_v45 }
  0xc0   : > { %498 = vst.msk [vmem:[%s4503_s18 + $0x78] sm:$0xff] %vm482_vm2, %v419_v46  ;;  %v392_v49 = vpop.f32.mrf.mxu0 }
  0xc1   : > { %489 = vst.msk [vmem:[%s4503_s18 + $0x30] sm:$0xff] %vm482_vm2, %v392_v49 }
  0xc2   : > { %3946 = vmatmul.msk.f32.gmra.mxu1 %vm244_vm1, %v532_v47  ;;  %3984 = vmatmul.msk.f32.gmra.mxu2 %vm244_vm1, %v1294_v34 }
  0xc3   : > { %4022 = vmatmul.msk.f32.gmra.mxu3 %vm244_vm1, %v1296_v48  ;;  %4060 = vmatmul.msk.f32.gmra.mxu0 %vm244_vm1, %v1678_v50 }
  0xc5   : > { %v446_v51 = vpop.f32.mrf.mxu2 }
  0xc6   : > { %507 = vst.msk [vmem:[%s4503_s18 + $0xc0] sm:$0xff] %vm482_vm2, %v446_v51  ;;  %v473_v52 = vpop.f32.mrf.mxu3 }
  0xc7   : > { %v422_v53 = vpop.f32.mrf.mxu1  ;;  %516 = vst.msk [vmem:[%s4503_s18 + $0x108] sm:$0xff] %vm482_vm2, %v473_v52  ;;  %v797_v52 = vld [vmem:[%s4503_s18 + $0x20] sm:$0xff] }
  0xc8   : > { %499 = vst.msk [vmem:[%s4503_s18 + $0x80] sm:$0xff] %vm482_vm2, %v422_v53  ;;  %v395_v56 = vpop.f32.mrf.mxu0  ;;  %v539_v53 = vld [vmem:[%s4359_s29 + $0xa1] sm:$0xff] }
  0xc9   : > { %490 = vst.msk [vmem:[%s4503_s18 + $0x38] sm:$0xff] %vm482_vm2, %v395_v56 }
  0xca   : > { %3947 = vmatmul.msk.f32.gmra.mxu1 %vm244_vm1, %v533_v54  ;;  %3985 = vmatmul.msk.f32.gmra.mxu2 %vm244_vm1, %v1295_v41 }
  0xcb   : > { %4023 = vmatmul.msk.f32.gmra.mxu3 %vm244_vm1, %v1297_v55  ;;  %4061 = vmatmul.msk.f32.gmra.mxu0 %vm244_vm1, %v1679_v57 }
  0xcd   : > { %v449_v58 = vpop.f32.mrf.mxu2 }
  0xce   : > { %508 = vst.msk [vmem:[%s4503_s18 + $0xc8] sm:$0xff] %vm482_vm2, %v449_v58  ;;  %v476_v59 = vpop.f32.mrf.mxu3 }
  0xcf   : > { %v425_v60 = vpop.f32.mrf.mxu1  ;;  %517 = vst.msk [vmem:[%s4503_s18 + $0x110] sm:$0xff] %vm482_vm2, %v476_v59  ;;  %v1685_v59 = vld [vmem:[%s4359_s29 + $0xb3] sm:$0xff] }
  0xd0   : > { %500 = vst.msk [vmem:[%s4503_s18 + $0x88] sm:$0xff] %vm482_vm2, %v425_v60  ;;  %v398_v63 = vpop.f32.mrf.mxu0 }
  0xd1   : > { %491 = vst.msk [vmem:[%s4503_s18 + $0x40] sm:$0xff] %vm482_vm2, %v398_v63 }
  0xd2   : > { %3948 = vmatmul.msk.f32.gmra.mxu1 %vm244_vm1, %v534_v61  ;;  %3986 = vmatmul.msk.f32.gmra.mxu2 %vm244_vm1, %v1296_v48 }
  0xd3   : > { %4024 = vmatmul.msk.f32.gmra.mxu3 %vm244_vm1, %v1298_v62  ;;  %4062 = vmatmul.msk.f32.gmra.mxu0 %vm244_vm1, %v1680_v0 }
  0xd5   : > { %v452_v1 = vpop.f32.mrf.mxu2 }
  0xd6   : > { %509 = vst.msk [vmem:[%s4503_s18 + $0xd0] sm:$0xff] %vm482_vm2, %v452_v1  ;;  %v479_v2 = vpop.f32.mrf.mxu3 }
  0xd7   : > { %v685_v3 = vpop.f32.mrf.mxu1  ;;  %518 = vst.msk [vmem:[%s4503_s18 + $0x118] sm:$0xff] %vm482_vm2, %v479_v2 }
  0xd8   : > { %v829_v6 = vadd.f32 %v793_v4, %v685_v3  ;;  %v4648_v8 = vpop.f32.mrf.mxu0  ;;  %v798_v3 = vld [vmem:[%s4503_s18 + $0x28] sm:$0xff] }
  0xd9   : > { %v540_v4 = vld [vmem:[%s4359_s29 + $0xa9] sm:$0xff] }
  0xda   : > { %865 = vst.msk [vmem:[%s4503_s18] sm:$0xff] %vm482_vm2, %v829_v6  ;;  %3949 = vmatmul.msk.f32.gmra.mxu1 %vm244_vm1, %v535_v5  ;;  %3987 = vmatmul.msk.f32.gmra.mxu2 %vm244_vm1, %v1297_v55  ;;  %v1303_v55 = vld [vmem:[%s4359_s29 + $0xb2] sm:$0xff]  ;;  %v1304_v6 = vld [vmem:[%s4359_s29 + $0xba] sm:$0xff] }
  0xdb   : > { %4025 = vmatmul.msk.f32.gmra.mxu3 %vm244_vm1, %v1299_v7  ;;  %4063 = vmatmul.msk.f32.gmra.mxu0 %vm244_vm1, %v1681_v9 }
  0xdd   : > { %v1067_v10 = vpop.f32.mrf.mxu2 }
  0xde   : > { %v1449_v11 = vpop.f32.mrf.mxu3 }
  0xdf   : > { %v688_v12 = vpop.f32.mrf.mxu1 }
  0xe0   : > { %v830_v15 = vadd.f32 %v794_v13, %v688_v12  ;;  %v4661_v19 = vpop.f32.mrf.mxu0 }
  0xe1   : > { %v1175_v17 = vld [vmem:[%s4503_s18] sm:$0xff] }
  0xe2   : > { %866 = vst.msk [vmem:[%s4503_s18 + $0x8] sm:$0xff] %vm482_vm2, %v830_v15  ;;  %v1211_v18 = vadd.f32 %v1175_v17, %v1067_v10  ;;  %3950 = vmatmul.msk.f32.gmra.mxu1 %vm244_vm1, %v536_v14  ;;  %3988 = vmatmul.msk.f32.gmra.mxu2 %vm244_vm1, %v1298_v62  ;;  %v1686_v10 = vld [vmem:[%s4359_s29 + $0xbb] sm:$0xff] }
  0xe3   : > { %4026 = vmatmul.msk.f32.gmra.mxu3 %vm244_vm1, %v1300_v16  ;;  %4064 = vmatmul.msk.f32.gmra.mxu0 %vm244_vm1, %v1682_v20 }
  0xe4   : > { %1247 = vst.msk [vmem:[%s4503_s18] sm:$0xff] %vm482_vm2, %v1211_v18  ;;  %v799_v18 = vld [vmem:[%s4503_s18 + $0x30] sm:$0xff] }
  0xe5   : > { %v1070_v21 = vpop.f32.mrf.mxu2 }
  0xe6   : > { %v1452_v22 = vpop.f32.mrf.mxu3 }
  0xe7   : > { %v691_v23 = vpop.f32.mrf.mxu1 }
  0xe8   : > { %v831_v26 = vadd.f32 %v795_v24, %v691_v23  ;;  %v4676_v30 = vpop.f32.mrf.mxu0 }
  0xe9   : > { %v1176_v28 = vld [vmem:[%s4503_s18 + $0x8] sm:$0xff] }
  0xea   : > { %867 = vst.msk [vmem:[%s4503_s18 + $0x10] sm:$0xff] %vm482_vm2, %v831_v26  ;;  %v1212_v29 = vadd.f32 %v1176_v28, %v1070_v21  ;;  %3951 = vmatmul.msk.f32.gmra.mxu1 %vm244_vm1, %v537_v25  ;;  %3989 = vmatmul.msk.f32.gmra.mxu2 %vm244_vm1, %v1299_v7  ;;  %v1305_v21 = vld [vmem:[%s4359_s29 + $0xc2] sm:$0xff] }
  0xeb   : > { %v1557_v32 = vld [vmem:[%s4503_s18] sm:$0xff]  ;;  %4027 = vmatmul.msk.f32.gmra.mxu3 %vm244_vm1, %v1301_v27  ;;  %4065 = vmatmul.msk.f32.gmra.mxu0 %vm244_vm1, %v1683_v31 }
  0xec   : > { %1248 = vst.msk [vmem:[%s4503_s18 + $0x8] sm:$0xff] %vm482_vm2, %v1212_v29  ;;  %v1593_v33 = vadd.f32 %v1557_v32, %v1449_v11  ;;  %v1687_v25 = vld [vmem:[%s4359_s29 + $0xc3] sm:$0xff] }
  0xed   : > { %v1073_v34 = vpop.f32.mrf.mxu2 }
  0xee   : > { %1629 = vst.msk [vmem:[%s4503_s18] sm:$0xff] %vm482_vm2, %v1593_v33  ;;  %v1455_v35 = vpop.f32.mrf.mxu3  ;;  %v800_v33 = vld [vmem:[%s4503_s18 + $0x38] sm:$0xff] }
  0xef   : > { %v694_v36 = vpop.f32.mrf.mxu1 }
  0xf0   : > { %v832_v39 = vadd.f32 %v796_v37, %v694_v36  ;;  %v4694_v43 = vpop.f32.mrf.mxu0  ;;  %v1306_v36 = vld [vmem:[%s4359_s29 + $0xca] sm:$0xff] }
  0xf1   : > { %v1177_v41 = vld [vmem:[%s4503_s18 + $0x10] sm:$0xff] }
  0xf2   : > { %868 = vst.msk [vmem:[%s4503_s18 + $0x18] sm:$0xff] %vm482_vm2, %v832_v39  ;;  %v1213_v42 = vadd.f32 %v1177_v41, %v1073_v34  ;;  %3952 = vmatmul.msk.f32.gmra.mxu1 %vm244_vm1, %v538_v38  ;;  %3990 = vmatmul.msk.f32.gmra.mxu2 %vm244_vm1, %v1300_v16  ;;  %v542_v34 = vld [vmem:[%s4359_s29 + $0xb9] sm:$0xff] }
  0xf3   : > { %v1558_v45 = vld [vmem:[%s4503_s18 + $0x8] sm:$0xff]  ;;  %4028 = vmatmul.msk.f32.gmra.mxu3 %vm244_vm1, %v1302_v40  ;;  %4066 = vmatmul.msk.f32.gmra.mxu0 %vm244_vm1, %v1684_v44 }
  0xf4   : > { %1249 = vst.msk [vmem:[%s4503_s18 + $0x10] sm:$0xff] %vm482_vm2, %v1213_v42  ;;  %v1594_v46 = vadd.f32 %v1558_v45, %v1452_v22 }
  0xf5   : > { %v1939_v47 = vld [vmem:[%s4503_s18] sm:$0xff]  ;;  %v1076_v48 = vpop.f32.mrf.mxu2 }
  0xf6   : > { %1630 = vst.msk [vmem:[%s4503_s18 + $0x8] sm:$0xff] %vm482_vm2, %v1594_v46  ;;  %v1975_v49 = vadd.f32 %v1939_v47, %v4648_v8  ;;  %v1458_v50 = vpop.f32.mrf.mxu3 }
  0xf7   : > { %v697_v51 = vpop.f32.mrf.mxu1 }
  0xf8   : > { %2011 = vst.msk [vmem:[%s4503_s18] sm:$0xff] %vm482_vm2, %v1975_v49  ;;  %v833_v54 = vadd.f32 %v797_v52, %v697_v51  ;;  %v4716_v58 = vpop.f32.mrf.mxu0  ;;  %v543_v49 = vld [vmem:[%s4359_s29 + $0xc1] sm:$0xff]  ;;  %v1307_v51 = vld [vmem:[%s4359_s29 + $0xd2] sm:$0xff] }
  0xf9   : > { %v1178_v56 = vld [vmem:[%s4503_s18 + $0x18] sm:$0xff] }
  0xfa   : > { %869 = vst.msk [vmem:[%s4503_s18 + $0x20] sm:$0xff] %vm482_vm2, %v833_v54  ;;  %v1214_v57 = vadd.f32 %v1178_v56, %v1076_v48  ;;  %3953 = vmatmul.msk.f32.gmra.mxu1 %vm244_vm1, %v539_v53  ;;  %3991 = vmatmul.msk.f32.gmra.mxu2 %vm244_vm1, %v1301_v27  ;;  %v801_v48 = vld [vmem:[%s4503_s18 + $0x40] sm:$0xff] }
  0xfb   : > { %v1559_v60 = vld [vmem:[%s4503_s18 + $0x10] sm:$0xff]  ;;  %4029 = vmatmul.msk.f32.gmra.mxu3 %vm244_vm1, %v1303_v55  ;;  %4067 = vmatmul.msk.f32.gmra.mxu0 %vm244_vm1, %v1685_v59 }
  0xfc   : > { %1250 = vst.msk [vmem:[%s4503_s18 + $0x18] sm:$0xff] %vm482_vm2, %v1214_v57  ;;  %v1595_v61 = vadd.f32 %v1559_v60, %v1455_v35 }
  0xfd   : > { %v1940_v62 = vld [vmem:[%s4503_s18 + $0x8] sm:$0xff]  ;;  %v1079_v63 = vpop.f32.mrf.mxu2 }
  0xfe   : > { %1631 = vst.msk [vmem:[%s4503_s18 + $0x10] sm:$0xff] %vm482_vm2, %v1595_v61  ;;  %v1976_v0 = vadd.f32 %v1940_v62, %v4661_v19  ;;  %v1461_v1 = vpop.f32.mrf.mxu3  ;;  %v541_v19 = vld [vmem:[%s4359_s29 + $0xb1] sm:$0xff] }
  0xff   : > { %v700_v2 = vpop.f32.mrf.mxu1 }
 0x100   : > { %2012 = vst.msk [vmem:[%s4503_s18 + $0x8] sm:$0xff] %vm482_vm2, %v1976_v0  ;;  %v834_v5 = vadd.f32 %v798_v3, %v700_v2  ;;  %v4738_v9 = vpop.f32.mrf.mxu0  ;;  %v544_v0 = vld [vmem:[%s4359_s29 + $0xc9] sm:$0xff]  ;;  %v1308_v2 = vld [vmem:[%s4359_s29 + $0xda] sm:$0xff] }
 0x101   : > { %v1179_v7 = vld [vmem:[%s4503_s18 + $0x20] sm:$0xff] }
 0x102   : > { %870 = vst.msk [vmem:[%s4503_s18 + $0x28] sm:$0xff] %vm482_vm2, %v834_v5  ;;  %v1215_v8 = vadd.f32 %v1179_v7, %v1079_v63  ;;  %3954 = vmatmul.msk.f32.gmra.mxu1 %vm244_vm1, %v540_v4  ;;  %3992 = vmatmul.msk.f32.gmra.mxu2 %vm244_vm1, %v1302_v40  ;;  %v1688_v40 = vld [vmem:[%s4359_s29 + $0xcb] sm:$0xff] }
 0x103   : > { %v1560_v11 = vld [vmem:[%s4503_s18 + $0x18] sm:$0xff]  ;;  %4030 = vmatmul.msk.f32.gmra.mxu3 %vm244_vm1, %v1304_v6  ;;  %4068 = vmatmul.msk.f32.gmra.mxu0 %vm244_vm1, %v1686_v10  ;;  %v802_v63 = vld [vmem:[%s4503_s18 + $0x48] sm:$0xff] }
 0x104   : > { %1251 = vst.msk [vmem:[%s4503_s18 + $0x20] sm:$0xff] %vm482_vm2, %v1215_v8  ;;  %v1596_v12 = vadd.f32 %v1560_v11, %v1458_v50 }
 0x105   : > { %v1941_v13 = vld [vmem:[%s4503_s18 + $0x10] sm:$0xff]  ;;  %v1082_v14 = vpop.f32.mrf.mxu2 }
 0x106   : > { %1632 = vst.msk [vmem:[%s4503_s18 + $0x18] sm:$0xff] %vm482_vm2, %v1596_v12  ;;  %v1977_v15 = vadd.f32 %v1941_v13, %v4676_v30  ;;  %v1464_v16 = vpop.f32.mrf.mxu3 }
 0x107   : > { %v703_v17 = vpop.f32.mrf.mxu1 }
 0x108   : > { %2013 = vst.msk [vmem:[%s4503_s18 + $0x10] sm:$0xff] %vm482_vm2, %v1977_v15  ;;  %v835_v20 = vadd.f32 %v799_v18, %v703_v17  ;;  %v4760_v24 = vpop.f32.mrf.mxu0  ;;  %v545_v15 = vld [vmem:[%s4359_s29 + $0xd1] sm:$0xff]  ;;  %v1309_v17 = vld [vmem:[%s4359_s29 + $0xe2] sm:$0xff] }
 0x109   : > { %v1180_v22 = vld [vmem:[%s4503_s18 + $0x28] sm:$0xff] }
 0x10a   : > { %871 = vst.msk [vmem:[%s4503_s18 + $0x30] sm:$0xff] %vm482_vm2, %v835_v20  ;;  %v1216_v23 = vadd.f32 %v1180_v22, %v1082_v14  ;;  %3955 = vmatmul.msk.f32.gmra.mxu1 %vm244_vm1, %v541_v19  ;;  %3993 = vmatmul.msk.f32.gmra.mxu2 %vm244_vm1, %v1303_v55  ;;  %v1689_v55 = vld [vmem:[%s4359_s29 + $0xd3] sm:$0xff] }
 0x10b   : > { %v1561_v26 = vld [vmem:[%s4503_s18 + $0x20] sm:$0xff]  ;;  %4031 = vmatmul.msk.f32.gmra.mxu3 %vm244_vm1, %v1305_v21  ;;  %4069 = vmatmul.msk.f32.gmra.mxu0 %vm244_vm1, %v1687_v25  ;;  %v803_v14 = vld [vmem:[%s4503_s18 + $0x50] sm:$0xff] }
 0x10c   : > { %1252 = vst.msk [vmem:[%s4503_s18 + $0x28] sm:$0xff] %vm482_vm2, %v1216_v23  ;;  %v1597_v27 = vadd.f32 %v1561_v26, %v1461_v1 }
 0x10d   : > { %v1942_v28 = vld [vmem:[%s4503_s18 + $0x18] sm:$0xff]  ;;  %v1085_v29 = vpop.f32.mrf.mxu2 }
 0x10e   : > { %1633 = vst.msk [vmem:[%s4503_s18 + $0x20] sm:$0xff] %vm482_vm2, %v1597_v27  ;;  %v1978_v30 = vadd.f32 %v1942_v28, %v4694_v43  ;;  %v1467_v31 = vpop.f32.mrf.mxu3 }
 0x10f   : > { %v706_v32 = vpop.f32.mrf.mxu1 }
 0x110   : > { %2014 = vst.msk [vmem:[%s4503_s18 + $0x18] sm:$0xff] %vm482_vm2, %v1978_v30  ;;  %v836_v35 = vadd.f32 %v800_v33, %v706_v32  ;;  %v4782_v39 = vpop.f32.mrf.mxu0  ;;  %v546_v30 = vld [vmem:[%s4359_s29 + $0xd9] sm:$0xff]  ;;  %v1310_v32 = vld [vmem:[%s4359_s29 + $0xea] sm:$0xff] }
 0x111   : > { %v1181_v37 = vld [vmem:[%s4503_s18 + $0x30] sm:$0xff] }
 0x112   : > { %872 = vst.msk [vmem:[%s4503_s18 + $0x38] sm:$0xff] %vm482_vm2, %v836_v35  ;;  %v1217_v38 = vadd.f32 %v1181_v37, %v1085_v29  ;;  %3956 = vmatmul.msk.f32.gmra.mxu1 %vm244_vm1, %v542_v34  ;;  %3994 = vmatmul.msk.f32.gmra.mxu2 %vm244_vm1, %v1304_v6  ;;  %v1690_v6 = vld [vmem:[%s4359_s29 + $0xdb] sm:$0xff] }
 0x113   : > { %v1562_v41 = vld [vmem:[%s4503_s18 + $0x28] sm:$0xff]  ;;  %4032 = vmatmul.msk.f32.gmra.mxu3 %vm244_vm1, %v1306_v36  ;;  %4070 = vmatmul.msk.f32.gmra.mxu0 %vm244_vm1, %v1688_v40  ;;  %v804_v29 = vld [vmem:[%s4503_s18 + $0x58] sm:$0xff] }
 0x114   : > { %1253 = vst.msk [vmem:[%s4503_s18 + $0x30] sm:$0xff] %vm482_vm2, %v1217_v38  ;;  %v1598_v42 = vadd.f32 %v1562_v41, %v1464_v16 }
 0x115   : > { %v1943_v43 = vld [vmem:[%s4503_s18 + $0x20] sm:$0xff]  ;;  %v1088_v44 = vpop.f32.mrf.mxu2 }
 0x116   : > { %1634 = vst.msk [vmem:[%s4503_s18 + $0x28] sm:$0xff] %vm482_vm2, %v1598_v42  ;;  %v1979_v45 = vadd.f32 %v1943_v43, %v4716_v58  ;;  %v1470_v46 = vpop.f32.mrf.mxu3 }
 0x117   : > { %v709_v47 = vpop.f32.mrf.mxu1 }
 0x118   : > { %2015 = vst.msk [vmem:[%s4503_s18 + $0x20] sm:$0xff] %vm482_vm2, %v1979_v45  ;;  %v837_v50 = vadd.f32 %v801_v48, %v709_v47  ;;  %v4804_v54 = vpop.f32.mrf.mxu0  ;;  %v547_v45 = vld [vmem:[%s4359_s29 + $0xe1] sm:$0xff]  ;;  %v1311_v47 = vld [vmem:[%s4359_s29 + $0xf2] sm:$0xff] }
 0x119   : > { %v1182_v52 = vld [vmem:[%s4503_s18 + $0x38] sm:$0xff] }
 0x11a   : > { %873 = vst.msk [vmem:[%s4503_s18 + $0x40] sm:$0xff] %vm482_vm2, %v837_v50  ;;  %v1218_v53 = vadd.f32 %v1182_v52, %v1088_v44  ;;  %3957 = vmatmul.msk.f32.gmra.mxu1 %vm244_vm1, %v543_v49  ;;  %3995 = vmatmul.msk.f32.gmra.mxu2 %vm244_vm1, %v1305_v21  ;;  %v1691_v21 = vld [vmem:[%s4359_s29 + $0xe3] sm:$0xff] }
 0x11b   : > { %v1563_v56 = vld [vmem:[%s4503_s18 + $0x30] sm:$0xff]  ;;  %4033 = vmatmul.msk.f32.gmra.mxu3 %vm244_vm1, %v1307_v51  ;;  %4071 = vmatmul.msk.f32.gmra.mxu0 %vm244_vm1, %v1689_v55  ;;  %v805_v44 = vld [vmem:[%s4503_s18 + $0x60] sm:$0xff] }
 0x11c   : > { %1254 = vst.msk [vmem:[%s4503_s18 + $0x38] sm:$0xff] %vm482_vm2, %v1218_v53  ;;  %v1599_v57 = vadd.f32 %v1563_v56, %v1467_v31 }
 0x11d   : > { %v1944_v58 = vld [vmem:[%s4503_s18 + $0x28] sm:$0xff]  ;;  %v1091_v59 = vpop.f32.mrf.mxu2 }
 0x11e   : > { %1635 = vst.msk [vmem:[%s4503_s18 + $0x30] sm:$0xff] %vm482_vm2, %v1599_v57  ;;  %v1980_v60 = vadd.f32 %v1944_v58, %v4738_v9  ;;  %v1473_v61 = vpop.f32.mrf.mxu3 }
 0x11f   : > { %v712_v62 = vpop.f32.mrf.mxu1 }
 0x120   : > { %2016 = vst.msk [vmem:[%s4503_s18 + $0x28] sm:$0xff] %vm482_vm2, %v1980_v60  ;;  %v838_v1 = vadd.f32 %v802_v63, %v712_v62  ;;  %v4826_v5 = vpop.f32.mrf.mxu0  ;;  %v548_v60 = vld [vmem:[%s4359_s29 + $0xe9] sm:$0xff]  ;;  %v1312_v62 = vld [vmem:[%s4359_s29 + $0xfa] sm:$0xff] }
 0x121   : > { %v1183_v3 = vld [vmem:[%s4503_s18 + $0x40] sm:$0xff] }
 0x122   : > { %874 = vst.msk [vmem:[%s4503_s18 + $0x48] sm:$0xff] %vm482_vm2, %v838_v1  ;;  %v1219_v4 = vadd.f32 %v1183_v3, %v1091_v59  ;;  %3958 = vmatmul.msk.f32.gmra.mxu1 %vm244_vm1, %v544_v0  ;;  %3996 = vmatmul.msk.f32.gmra.mxu2 %vm244_vm1, %v1306_v36  ;;  %v1692_v36 = vld [vmem:[%s4359_s29 + $0xeb] sm:$0xff] }
 0x123   : > { %v1564_v7 = vld [vmem:[%s4503_s18 + $0x38] sm:$0xff]  ;;  %4034 = vmatmul.msk.f32.gmra.mxu3 %vm244_vm1, %v1308_v2  ;;  %4072 = vmatmul.msk.f32.gmra.mxu0 %vm244_vm1, %v1690_v6  ;;  %v806_v59 = vld [vmem:[%s4503_s18 + $0x68] sm:$0xff] }
 0x124   : > { %1255 = vst.msk [vmem:[%s4503_s18 + $0x40] sm:$0xff] %vm482_vm2, %v1219_v4  ;;  %v1600_v8 = vadd.f32 %v1564_v7, %v1470_v46 }
 0x125   : > { %v1945_v9 = vld [vmem:[%s4503_s18 + $0x30] sm:$0xff]  ;;  %v1094_v10 = vpop.f32.mrf.mxu2 }
 0x126   : > { %1636 = vst.msk [vmem:[%s4503_s18 + $0x38] sm:$0xff] %vm482_vm2, %v1600_v8  ;;  %v1981_v11 = vadd.f32 %v1945_v9, %v4760_v24  ;;  %v1476_v12 = vpop.f32.mrf.mxu3 }
 0x127   : > { %v715_v13 = vpop.f32.mrf.mxu1 }
 0x128   : > { %2017 = vst.msk [vmem:[%s4503_s18 + $0x30] sm:$0xff] %vm482_vm2, %v1981_v11  ;;  %v839_v16 = vadd.f32 %v803_v14, %v715_v13  ;;  %v4848_v20 = vpop.f32.mrf.mxu0  ;;  %v549_v11 = vld [vmem:[%s4359_s29 + $0xf1] sm:$0xff]  ;;  %v1313_v13 = vld [vmem:[%s4359_s29 + $0x102] sm:$0xff] }
 0x129   : > { %v1184_v18 = vld [vmem:[%s4503_s18 + $0x48] sm:$0xff] }
 0x12a   : > { %875 = vst.msk [vmem:[%s4503_s18 + $0x50] sm:$0xff] %vm482_vm2, %v839_v16  ;;  %v1220_v19 = vadd.f32 %v1184_v18, %v1094_v10  ;;  %3959 = vmatmul.msk.f32.gmra.mxu1 %vm244_vm1, %v545_v15  ;;  %3997 = vmatmul.msk.f32.gmra.mxu2 %vm244_vm1, %v1307_v51  ;;  %v1693_v51 = vld [vmem:[%s4359_s29 + $0xf3] sm:$0xff] }
 0x12b   : > { %v1565_v22 = vld [vmem:[%s4503_s18 + $0x40] sm:$0xff]  ;;  %4035 = vmatmul.msk.f32.gmra.mxu3 %vm244_vm1, %v1309_v17  ;;  %4073 = vmatmul.msk.f32.gmra.mxu0 %vm244_vm1, %v1691_v21  ;;  %v807_v10 = vld [vmem:[%s4503_s18 + $0x70] sm:$0xff] }
 0x12c   : > { %1256 = vst.msk [vmem:[%s4503_s18 + $0x48] sm:$0xff] %vm482_vm2, %v1220_v19  ;;  %v1601_v23 = vadd.f32 %v1565_v22, %v1473_v61 }
 0x12d   : > { %v1946_v24 = vld [vmem:[%s4503_s18 + $0x38] sm:$0xff]  ;;  %v1097_v25 = vpop.f32.mrf.mxu2 }
 0x12e   : > { %1637 = vst.msk [vmem:[%s4503_s18 + $0x40] sm:$0xff] %vm482_vm2, %v1601_v23  ;;  %v1982_v26 = vadd.f32 %v1946_v24, %v4782_v39  ;;  %v1479_v27 = vpop.f32.mrf.mxu3 }
 0x12f   : > { %v718_v28 = vpop.f32.mrf.mxu1 }
 0x130   : > { %2018 = vst.msk [vmem:[%s4503_s18 + $0x38] sm:$0xff] %vm482_vm2, %v1982_v26  ;;  %v840_v31 = vadd.f32 %v804_v29, %v718_v28  ;;  %v4870_v35 = vpop.f32.mrf.mxu0  ;;  %v550_v26 = vld [vmem:[%s4359_s29 + $0xf9] sm:$0xff]  ;;  %v1314_v28 = vld [vmem:[%s4359_s29 + $0x10a] sm:$0xff] }
 0x131   : > { %v1185_v33 = vld [vmem:[%s4503_s18 + $0x50] sm:$0xff] }
 0x132   : > { %876 = vst.msk [vmem:[%s4503_s18 + $0x58] sm:$0xff] %vm482_vm2, %v840_v31  ;;  %v1221_v34 = vadd.f32 %v1185_v33, %v1097_v25  ;;  %3960 = vmatmul.msk.f32.gmra.mxu1 %vm244_vm1, %v546_v30  ;;  %3998 = vmatmul.msk.f32.gmra.mxu2 %vm244_vm1, %v1308_v2  ;;  %v1694_v2 = vld [vmem:[%s4359_s29 + $0xfb] sm:$0xff] }
 0x133   : > { %v1566_v37 = vld [vmem:[%s4503_s18 + $0x48] sm:$0xff]  ;;  %4036 = vmatmul.msk.f32.gmra.mxu3 %vm244_vm1, %v1310_v32  ;;  %4074 = vmatmul.msk.f32.gmra.mxu0 %vm244_vm1, %v1692_v36  ;;  %v808_v25 = vld [vmem:[%s4503_s18 + $0x78] sm:$0xff] }
 0x134   : > { %1257 = vst.msk [vmem:[%s4503_s18 + $0x50] sm:$0xff] %vm482_vm2, %v1221_v34  ;;  %v1602_v38 = vadd.f32 %v1566_v37, %v1476_v12 }
 0x135   : > { %v1947_v39 = vld [vmem:[%s4503_s18 + $0x40] sm:$0xff]  ;;  %v1100_v40 = vpop.f32.mrf.mxu2 }
 0x136   : > { %1638 = vst.msk [vmem:[%s4503_s18 + $0x48] sm:$0xff] %vm482_vm2, %v1602_v38  ;;  %v1983_v41 = vadd.f32 %v1947_v39, %v4804_v54  ;;  %v1482_v42 = vpop.f32.mrf.mxu3 }
 0x137   : > { %v721_v43 = vpop.f32.mrf.mxu1 }
 0x138   : > { %2019 = vst.msk [vmem:[%s4503_s18 + $0x40] sm:$0xff] %vm482_vm2, %v1983_v41  ;;  %v841_v46 = vadd.f32 %v805_v44, %v721_v43  ;;  %v4892_v50 = vpop.f32.mrf.mxu0  ;;  %v551_v41 = vld [vmem:[%s4359_s29 + $0x101] sm:$0xff]  ;;  %v1315_v43 = vld [vmem:[%s4359_s29 + $0x112] sm:$0xff] }
 0x139   : > { %v1186_v48 = vld [vmem:[%s4503_s18 + $0x58] sm:$0xff] }
 0x13a   : > { %877 = vst.msk [vmem:[%s4503_s18 + $0x60] sm:$0xff] %vm482_vm2, %v841_v46  ;;  %v1222_v49 = vadd.f32 %v1186_v48, %v1100_v40  ;;  %3961 = vmatmul.msk.f32.gmra.mxu1 %vm244_vm1, %v547_v45  ;;  %3999 = vmatmul.msk.f32.gmra.mxu2 %vm244_vm1, %v1309_v17  ;;  %v1695_v17 = vld [vmem:[%s4359_s29 + $0x103] sm:$0xff] }
 0x13b   : > { %v1567_v52 = vld [vmem:[%s4503_s18 + $0x50] sm:$0xff]  ;;  %4037 = vmatmul.msk.f32.gmra.mxu3 %vm244_vm1, %v1311_v47  ;;  %4075 = vmatmul.msk.f32.gmra.mxu0 %vm244_vm1, %v1693_v51  ;;  %v809_v40 = vld [vmem:[%s4503_s18 + $0x80] sm:$0xff] }
 0x13c   : > { %1258 = vst.msk [vmem:[%s4503_s18 + $0x58] sm:$0xff] %vm482_vm2, %v1222_v49  ;;  %v1603_v53 = vadd.f32 %v1567_v52, %v1479_v27 }
 0x13d   : > { %v1948_v54 = vld [vmem:[%s4503_s18 + $0x48] sm:$0xff]  ;;  %v1103_v55 = vpop.f32.mrf.mxu2 }
 0x13e   : > { %1639 = vst.msk [vmem:[%s4503_s18 + $0x50] sm:$0xff] %vm482_vm2, %v1603_v53  ;;  %v1984_v56 = vadd.f32 %v1948_v54, %v4826_v5  ;;  %v1485_v57 = vpop.f32.mrf.mxu3 }
 0x13f   : > { %v724_v58 = vpop.f32.mrf.mxu1 }
 0x140   : > { %2020 = vst.msk [vmem:[%s4503_s18 + $0x48] sm:$0xff] %vm482_vm2, %v1984_v56  ;;  %v842_v61 = vadd.f32 %v806_v59, %v724_v58  ;;  %v4914_v1 = vpop.f32.mrf.mxu0  ;;  %v552_v56 = vld [vmem:[%s4359_s29 + $0x109] sm:$0xff]  ;;  %v1316_v58 = vld [vmem:[%s4359_s29 + $0x11a] sm:$0xff] }
 0x141   : > { %v1187_v63 = vld [vmem:[%s4503_s18 + $0x60] sm:$0xff] }
 0x142   : > { %878 = vst.msk [vmem:[%s4503_s18 + $0x68] sm:$0xff] %vm482_vm2, %v842_v61  ;;  %v1223_v0 = vadd.f32 %v1187_v63, %v1103_v55  ;;  %3962 = vmatmul.msk.f32.gmra.mxu1 %vm244_vm1, %v548_v60  ;;  %4000 = vmatmul.msk.f32.gmra.mxu2 %vm244_vm1, %v1310_v32  ;;  %v1696_v32 = vld [vmem:[%s4359_s29 + $0x10b] sm:$0xff] }
 0x143   : > { %v1568_v3 = vld [vmem:[%s4503_s18 + $0x58] sm:$0xff]  ;;  %4038 = vmatmul.msk.f32.gmra.mxu3 %vm244_vm1, %v1312_v62  ;;  %4076 = vmatmul.msk.f32.gmra.mxu0 %vm244_vm1, %v1694_v2  ;;  %v810_v55 = vld [vmem:[%s4503_s18 + $0x88] sm:$0xff] }
 0x144   : > { %1259 = vst.msk [vmem:[%s4503_s18 + $0x60] sm:$0xff] %vm482_vm2, %v1223_v0  ;;  %v1604_v4 = vadd.f32 %v1568_v3, %v1482_v42 }
 0x145   : > { %v1949_v5 = vld [vmem:[%s4503_s18 + $0x50] sm:$0xff]  ;;  %v1106_v6 = vpop.f32.mrf.mxu2 }
 0x146   : > { %1640 = vst.msk [vmem:[%s4503_s18 + $0x58] sm:$0xff] %vm482_vm2, %v1604_v4  ;;  %v1985_v7 = vadd.f32 %v1949_v5, %v4848_v20  ;;  %v1488_v8 = vpop.f32.mrf.mxu3 }
 0x147   : > { %v727_v9 = vpop.f32.mrf.mxu1 }
 0x148   : > { %2021 = vst.msk [vmem:[%s4503_s18 + $0x50] sm:$0xff] %vm482_vm2, %v1985_v7  ;;  %v843_v12 = vadd.f32 %v807_v10, %v727_v9  ;;  %v4936_v16 = vpop.f32.mrf.mxu0  ;;  %v553_v7 = vld [vmem:[%s4359_s29 + $0x111] sm:$0xff]  ;;  %v1317_v9 = vld [vmem:[%s4359_s29 + $0x122] sm:$0xff] }
 0x149   : > { %v1188_v14 = vld [vmem:[%s4503_s18 + $0x68] sm:$0xff] }
 0x14a   : > { %879 = vst.msk [vmem:[%s4503_s18 + $0x70] sm:$0xff] %vm482_vm2, %v843_v12  ;;  %v1224_v15 = vadd.f32 %v1188_v14, %v1106_v6  ;;  %3963 = vmatmul.msk.f32.gmra.mxu1 %vm244_vm1, %v549_v11  ;;  %4001 = vmatmul.msk.f32.gmra.mxu2 %vm244_vm1, %v1311_v47  ;;  %v1697_v47 = vld [vmem:[%s4359_s29 + $0x113] sm:$0xff] }
 0x14b   : > { %v1569_v18 = vld [vmem:[%s4503_s18 + $0x60] sm:$0xff]  ;;  %4039 = vmatmul.msk.f32.gmra.mxu3 %vm244_vm1, %v1313_v13  ;;  %4077 = vmatmul.msk.f32.gmra.mxu0 %vm244_vm1, %v1695_v17  ;;  %v811_v6 = vld [vmem:[%s4503_s18 + $0x90] sm:$0xff] }
 0x14c   : > { %1260 = vst.msk [vmem:[%s4503_s18 + $0x68] sm:$0xff] %vm482_vm2, %v1224_v15  ;;  %v1605_v19 = vadd.f32 %v1569_v18, %v1485_v57 }
 0x14d   : > { %v1950_v20 = vld [vmem:[%s4503_s18 + $0x58] sm:$0xff]  ;;  %v1109_v21 = vpop.f32.mrf.mxu2 }
 0x14e   : > { %1641 = vst.msk [vmem:[%s4503_s18 + $0x60] sm:$0xff] %vm482_vm2, %v1605_v19  ;;  %v1986_v22 = vadd.f32 %v1950_v20, %v4870_v35  ;;  %v1491_v23 = vpop.f32.mrf.mxu3 }
 0x14f   : > { %v730_v24 = vpop.f32.mrf.mxu1 }
 0x150   : > { %2022 = vst.msk [vmem:[%s4503_s18 + $0x58] sm:$0xff] %vm482_vm2, %v1986_v22  ;;  %v844_v27 = vadd.f32 %v808_v25, %v730_v24  ;;  %v4958_v31 = vpop.f32.mrf.mxu0  ;;  %v554_v22 = vld [vmem:[%s4359_s29 + $0x119] sm:$0xff]  ;;  %v1318_v24 = vld [vmem:[%s4359_s29 + $0x12a] sm:$0xff] }
 0x151   : > { %v1189_v29 = vld [vmem:[%s4503_s18 + $0x70] sm:$0xff] }
 0x152   : > { %880 = vst.msk [vmem:[%s4503_s18 + $0x78] sm:$0xff] %vm482_vm2, %v844_v27  ;;  %v1225_v30 = vadd.f32 %v1189_v29, %v1109_v21  ;;  %3964 = vmatmul.msk.f32.gmra.mxu1 %vm244_vm1, %v550_v26  ;;  %4002 = vmatmul.msk.f32.gmra.mxu2 %vm244_vm1, %v1312_v62  ;;  %v1698_v62 = vld [vmem:[%s4359_s29 + $0x11b] sm:$0xff] }
 0x153   : > { %v1570_v33 = vld [vmem:[%s4503_s18 + $0x68] sm:$0xff]  ;;  %4040 = vmatmul.msk.f32.gmra.mxu3 %vm244_vm1, %v1314_v28  ;;  %4078 = vmatmul.msk.f32.gmra.mxu0 %vm244_vm1, %v1696_v32  ;;  %v812_v21 = vld [vmem:[%s4503_s18 + $0x98] sm:$0xff] }
 0x154   : > { %1261 = vst.msk [vmem:[%s4503_s18 + $0x70] sm:$0xff] %vm482_vm2, %v1225_v30  ;;  %v1606_v34 = vadd.f32 %v1570_v33, %v1488_v8 }
 0x155   : > { %v1951_v35 = vld [vmem:[%s4503_s18 + $0x60] sm:$0xff]  ;;  %v1112_v36 = vpop.f32.mrf.mxu2 }
 0x156   : > { %1642 = vst.msk [vmem:[%s4503_s18 + $0x68] sm:$0xff] %vm482_vm2, %v1606_v34  ;;  %v1987_v37 = vadd.f32 %v1951_v35, %v4892_v50  ;;  %v1494_v38 = vpop.f32.mrf.mxu3 }
 0x157   : > { %v733_v39 = vpop.f32.mrf.mxu1 }
 0x158   : > { %2023 = vst.msk [vmem:[%s4503_s18 + $0x60] sm:$0xff] %vm482_vm2, %v1987_v37  ;;  %v845_v42 = vadd.f32 %v809_v40, %v733_v39  ;;  %v4980_v46 = vpop.f32.mrf.mxu0  ;;  %v2047_v37 = vld [vmem:[%s4359_s29 + $0x14] sm:$0xff]  ;;  %v2811_v40 = vld [vmem:[%s4359_s29 + $0x25] sm:$0xff] }
 0x159   : > { %v1190_v44 = vld [vmem:[%s4503_s18 + $0x78] sm:$0xff] }
 0x15a   : > { %881 = vst.msk [vmem:[%s4503_s18 + $0x80] sm:$0xff] %vm482_vm2, %v845_v42  ;;  %v1226_v45 = vadd.f32 %v1190_v44, %v1112_v36  ;;  %3965 = vmatmul.msk.f32.gmra.mxu1 %vm244_vm1, %v551_v41  ;;  %4003 = vmatmul.msk.f32.gmra.mxu2 %vm244_vm1, %v1313_v13  ;;  %v1699_v13 = vld [vmem:[%s4359_s29 + $0x123] sm:$0xff] }
 0x15b   : > { %v1571_v48 = vld [vmem:[%s4503_s18 + $0x70] sm:$0xff]  ;;  %4041 = vmatmul.msk.f32.gmra.mxu3 %vm244_vm1, %v1315_v43  ;;  %4079 = vmatmul.msk.f32.gmra.mxu0 %vm244_vm1, %v1697_v47  ;;  %v813_v36 = vld [vmem:[%s4503_s18 + $0xa0] sm:$0xff] }
 0x15c   : > { %1262 = vst.msk [vmem:[%s4503_s18 + $0x78] sm:$0xff] %vm482_vm2, %v1226_v45  ;;  %v1607_v49 = vadd.f32 %v1571_v48, %v1491_v23  ;;  %v3193_v44 = vld [vmem:[%s4359_s29 + $0x26] sm:$0xff] }
 0x15d   : > { %v1952_v50 = vld [vmem:[%s4503_s18 + $0x68] sm:$0xff]  ;;  %v1115_v51 = vpop.f32.mrf.mxu2 }
 0x15e   : > { %1643 = vst.msk [vmem:[%s4503_s18 + $0x70] sm:$0xff] %vm482_vm2, %v1607_v49  ;;  %v1988_v52 = vadd.f32 %v1952_v50, %v4914_v1  ;;  %v1497_v53 = vpop.f32.mrf.mxu3 }
 0x15f   : > { %v736_v54 = vpop.f32.mrf.mxu1 }
 0x160   : > { %2024 = vst.msk [vmem:[%s4503_s18 + $0x68] sm:$0xff] %vm482_vm2, %v1988_v52  ;;  %v846_v57 = vadd.f32 %v810_v55, %v736_v54  ;;  %v5002_v61 = vpop.f32.mrf.mxu0  ;;  %v814_v52 = vld [vmem:[%s4503_s18 + $0xa8] sm:$0xff] }
 0x161   : > { %v1191_v59 = vld [vmem:[%s4503_s18 + $0x80] sm:$0xff]  ;;  %v2430_v54 = vld [vmem:[%s4359_s29 + $0x2c] sm:$0xff] }
 0x162   : > { %882 = vst.msk [vmem:[%s4503_s18 + $0x88] sm:$0xff] %vm482_vm2, %v846_v57  ;;  %v1227_v60 = vadd.f32 %v1191_v59, %v1115_v51  ;;  %3966 = vmatmul.msk.f32.gmra.mxu1 %vm244_vm1, %v552_v56  ;;  %4004 = vmatmul.msk.f32.gmra.mxu2 %vm244_vm1, %v1314_v28  ;;  %v1700_v28 = vld [vmem:[%s4359_s29 + $0x12b] sm:$0xff] }
 0x163   : > { %v1572_v63 = vld [vmem:[%s4503_s18 + $0x78] sm:$0xff]  ;;  %4042 = vmatmul.msk.f32.gmra.mxu3 %vm244_vm1, %v1316_v58  ;;  %4080 = vmatmul.msk.f32.gmra.mxu0 %vm244_vm1, %v1698_v62  ;;  %v2812_v56 = vld [vmem:[%s4359_s29 + $0x2d] sm:$0xff] }
 0x164   : > { %1263 = vst.msk [vmem:[%s4503_s18 + $0x80] sm:$0xff] %vm482_vm2, %v1227_v60  ;;  %v1608_v0 = vadd.f32 %v1572_v63, %v1494_v38  ;;  %v2429_v38 = vld [vmem:[%s4359_s29 + $0x24] sm:$0xff]  ;;  %v3194_v60 = vld [vmem:[%s4359_s29 + $0x2e] sm:$0xff] }
 0x165   : > { %v1953_v1 = vld [vmem:[%s4503_s18 + $0x70] sm:$0xff]  ;;  %v1118_v2 = vpop.f32.mrf.mxu2 }
 0x166   : > { %1644 = vst.msk [vmem:[%s4503_s18 + $0x78] sm:$0xff] %vm482_vm2, %v1608_v0  ;;  %v1989_v3 = vadd.f32 %v1953_v1, %v4936_v16  ;;  %v1500_v4 = vpop.f32.mrf.mxu3 }
 0x167   : > { %v739_v5 = vpop.f32.mrf.mxu1 }
 0x168   : > { %2025 = vst.msk [vmem:[%s4503_s18 + $0x70] sm:$0xff] %vm482_vm2, %v1989_v3  ;;  %v847_v8 = vadd.f32 %v811_v6, %v739_v5  ;;  %v5024_v12 = vpop.f32.mrf.mxu0  ;;  %v2431_v5 = vld [vmem:[%s4359_s29 + $0x34] sm:$0xff] }
 0x169   : > { %v1192_v10 = vld [vmem:[%s4503_s18 + $0x88] sm:$0xff] }
 0x16a   : > { %883 = vst.msk [vmem:[%s4503_s18 + $0x90] sm:$0xff] %vm482_vm2, %v847_v8  ;;  %v1228_v11 = vadd.f32 %v1192_v10, %v1118_v2  ;;  %3967 = vmatmul.msk.f32.gmra.mxu1 %vm244_vm1, %v553_v7  ;;  %4005 = vmatmul.msk.f32.gmra.mxu2 %vm244_vm1, %v1315_v43  ;;  %v2813_v7 = vld [vmem:[%s4359_s29 + $0x35] sm:$0xff] }
 0x16b   : > { %v1573_v14 = vld [vmem:[%s4503_s18 + $0x80] sm:$0xff]  ;;  %4043 = vmatmul.msk.f32.gmra.mxu3 %vm244_vm1, %v1317_v9  ;;  %4081 = vmatmul.msk.f32.gmra.mxu0 %vm244_vm1, %v1699_v13 }
 0x16c   : > { %1264 = vst.msk [vmem:[%s4503_s18 + $0x88] sm:$0xff] %vm482_vm2, %v1228_v11  ;;  %v1609_v15 = vadd.f32 %v1573_v14, %v1497_v53  ;;  %v2048_v53 = vld [vmem:[%s4359_s29 + $0x1c] sm:$0xff] }
 0x16d   : > { %v1954_v16 = vld [vmem:[%s4503_s18 + $0x78] sm:$0xff]  ;;  %v1121_v17 = vpop.f32.mrf.mxu2 }
 0x16e   : > { %1645 = vst.msk [vmem:[%s4503_s18 + $0x80] sm:$0xff] %vm482_vm2, %v1609_v15  ;;  %v1990_v18 = vadd.f32 %v1954_v16, %v4958_v31  ;;  %v1503_v19 = vpop.f32.mrf.mxu3  ;;  %v3195_v11 = vld [vmem:[%s4359_s29 + $0x36] sm:$0xff] }
 0x16f   : > { %v742_v20 = vpop.f32.mrf.mxu1 }
 0x170   : > { %2026 = vst.msk [vmem:[%s4503_s18 + $0x78] sm:$0xff] %vm482_vm2, %v1990_v18  ;;  %v848_v23 = vadd.f32 %v812_v21, %v742_v20  ;;  %v5046_v27 = vpop.f32.mrf.mxu0  ;;  %v2432_v20 = vld [vmem:[%s4359_s29 + $0x3c] sm:$0xff] }
 0x171   : > { %v1193_v25 = vld [vmem:[%s4503_s18 + $0x90] sm:$0xff] }
 0x172   : > { %884 = vst.msk [vmem:[%s4503_s18 + $0x98] sm:$0xff] %vm482_vm2, %v848_v23  ;;  %v1229_v26 = vadd.f32 %v1193_v25, %v1121_v17  ;;  %3968 = vmatmul.msk.f32.gmra.mxu1 %vm244_vm1, %v554_v22  ;;  %4006 = vmatmul.msk.f32.gmra.mxu2 %vm244_vm1, %v1316_v58  ;;  %v2814_v22 = vld [vmem:[%s4359_s29 + $0x3d] sm:$0xff] }
 0x173   : > { %v1574_v29 = vld [vmem:[%s4503_s18 + $0x88] sm:$0xff]  ;;  %4044 = vmatmul.msk.f32.gmra.mxu3 %vm244_vm1, %v1318_v24  ;;  %4082 = vmatmul.msk.f32.gmra.mxu0 %vm244_vm1, %v1700_v28 }
 0x174   : > { %1265 = vst.msk [vmem:[%s4503_s18 + $0x90] sm:$0xff] %vm482_vm2, %v1229_v26  ;;  %v1610_v30 = vadd.f32 %v1574_v29, %v1500_v4  ;;  %v815_v4 = vld [vmem:[%s4503_s18 + $0xb0] sm:$0xff]  ;;  %v3196_v26 = vld [vmem:[%s4359_s29 + $0x3e] sm:$0xff] }
 0x175   : > { %v1955_v31 = vld [vmem:[%s4503_s18 + $0x80] sm:$0xff]  ;;  %v1124_v32 = vpop.f32.mrf.mxu2 }
 0x176   : > { %1646 = vst.msk [vmem:[%s4503_s18 + $0x88] sm:$0xff] %vm482_vm2, %v1610_v30  ;;  %v1991_v33 = vadd.f32 %v1955_v31, %v4980_v46  ;;  %v1506_v34 = vpop.f32.mrf.mxu3 }
 0x177   : > { %v745_v35 = vpop.f32.mrf.mxu1 }
 0x178   : > { %2027 = vst.msk [vmem:[%s4503_s18 + $0x80] sm:$0xff] %vm482_vm2, %v1991_v33  ;;  %v849_v39 = vadd.f32 %v813_v36, %v745_v35  ;;  %v5069_v43 = vpop.f32.mrf.mxu0  ;;  %v2433_v35 = vld [vmem:[%s4359_s29 + $0x44] sm:$0xff] }
 0x179   : > { %v1194_v41 = vld [vmem:[%s4503_s18 + $0x98] sm:$0xff] }
 0x17a   : > { %885 = vst.msk [vmem:[%s4503_s18 + $0xa0] sm:$0xff] %vm482_vm2, %v849_v39  ;;  %v1230_v42 = vadd.f32 %v1194_v41, %v1124_v32  ;;  %4085 = vmatmul.msk.f32.vlgmr.msra.gmra.mxu1 %vm244_vm1, %v2047_v37  ;;  %4123 = vmatmul.msk.f32.vlgmr.msra.gmra.mxu2 %vm244_vm1, %v2429_v38  ;;  %v2815_v37 = vld [vmem:[%s4359_s29 + $0x45] sm:$0xff] }
 0x17b   : > { %v1575_v45 = vld [vmem:[%s4503_s18 + $0x90] sm:$0xff]  ;;  %4161 = vmatmul.msk.f32.vlgmr.msra.gmra.mxu3 %vm244_vm1, %v2811_v40  ;;  %4199 = vmatmul.msk.f32.vlgmr.msra.gmra.mxu0 %vm244_vm1, %v3193_v44  ;;  %v3197_v41 = vld [vmem:[%s4359_s29 + $0x46] sm:$0xff] }
 0x17c   : > { %1266 = vst.msk [vmem:[%s4503_s18 + $0x98] sm:$0xff] %vm482_vm2, %v1230_v42  ;;  %v1611_v46 = vadd.f32 %v1575_v45, %v1503_v19  ;;  %v816_v19 = vld [vmem:[%s4503_s18 + $0xb8] sm:$0xff] }
 0x17d   : > { %v1956_v47 = vld [vmem:[%s4503_s18 + $0x88] sm:$0xff]  ;;  %v1127_v48 = vpop.f32.mrf.mxu2 }
 0x17e   : > { %1647 = vst.msk [vmem:[%s4503_s18 + $0x90] sm:$0xff] %vm482_vm2, %v1611_v46  ;;  %v1992_v49 = vadd.f32 %v1956_v47, %v5002_v61  ;;  %v1509_v50 = vpop.f32.mrf.mxu3 }
 0x17f   : > { %v748_v51 = vpop.f32.mrf.mxu1 }
 0x180   : > { %2028 = vst.msk [vmem:[%s4503_s18 + $0x88] sm:$0xff] %vm482_vm2, %v1992_v49  ;;  %v850_v55 = vadd.f32 %v814_v52, %v748_v51  ;;  %v5092_v59 = vpop.f32.mrf.mxu0  ;;  %v818_v49 = vld [vmem:[%s4503_s18 + $0xc8] sm:$0xff] }
 0x181   : > { %v1195_v57 = vld [vmem:[%s4503_s18 + $0xa0] sm:$0xff]  ;;  %v2816_v52 = vld [vmem:[%s4359_s29 + $0x4d] sm:$0xff] }
 0x182   : > { %886 = vst.msk [vmem:[%s4503_s18 + $0xa8] sm:$0xff] %vm482_vm2, %v850_v55  ;;  %v1231_v58 = vadd.f32 %v1195_v57, %v1127_v48  ;;  %4086 = vmatmul.msk.f32.gmra.mxu1 %vm244_vm1, %v2048_v53  ;;  %4124 = vmatmul.msk.f32.gmra.mxu2 %vm244_vm1, %v2430_v54 }
 0x183   : > { %v1576_v61 = vld [vmem:[%s4503_s18 + $0x98] sm:$0xff]  ;;  %4162 = vmatmul.msk.f32.gmra.mxu3 %vm244_vm1, %v2812_v56  ;;  %4200 = vmatmul.msk.f32.gmra.mxu0 %vm244_vm1, %v3194_v60  ;;  %v3198_v56 = vld [vmem:[%s4359_s29 + $0x4e] sm:$0xff] }
 0x184   : > { %1267 = vst.msk [vmem:[%s4503_s18 + $0xa0] sm:$0xff] %vm482_vm2, %v1231_v58  ;;  %v1612_v62 = vadd.f32 %v1576_v61, %v1506_v34  ;;  %v817_v34 = vld [vmem:[%s4503_s18 + $0xc0] sm:$0xff] }
 0x185   : > { %v1957_v63 = vld [vmem:[%s4503_s18 + $0x90] sm:$0xff]  ;;  %v1130_v0 = vpop.f32.mrf.mxu2 }
 0x186   : > { %1648 = vst.msk [vmem:[%s4503_s18 + $0x98] sm:$0xff] %vm482_vm2, %v1612_v62  ;;  %v1993_v1 = vadd.f32 %v1957_v63, %v5024_v12  ;;  %v1512_v2 = vpop.f32.mrf.mxu3 }
 0x187   : > { %v751_v3 = vpop.f32.mrf.mxu1 }
 0x188   : > { %2029 = vst.msk [vmem:[%s4503_s18 + $0x90] sm:$0xff] %vm482_vm2, %v1993_v1  ;;  %v851_v6 = vadd.f32 %v815_v4, %v751_v3  ;;  %v5114_v10 = vpop.f32.mrf.mxu0  ;;  %v2435_v1 = vld [vmem:[%s4359_s29 + $0x54] sm:$0xff] }
 0x189   : > { %v1196_v8 = vld [vmem:[%s4503_s18 + $0xa8] sm:$0xff]  ;;  %v2817_v3 = vld [vmem:[%s4359_s29 + $0x55] sm:$0xff] }
 0x18a   : > { %887 = vst.msk [vmem:[%s4503_s18 + $0xb0] sm:$0xff] %vm482_vm2, %v851_v6  ;;  %v1232_v9 = vadd.f32 %v1196_v8, %v1130_v0  ;;  %4087 = vmatmul.msk.f32.gmra.mxu1 %vm244_vm1, %v2429_v38  ;;  %4125 = vmatmul.msk.f32.gmra.mxu2 %vm244_vm1, %v2431_v5  ;;  %v819_v0 = vld [vmem:[%s4503_s18 + $0xd0] sm:$0xff] }
 0x18b   : > { %v1577_v12 = vld [vmem:[%s4503_s18 + $0xa0] sm:$0xff]  ;;  %4163 = vmatmul.msk.f32.gmra.mxu3 %vm244_vm1, %v2813_v7  ;;  %4201 = vmatmul.msk.f32.gmra.mxu0 %vm244_vm1, %v3195_v11  ;;  %v3199_v7 = vld [vmem:[%s4359_s29 + $0x56] sm:$0xff] }
 0x18c   : > { %1268 = vst.msk [vmem:[%s4503_s18 + $0xa8] sm:$0xff] %vm482_vm2, %v1232_v9  ;;  %v1613_v13 = vadd.f32 %v1577_v12, %v1509_v50  ;;  %v2434_v50 = vld [vmem:[%s4359_s29 + $0x4c] sm:$0xff] }
 0x18d   : > { %v1958_v14 = vld [vmem:[%s4503_s18 + $0x98] sm:$0xff]  ;;  %v1133_v15 = vpop.f32.mrf.mxu2 }
 0x18e   : > { %1649 = vst.msk [vmem:[%s4503_s18 + $0xa0] sm:$0xff] %vm482_vm2, %v1613_v13  ;;  %v1994_v16 = vadd.f32 %v1958_v14, %v5046_v27  ;;  %v1515_v17 = vpop.f32.mrf.mxu3 }
 0x18f   : > { %v754_v18 = vpop.f32.mrf.mxu1 }
 0x190   : > { %2030 = vst.msk [vmem:[%s4503_s18 + $0x98] sm:$0xff] %vm482_vm2, %v1994_v16  ;;  %v852_v21 = vadd.f32 %v816_v19, %v754_v18  ;;  %v5136_v25 = vpop.f32.mrf.mxu0  ;;  %v2436_v16 = vld [vmem:[%s4359_s29 + $0x5c] sm:$0xff] }
 0x191   : > { %v1197_v23 = vld [vmem:[%s4503_s18 + $0xb0] sm:$0xff]  ;;  %v2818_v18 = vld [vmem:[%s4359_s29 + $0x5d] sm:$0xff] }
 0x192   : > { %888 = vst.msk [vmem:[%s4503_s18 + $0xb8] sm:$0xff] %vm482_vm2, %v852_v21  ;;  %v1233_v24 = vadd.f32 %v1197_v23, %v1133_v15  ;;  %4088 = vmatmul.msk.f32.gmra.mxu1 %vm244_vm1, %v2430_v54  ;;  %4126 = vmatmul.msk.f32.gmra.mxu2 %vm244_vm1, %v2432_v20  ;;  %v820_v15 = vld [vmem:[%s4503_s18 + $0xd8] sm:$0xff] }
 0x193   : > { %v1578_v27 = vld [vmem:[%s4503_s18 + $0xa8] sm:$0xff]  ;;  %4164 = vmatmul.msk.f32.gmra.mxu3 %vm244_vm1, %v2814_v22  ;;  %4202 = vmatmul.msk.f32.gmra.mxu0 %vm244_vm1, %v3196_v26  ;;  %v3200_v22 = vld [vmem:[%s4359_s29 + $0x5e] sm:$0xff] }
 0x194   : > { %1269 = vst.msk [vmem:[%s4503_s18 + $0xb0] sm:$0xff] %vm482_vm2, %v1233_v24  ;;  %v1614_v28 = vadd.f32 %v1578_v27, %v1512_v2 }
 0x195   : > { %v1959_v29 = vld [vmem:[%s4503_s18 + $0xa0] sm:$0xff]  ;;  %v1136_v30 = vpop.f32.mrf.mxu2 }
 0x196   : > { %1650 = vst.msk [vmem:[%s4503_s18 + $0xa8] sm:$0xff] %vm482_vm2, %v1614_v28  ;;  %v1995_v31 = vadd.f32 %v1959_v29, %v5069_v43  ;;  %v1518_v32 = vpop.f32.mrf.mxu3 }
 0x197   : > { %v757_v33 = vpop.f32.mrf.mxu1 }
 0x198   : > { %2031 = vst.msk [vmem:[%s4503_s18 + $0xa0] sm:$0xff] %vm482_vm2, %v1995_v31  ;;  %v853_v36 = vadd.f32 %v817_v34, %v757_v33  ;;  %v5158_v40 = vpop.f32.mrf.mxu0  ;;  %v2437_v31 = vld [vmem:[%s4359_s29 + $0x64] sm:$0xff] }
 0x199   : > { %v1198_v38 = vld [vmem:[%s4503_s18 + $0xb8] sm:$0xff]  ;;  %v2819_v33 = vld [vmem:[%s4359_s29 + $0x65] sm:$0xff] }
 0x19a   : > { %889 = vst.msk [vmem:[%s4503_s18 + $0xc0] sm:$0xff] %vm482_vm2, %v853_v36  ;;  %v1234_v39 = vadd.f32 %v1198_v38, %v1136_v30  ;;  %4089 = vmatmul.msk.f32.gmra.mxu1 %vm244_vm1, %v2431_v5  ;;  %4127 = vmatmul.msk.f32.gmra.mxu2 %vm244_vm1, %v2433_v35  ;;  %v821_v30 = vld [vmem:[%s4503_s18 + $0xe0] sm:$0xff] }
 0x19b   : > { %v1579_v42 = vld [vmem:[%s4503_s18 + $0xb0] sm:$0xff]  ;;  %4165 = vmatmul.msk.f32.gmra.mxu3 %vm244_vm1, %v2815_v37  ;;  %4203 = vmatmul.msk.f32.gmra.mxu0 %vm244_vm1, %v3197_v41  ;;  %v3201_v37 = vld [vmem:[%s4359_s29 + $0x66] sm:$0xff] }
 0x19c   : > { %1270 = vst.msk [vmem:[%s4503_s18 + $0xb8] sm:$0xff] %vm482_vm2, %v1234_v39  ;;  %v1615_v43 = vadd.f32 %v1579_v42, %v1515_v17 }
 0x19d   : > { %v1960_v44 = vld [vmem:[%s4503_s18 + $0xa8] sm:$0xff]  ;;  %v1139_v45 = vpop.f32.mrf.mxu2 }
 0x19e   : > { %1651 = vst.msk [vmem:[%s4503_s18 + $0xb0] sm:$0xff] %vm482_vm2, %v1615_v43  ;;  %v1996_v46 = vadd.f32 %v1960_v44, %v5092_v59  ;;  %v1521_v47 = vpop.f32.mrf.mxu3 }
 0x19f   : > { %v760_v48 = vpop.f32.mrf.mxu1 }
 0x1a0   : > { %2032 = vst.msk [vmem:[%s4503_s18 + $0xa8] sm:$0xff] %vm482_vm2, %v1996_v46  ;;  %v854_v51 = vadd.f32 %v818_v49, %v760_v48  ;;  %v5180_v55 = vpop.f32.mrf.mxu0  ;;  %v2438_v46 = vld [vmem:[%s4359_s29 + $0x6c] sm:$0xff] }
 0x1a1   : > { %v1199_v53 = vld [vmem:[%s4503_s18 + $0xc0] sm:$0xff]  ;;  %v2820_v48 = vld [vmem:[%s4359_s29 + $0x6d] sm:$0xff] }
 0x1a2   : > { %890 = vst.msk [vmem:[%s4503_s18 + $0xc8] sm:$0xff] %vm482_vm2, %v854_v51  ;;  %v1235_v54 = vadd.f32 %v1199_v53, %v1139_v45  ;;  %4090 = vmatmul.msk.f32.gmra.mxu1 %vm244_vm1, %v2432_v20  ;;  %4128 = vmatmul.msk.f32.gmra.mxu2 %vm244_vm1, %v2434_v50  ;;  %v822_v45 = vld [vmem:[%s4503_s18 + $0xe8] sm:$0xff] }
 0x1a3   : > { %v1580_v57 = vld [vmem:[%s4503_s18 + $0xb8] sm:$0xff]  ;;  %4166 = vmatmul.msk.f32.gmra.mxu3 %vm244_vm1, %v2816_v52  ;;  %4204 = vmatmul.msk.f32.gmra.mxu0 %vm244_vm1, %v3198_v56  ;;  %v3202_v52 = vld [vmem:[%s4359_s29 + $0x6e] sm:$0xff] }
 0x1a4   : > { %1271 = vst.msk [vmem:[%s4503_s18 + $0xc0] sm:$0xff] %vm482_vm2, %v1235_v54  ;;  %v1616_v58 = vadd.f32 %v1580_v57, %v1518_v32 }
 0x1a5   : > { %v1961_v59 = vld [vmem:[%s4503_s18 + $0xb0] sm:$0xff]  ;;  %v1142_v60 = vpop.f32.mrf.mxu2 }
 0x1a6   : > { %1652 = vst.msk [vmem:[%s4503_s18 + $0xb8] sm:$0xff] %vm482_vm2, %v1616_v58  ;;  %v1997_v61 = vadd.f32 %v1961_v59, %v5114_v10  ;;  %v1524_v62 = vpop.f32.mrf.mxu3 }
 0x1a7   : > { %v763_v63 = vpop.f32.mrf.mxu1 }
 0x1a8   : > { %2033 = vst.msk [vmem:[%s4503_s18 + $0xb0] sm:$0xff] %vm482_vm2, %v1997_v61  ;;  %v855_v2 = vadd.f32 %v819_v0, %v763_v63  ;;  %v5202_v6 = vpop.f32.mrf.mxu0  ;;  %v2439_v61 = vld [vmem:[%s4359_s29 + $0x74] sm:$0xff] }
 0x1a9   : > { %v1200_v4 = vld [vmem:[%s4503_s18 + $0xc8] sm:$0xff]  ;;  %v2821_v63 = vld [vmem:[%s4359_s29 + $0x75] sm:$0xff] }
 0x1aa   : > { %891 = vst.msk [vmem:[%s4503_s18 + $0xd0] sm:$0xff] %vm482_vm2, %v855_v2  ;;  %v1236_v5 = vadd.f32 %v1200_v4, %v1142_v60  ;;  %4091 = vmatmul.msk.f32.gmra.mxu1 %vm244_vm1, %v2433_v35  ;;  %4129 = vmatmul.msk.f32.gmra.mxu2 %vm244_vm1, %v2435_v1  ;;  %v823_v60 = vld [vmem:[%s4503_s18 + $0xf0] sm:$0xff] }
 0x1ab   : > { %v1581_v8 = vld [vmem:[%s4503_s18 + $0xc0] sm:$0xff]  ;;  %4167 = vmatmul.msk.f32.gmra.mxu3 %vm244_vm1, %v2817_v3  ;;  %4205 = vmatmul.msk.f32.gmra.mxu0 %vm244_vm1, %v3199_v7  ;;  %v3203_v3 = vld [vmem:[%s4359_s29 + $0x76] sm:$0xff] }
 0x1ac   : > { %1272 = vst.msk [vmem:[%s4503_s18 + $0xc8] sm:$0xff] %vm482_vm2, %v1236_v5  ;;  %v1617_v9 = vadd.f32 %v1581_v8, %v1521_v47 }
 0x1ad   : > { %v1962_v10 = vld [vmem:[%s4503_s18 + $0xb8] sm:$0xff]  ;;  %v1145_v11 = vpop.f32.mrf.mxu2 }
 0x1ae   : > { %1653 = vst.msk [vmem:[%s4503_s18 + $0xc0] sm:$0xff] %vm482_vm2, %v1617_v9  ;;  %v1998_v12 = vadd.f32 %v1962_v10, %v5136_v25  ;;  %v1527_v13 = vpop.f32.mrf.mxu3 }
 0x1af   : > { %v766_v14 = vpop.f32.mrf.mxu1 }
 0x1b0   : > { %2034 = vst.msk [vmem:[%s4503_s18 + $0xb8] sm:$0xff] %vm482_vm2, %v1998_v12  ;;  %v856_v17 = vadd.f32 %v820_v15, %v766_v14  ;;  %v5224_v21 = vpop.f32.mrf.mxu0  ;;  %v2440_v12 = vld [vmem:[%s4359_s29 + $0x7c] sm:$0xff] }
 0x1b1   : > { %v1201_v19 = vld [vmem:[%s4503_s18 + $0xd0] sm:$0xff]  ;;  %v2822_v14 = vld [vmem:[%s4359_s29 + $0x7d] sm:$0xff] }
 0x1b2   : > { %892 = vst.msk [vmem:[%s4503_s18 + $0xd8] sm:$0xff] %vm482_vm2, %v856_v17  ;;  %v1237_v20 = vadd.f32 %v1201_v19, %v1145_v11  ;;  %4092 = vmatmul.msk.f32.gmra.mxu1 %vm244_vm1, %v2434_v50  ;;  %4130 = vmatmul.msk.f32.gmra.mxu2 %vm244_vm1, %v2436_v16  ;;  %v824_v11 = vld [vmem:[%s4503_s18 + $0xf8] sm:$0xff] }
 0x1b3   : > { %v1582_v23 = vld [vmem:[%s4503_s18 + $0xc8] sm:$0xff]  ;;  %4168 = vmatmul.msk.f32.gmra.mxu3 %vm244_vm1, %v2818_v18  ;;  %4206 = vmatmul.msk.f32.gmra.mxu0 %vm244_vm1, %v3200_v22  ;;  %v3204_v18 = vld [vmem:[%s4359_s29 + $0x7e] sm:$0xff] }
 0x1b4   : > { %1273 = vst.msk [vmem:[%s4503_s18 + $0xd0] sm:$0xff] %vm482_vm2, %v1237_v20  ;;  %v1618_v24 = vadd.f32 %v1582_v23, %v1524_v62 }
 0x1b5   : > { %v1963_v25 = vld [vmem:[%s4503_s18 + $0xc0] sm:$0xff]  ;;  %v1148_v26 = vpop.f32.mrf.mxu2 }
 0x1b6   : > { %1654 = vst.msk [vmem:[%s4503_s18 + $0xc8] sm:$0xff] %vm482_vm2, %v1618_v24  ;;  %v1999_v27 = vadd.f32 %v1963_v25, %v5158_v40  ;;  %v1530_v28 = vpop.f32.mrf.mxu3 }
 0x1b7   : > { %v769_v29 = vpop.f32.mrf.mxu1 }
 0x1b8   : > { %2035 = vst.msk [vmem:[%s4503_s18 + $0xc0] sm:$0xff] %vm482_vm2, %v1999_v27  ;;  %v857_v32 = vadd.f32 %v821_v30, %v769_v29  ;;  %v5246_v36 = vpop.f32.mrf.mxu0  ;;  %v2441_v27 = vld [vmem:[%s4359_s29 + $0x84] sm:$0xff] }
 0x1b9   : > { %v1202_v34 = vld [vmem:[%s4503_s18 + $0xd8] sm:$0xff]  ;;  %v2823_v29 = vld [vmem:[%s4359_s29 + $0x85] sm:$0xff] }
 0x1ba   : > { %893 = vst.msk [vmem:[%s4503_s18 + $0xe0] sm:$0xff] %vm482_vm2, %v857_v32  ;;  %v1238_v35 = vadd.f32 %v1202_v34, %v1148_v26  ;;  %4093 = vmatmul.msk.f32.gmra.mxu1 %vm244_vm1, %v2435_v1  ;;  %4131 = vmatmul.msk.f32.gmra.mxu2 %vm244_vm1, %v2437_v31  ;;  %v825_v26 = vld [vmem:[%s4503_s18 + $0x100] sm:$0xff] }
 0x1bb   : > { %v1583_v38 = vld [vmem:[%s4503_s18 + $0xd0] sm:$0xff]  ;;  %4169 = vmatmul.msk.f32.gmra.mxu3 %vm244_vm1, %v2819_v33  ;;  %4207 = vmatmul.msk.f32.gmra.mxu0 %vm244_vm1, %v3201_v37  ;;  %v3205_v33 = vld [vmem:[%s4359_s29 + $0x86] sm:$0xff] }
 0x1bc   : > { %1274 = vst.msk [vmem:[%s4503_s18 + $0xd8] sm:$0xff] %vm482_vm2, %v1238_v35  ;;  %v1619_v39 = vadd.f32 %v1583_v38, %v1527_v13 }
 0x1bd   : > { %v1964_v40 = vld [vmem:[%s4503_s18 + $0xc8] sm:$0xff]  ;;  %v1151_v41 = vpop.f32.mrf.mxu2 }
 0x1be   : > { %1655 = vst.msk [vmem:[%s4503_s18 + $0xd0] sm:$0xff] %vm482_vm2, %v1619_v39  ;;  %v2000_v42 = vadd.f32 %v1964_v40, %v5180_v55  ;;  %v1533_v43 = vpop.f32.mrf.mxu3 }
 0x1bf   : > { %v772_v44 = vpop.f32.mrf.mxu1 }
 0x1c0   : > { %2036 = vst.msk [vmem:[%s4503_s18 + $0xc8] sm:$0xff] %vm482_vm2, %v2000_v42  ;;  %v858_v47 = vadd.f32 %v822_v45, %v772_v44  ;;  %v5268_v51 = vpop.f32.mrf.mxu0  ;;  %v2442_v42 = vld [vmem:[%s4359_s29 + $0x8c] sm:$0xff] }
 0x1c1   : > { %v1203_v49 = vld [vmem:[%s4503_s18 + $0xe0] sm:$0xff]  ;;  %v2824_v44 = vld [vmem:[%s4359_s29 + $0x8d] sm:$0xff] }
 0x1c2   : > { %894 = vst.msk [vmem:[%s4503_s18 + $0xe8] sm:$0xff] %vm482_vm2, %v858_v47  ;;  %v1239_v50 = vadd.f32 %v1203_v49, %v1151_v41  ;;  %4094 = vmatmul.msk.f32.gmra.mxu1 %vm244_vm1, %v2436_v16  ;;  %4132 = vmatmul.msk.f32.gmra.mxu2 %vm244_vm1, %v2438_v46  ;;  %v826_v41 = vld [vmem:[%s4503_s18 + $0x108] sm:$0xff] }
 0x1c3   : > { %v1584_v53 = vld [vmem:[%s4503_s18 + $0xd8] sm:$0xff]  ;;  %4170 = vmatmul.msk.f32.gmra.mxu3 %vm244_vm1, %v2820_v48  ;;  %4208 = vmatmul.msk.f32.gmra.mxu0 %vm244_vm1, %v3202_v52  ;;  %v3206_v48 = vld [vmem:[%s4359_s29 + $0x8e] sm:$0xff] }
 0x1c4   : > { %1275 = vst.msk [vmem:[%s4503_s18 + $0xe0] sm:$0xff] %vm482_vm2, %v1239_v50  ;;  %v1620_v54 = vadd.f32 %v1584_v53, %v1530_v28 }
 0x1c5   : > { %v1965_v55 = vld [vmem:[%s4503_s18 + $0xd0] sm:$0xff]  ;;  %v1154_v56 = vpop.f32.mrf.mxu2 }
 0x1c6   : > { %1656 = vst.msk [vmem:[%s4503_s18 + $0xd8] sm:$0xff] %vm482_vm2, %v1620_v54  ;;  %v2001_v57 = vadd.f32 %v1965_v55, %v5202_v6  ;;  %v1536_v58 = vpop.f32.mrf.mxu3 }
 0x1c7   : > { %v775_v59 = vpop.f32.mrf.mxu1 }
 0x1c8   : > { %2037 = vst.msk [vmem:[%s4503_s18 + $0xd0] sm:$0xff] %vm482_vm2, %v2001_v57  ;;  %v859_v62 = vadd.f32 %v823_v60, %v775_v59  ;;  %v5290_v2 = vpop.f32.mrf.mxu0  ;;  %v2443_v57 = vld [vmem:[%s4359_s29 + $0x94] sm:$0xff] }
 0x1c9   : > { %v1204_v0 = vld [vmem:[%s4503_s18 + $0xe8] sm:$0xff]  ;;  %v2825_v59 = vld [vmem:[%s4359_s29 + $0x95] sm:$0xff] }
 0x1ca   : > { %895 = vst.msk [vmem:[%s4503_s18 + $0xf0] sm:$0xff] %vm482_vm2, %v859_v62  ;;  %v1240_v1 = vadd.f32 %v1204_v0, %v1154_v56  ;;  %4095 = vmatmul.msk.f32.gmra.mxu1 %vm244_vm1, %v2437_v31  ;;  %4133 = vmatmul.msk.f32.gmra.mxu2 %vm244_vm1, %v2439_v61  ;;  %v827_v56 = vld [vmem:[%s4503_s18 + $0x110] sm:$0xff] }
 0x1cb   : > { %v1585_v4 = vld [vmem:[%s4503_s18 + $0xe0] sm:$0xff]  ;;  %4171 = vmatmul.msk.f32.gmra.mxu3 %vm244_vm1, %v2821_v63  ;;  %4209 = vmatmul.msk.f32.gmra.mxu0 %vm244_vm1, %v3203_v3  ;;  %v3207_v63 = vld [vmem:[%s4359_s29 + $0x96] sm:$0xff] }
 0x1cc   : > { %1276 = vst.msk [vmem:[%s4503_s18 + $0xe8] sm:$0xff] %vm482_vm2, %v1240_v1  ;;  %v1621_v5 = vadd.f32 %v1585_v4, %v1533_v43 }
 0x1cd   : > { %v1966_v6 = vld [vmem:[%s4503_s18 + $0xd8] sm:$0xff]  ;;  %v1157_v7 = vpop.f32.mrf.mxu2 }
 0x1ce   : > { %1657 = vst.msk [vmem:[%s4503_s18 + $0xe0] sm:$0xff] %vm482_vm2, %v1621_v5  ;;  %v2002_v8 = vadd.f32 %v1966_v6, %v5224_v21  ;;  %v1539_v9 = vpop.f32.mrf.mxu3 }
 0x1cf   : > { %v778_v10 = vpop.f32.mrf.mxu1 }
 0x1d0   : > { %2038 = vst.msk [vmem:[%s4503_s18 + $0xd8] sm:$0xff] %vm482_vm2, %v2002_v8  ;;  %v860_v13 = vadd.f32 %v824_v11, %v778_v10  ;;  %v5312_v17 = vpop.f32.mrf.mxu0  ;;  %v2444_v8 = vld [vmem:[%s4359_s29 + $0x9c] sm:$0xff] }
 0x1d1   : > { %v1205_v15 = vld [vmem:[%s4503_s18 + $0xf0] sm:$0xff]  ;;  %v2826_v10 = vld [vmem:[%s4359_s29 + $0x9d] sm:$0xff] }
 0x1d2   : > { %896 = vst.msk [vmem:[%s4503_s18 + $0xf8] sm:$0xff] %vm482_vm2, %v860_v13  ;;  %v1241_v16 = vadd.f32 %v1205_v15, %v1157_v7  ;;  %4096 = vmatmul.msk.f32.gmra.mxu1 %vm244_vm1, %v2438_v46  ;;  %4134 = vmatmul.msk.f32.gmra.mxu2 %vm244_vm1, %v2440_v12  ;;  %v828_v7 = vld [vmem:[%s4503_s18 + $0x118] sm:$0xff] }
 0x1d3   : > { %v1586_v19 = vld [vmem:[%s4503_s18 + $0xe8] sm:$0xff]  ;;  %4172 = vmatmul.msk.f32.gmra.mxu3 %vm244_vm1, %v2822_v14  ;;  %4210 = vmatmul.msk.f32.gmra.mxu0 %vm244_vm1, %v3204_v18  ;;  %v3208_v14 = vld [vmem:[%s4359_s29 + $0x9e] sm:$0xff] }
 0x1d4   : > { %1277 = vst.msk [vmem:[%s4503_s18 + $0xf0] sm:$0xff] %vm482_vm2, %v1241_v16  ;;  %v1622_v20 = vadd.f32 %v1586_v19, %v1536_v58 }
 0x1d5   : > { %v1967_v21 = vld [vmem:[%s4503_s18 + $0xe0] sm:$0xff]  ;;  %v1160_v22 = vpop.f32.mrf.mxu2 }
 0x1d6   : > { %1658 = vst.msk [vmem:[%s4503_s18 + $0xe8] sm:$0xff] %vm482_vm2, %v1622_v20  ;;  %v2003_v23 = vadd.f32 %v1967_v21, %v5246_v36  ;;  %v1542_v24 = vpop.f32.mrf.mxu3 }
 0x1d7   : > { %v781_v25 = vpop.f32.mrf.mxu1 }
 0x1d8   : > { %2039 = vst.msk [vmem:[%s4503_s18 + $0xe0] sm:$0xff] %vm482_vm2, %v2003_v23  ;;  %v861_v28 = vadd.f32 %v825_v26, %v781_v25  ;;  %v5334_v32 = vpop.f32.mrf.mxu0  ;;  %v2445_v23 = vld [vmem:[%s4359_s29 + $0xa4] sm:$0xff] }
 0x1d9   : > { %v1206_v30 = vld [vmem:[%s4503_s18 + $0xf8] sm:$0xff]  ;;  %v2827_v25 = vld [vmem:[%s4359_s29 + $0xa5] sm:$0xff] }
 0x1da   : > { %897 = vst.msk [vmem:[%s4503_s18 + $0x100] sm:$0xff] %vm482_vm2, %v861_v28  ;;  %v1242_v31 = vadd.f32 %v1206_v30, %v1160_v22  ;;  %4097 = vmatmul.msk.f32.gmra.mxu1 %vm244_vm1, %v2439_v61  ;;  %4135 = vmatmul.msk.f32.gmra.mxu2 %vm244_vm1, %v2441_v27  ;;  %v2321_v22 = vld [vmem:[%s4503_s18] sm:$0xff] }
 0x1db   : > { %v1587_v34 = vld [vmem:[%s4503_s18 + $0xf0] sm:$0xff]  ;;  %4173 = vmatmul.msk.f32.gmra.mxu3 %vm244_vm1, %v2823_v29  ;;  %4211 = vmatmul.msk.f32.gmra.mxu0 %vm244_vm1, %v3205_v33  ;;  %v3209_v29 = vld [vmem:[%s4359_s29 + $0xa6] sm:$0xff] }
 0x1dc   : > { %1278 = vst.msk [vmem:[%s4503_s18 + $0xf8] sm:$0xff] %vm482_vm2, %v1242_v31  ;;  %v1623_v35 = vadd.f32 %v1587_v34, %v1539_v9 }
 0x1dd   : > { %v1968_v36 = vld [vmem:[%s4503_s18 + $0xe8] sm:$0xff]  ;;  %v1163_v37 = vpop.f32.mrf.mxu2 }
 0x1de   : > { %1659 = vst.msk [vmem:[%s4503_s18 + $0xf0] sm:$0xff] %vm482_vm2, %v1623_v35  ;;  %v2004_v38 = vadd.f32 %v1968_v36, %v5268_v51  ;;  %v1545_v39 = vpop.f32.mrf.mxu3 }
 0x1df   : > { %v784_v40 = vpop.f32.mrf.mxu1 }
 0x1e0   : > { %2040 = vst.msk [vmem:[%s4503_s18 + $0xe8] sm:$0xff] %vm482_vm2, %v2004_v38  ;;  %v862_v43 = vadd.f32 %v826_v41, %v784_v40  ;;  %v5356_v47 = vpop.f32.mrf.mxu0  ;;  %v2446_v38 = vld [vmem:[%s4359_s29 + $0xac] sm:$0xff] }
 0x1e1   : > { %v1207_v45 = vld [vmem:[%s4503_s18 + $0x100] sm:$0xff]  ;;  %v2828_v40 = vld [vmem:[%s4359_s29 + $0xad] sm:$0xff] }
 0x1e2   : > { %898 = vst.msk [vmem:[%s4503_s18 + $0x108] sm:$0xff] %vm482_vm2, %v862_v43  ;;  %v1243_v46 = vadd.f32 %v1207_v45, %v1163_v37  ;;  %4098 = vmatmul.msk.f32.gmra.mxu1 %vm244_vm1, %v2440_v12  ;;  %4136 = vmatmul.msk.f32.gmra.mxu2 %vm244_vm1, %v2442_v42  ;;  %v2322_v37 = vld [vmem:[%s4503_s18 + $0x8] sm:$0xff] }
 0x1e3   : > { %v1588_v49 = vld [vmem:[%s4503_s18 + $0xf8] sm:$0xff]  ;;  %4174 = vmatmul.msk.f32.gmra.mxu3 %vm244_vm1, %v2824_v44  ;;  %4212 = vmatmul.msk.f32.gmra.mxu0 %vm244_vm1, %v3206_v48  ;;  %v3210_v44 = vld [vmem:[%s4359_s29 + $0xae] sm:$0xff] }
 0x1e4   : > { %1279 = vst.msk [vmem:[%s4503_s18 + $0x100] sm:$0xff] %vm482_vm2, %v1243_v46  ;;  %v1624_v50 = vadd.f32 %v1588_v49, %v1542_v24 }
 0x1e5   : > { %v1969_v51 = vld [vmem:[%s4503_s18 + $0xf0] sm:$0xff]  ;;  %v1166_v52 = vpop.f32.mrf.mxu2 }
 0x1e6   : > { %1660 = vst.msk [vmem:[%s4503_s18 + $0xf8] sm:$0xff] %vm482_vm2, %v1624_v50  ;;  %v2005_v53 = vadd.f32 %v1969_v51, %v5290_v2  ;;  %v1548_v54 = vpop.f32.mrf.mxu3 }
 0x1e7   : > { %v787_v55 = vpop.f32.mrf.mxu1 }
 0x1e8   : > { %2041 = vst.msk [vmem:[%s4503_s18 + $0xf0] sm:$0xff] %vm482_vm2, %v2005_v53  ;;  %v863_v58 = vadd.f32 %v827_v56, %v787_v55  ;;  %v5378_v62 = vpop.f32.mrf.mxu0  ;;  %v2447_v53 = vld [vmem:[%s4359_s29 + $0xb4] sm:$0xff] }
 0x1e9   : > { %v1208_v60 = vld [vmem:[%s4503_s18 + $0x108] sm:$0xff]  ;;  %v2829_v55 = vld [vmem:[%s4359_s29 + $0xb5] sm:$0xff] }
 0x1ea   : > { %899 = vst.msk [vmem:[%s4503_s18 + $0x110] sm:$0xff] %vm482_vm2, %v863_v58  ;;  %v1244_v61 = vadd.f32 %v1208_v60, %v1166_v52  ;;  %4099 = vmatmul.msk.f32.gmra.mxu1 %vm244_vm1, %v2441_v27  ;;  %4137 = vmatmul.msk.f32.gmra.mxu2 %vm244_vm1, %v2443_v57  ;;  %v2323_v52 = vld [vmem:[%s4503_s18 + $0x10] sm:$0xff] }
 0x1eb   : > { %v1589_v0 = vld [vmem:[%s4503_s18 + $0x100] sm:$0xff]  ;;  %4175 = vmatmul.msk.f32.gmra.mxu3 %vm244_vm1, %v2825_v59  ;;  %4213 = vmatmul.msk.f32.gmra.mxu0 %vm244_vm1, %v3207_v63  ;;  %v3211_v59 = vld [vmem:[%s4359_s29 + $0xb6] sm:$0xff] }
 0x1ec   : > { %1280 = vst.msk [vmem:[%s4503_s18 + $0x108] sm:$0xff] %vm482_vm2, %v1244_v61  ;;  %v1625_v1 = vadd.f32 %v1589_v0, %v1545_v39 }
 0x1ed   : > { %v1970_v2 = vld [vmem:[%s4503_s18 + $0xf8] sm:$0xff]  ;;  %v1169_v3 = vpop.f32.mrf.mxu2 }
 0x1ee   : > { %1661 = vst.msk [vmem:[%s4503_s18 + $0x100] sm:$0xff] %vm482_vm2, %v1625_v1  ;;  %v2006_v4 = vadd.f32 %v1970_v2, %v5312_v17  ;;  %v1551_v5 = vpop.f32.mrf.mxu3 }
 0x1ef   : > { %v790_v6 = vpop.f32.mrf.mxu1 }
 0x1f0   : > { %2042 = vst.msk [vmem:[%s4503_s18 + $0xf8] sm:$0xff] %vm482_vm2, %v2006_v4  ;;  %v864_v9 = vadd.f32 %v828_v7, %v790_v6  ;;  %v5400_v13 = vpop.f32.mrf.mxu0  ;;  %v2448_v4 = vld [vmem:[%s4359_s29 + $0xbc] sm:$0xff] }
 0x1f1   : > { %v1209_v11 = vld [vmem:[%s4503_s18 + $0x110] sm:$0xff]  ;;  %v2830_v6 = vld [vmem:[%s4359_s29 + $0xbd] sm:$0xff] }
 0x1f2   : > { %900 = vst.msk [vmem:[%s4503_s18 + $0x118] sm:$0xff] %vm482_vm2, %v864_v9  ;;  %v1245_v12 = vadd.f32 %v1209_v11, %v1169_v3  ;;  %4100 = vmatmul.msk.f32.gmra.mxu1 %vm244_vm1, %v2442_v42  ;;  %4138 = vmatmul.msk.f32.gmra.mxu2 %vm244_vm1, %v2444_v8  ;;  %v2324_v3 = vld [vmem:[%s4503_s18 + $0x18] sm:$0xff] }
 0x1f3   : > { %v1590_v15 = vld [vmem:[%s4503_s18 + $0x108] sm:$0xff]  ;;  %4176 = vmatmul.msk.f32.gmra.mxu3 %vm244_vm1, %v2826_v10  ;;  %4214 = vmatmul.msk.f32.gmra.mxu0 %vm244_vm1, %v3208_v14  ;;  %v3212_v10 = vld [vmem:[%s4359_s29 + $0xbe] sm:$0xff] }
 0x1f4   : > { %1281 = vst.msk [vmem:[%s4503_s18 + $0x110] sm:$0xff] %vm482_vm2, %v1245_v12  ;;  %v1626_v16 = vadd.f32 %v1590_v15, %v1548_v54 }
 0x1f5   : > { %v1971_v17 = vld [vmem:[%s4503_s18 + $0x100] sm:$0xff]  ;;  %v1172_v18 = vpop.f32.mrf.mxu2 }
 0x1f6   : > { %1662 = vst.msk [vmem:[%s4503_s18 + $0x108] sm:$0xff] %vm482_vm2, %v1626_v16  ;;  %v2007_v19 = vadd.f32 %v1971_v17, %v5334_v32  ;;  %v1554_v20 = vpop.f32.mrf.mxu3 }
 0x1f7   : > { %v2213_v21 = vpop.f32.mrf.mxu1 }
 0x1f8   : > { %2043 = vst.msk [vmem:[%s4503_s18 + $0x100] sm:$0xff] %vm482_vm2, %v2007_v19  ;;  %v2357_v24 = vadd.f32 %v2321_v22, %v2213_v21  ;;  %v5422_v28 = vpop.f32.mrf.mxu0  ;;  %v5502_v19 = vld [vmem:[%s4359_s29 + $0xc4] sm:$0xff] }
 0x1f9   : > { %v1210_v26 = vld [vmem:[%s4503_s18 + $0x118] sm:$0xff]  ;;  %v2831_v21 = vld [vmem:[%s4359_s29 + $0xc5] sm:$0xff] }
 0x1fa   : > { %2393 = vst.msk [vmem:[%s4503_s18] sm:$0xff] %vm482_vm2, %v2357_v24  ;;  %v1246_v27 = vadd.f32 %v1210_v26, %v1172_v18  ;;  %4101 = vmatmul.msk.f32.gmra.mxu1 %vm244_vm1, %v2443_v57  ;;  %4139 = vmatmul.msk.f32.gmra.mxu2 %vm244_vm1, %v2445_v23  ;;  %v2325_v18 = vld [vmem:[%s4503_s18 + $0x20] sm:$0xff] }
 0x1fb   : > { %v1591_v30 = vld [vmem:[%s4503_s18 + $0x110] sm:$0xff]  ;;  %4177 = vmatmul.msk.f32.gmra.mxu3 %vm244_vm1, %v2827_v25  ;;  %4215 = vmatmul.msk.f32.gmra.mxu0 %vm244_vm1, %v3209_v29  ;;  %v3213_v25 = vld [vmem:[%s4359_s29 + $0xc6] sm:$0xff] }
 0x1fc   : > { %1282 = vst.msk [vmem:[%s4503_s18 + $0x118] sm:$0xff] %vm482_vm2, %v1246_v27  ;;  %v1627_v31 = vadd.f32 %v1591_v30, %v1551_v5  ;;  %v5521_v27 = vld [vmem:[%s6306_s2] ss:$0 sm:$0xff] }
 0x1fd   : > { %v1972_v32 = vld [vmem:[%s4503_s18 + $0x108] sm:$0xff]  ;;  %v2595_v33 = vpop.f32.mrf.mxu2 }
 0x1fe   : > { %1663 = vst.msk [vmem:[%s4503_s18 + $0x110] sm:$0xff] %vm482_vm2, %v1627_v31  ;;  %v2008_v34 = vadd.f32 %v1972_v32, %v5356_v47  ;;  %v2977_v35 = vpop.f32.mrf.mxu3 }
 0x1ff   : > { %v2216_v36 = vpop.f32.mrf.mxu1 }
 0x200   : > { %2044 = vst.msk [vmem:[%s4503_s18 + $0x108] sm:$0xff] %vm482_vm2, %v2008_v34  ;;  %v2358_v39 = vadd.f32 %v2322_v37, %v2216_v36  ;;  %v5444_v43 = vpop.f32.mrf.mxu0  ;;  %v5533_v36 = vld [vmem:[%s4359_s29 + $0xcc] sm:$0xff] }
 0x201   : > { %v2703_v41 = vld [vmem:[%s4503_s18] sm:$0xff] }
 0x202   : > { %2394 = vst.msk [vmem:[%s4503_s18 + $0x8] sm:$0xff] %vm482_vm2, %v2358_v39  ;;  %v2739_v42 = vadd.f32 %v2703_v41, %v2595_v33  ;;  %4102 = vmatmul.msk.f32.gmra.mxu1 %vm244_vm1, %v2444_v8  ;;  %4140 = vmatmul.msk.f32.gmra.mxu2 %vm244_vm1, %v2446_v38  ;;  %v2832_v39 = vld [vmem:[%s4359_s29 + $0xcd] sm:$0xff] }
 0x203   : > { %v1592_v45 = vld [vmem:[%s4503_s18 + $0x118] sm:$0xff]  ;;  %4178 = vmatmul.msk.f32.gmra.mxu3 %vm244_vm1, %v2828_v40  ;;  %4216 = vmatmul.msk.f32.gmra.mxu0 %vm244_vm1, %v3210_v44  ;;  %v3214_v44 = vld [vmem:[%s4359_s29 + $0xce] sm:$0xff] }
 0x204   : > { %2775 = vst.msk [vmem:[%s4503_s18] sm:$0xff] %vm482_vm2, %v2739_v42  ;;  %v1628_v46 = vadd.f32 %v1592_v45, %v1554_v20 }
 0x205   : > { %v1973_v47 = vld [vmem:[%s4503_s18 + $0x110] sm:$0xff]  ;;  %v2598_v48 = vpop.f32.mrf.mxu2 }
 0x206   : > { %1664 = vst.msk [vmem:[%s4503_s18 + $0x118] sm:$0xff] %vm482_vm2, %v1628_v46  ;;  %v2009_v49 = vadd.f32 %v1973_v47, %v5378_v62  ;;  %v2980_v50 = vpop.f32.mrf.mxu3 }
 0x207   : > { %v2219_v51 = vpop.f32.mrf.mxu1 }
 0x208   : > { %2045 = vst.msk [vmem:[%s4503_s18 + $0x110] sm:$0xff] %vm482_vm2, %v2009_v49  ;;  %v2359_v54 = vadd.f32 %v2323_v52, %v2219_v51  ;;  %v5466_v58 = vpop.f32.mrf.mxu0 }
 0x209   : > { %v2704_v56 = vld [vmem:[%s4503_s18 + $0x8] sm:$0xff] }
 0x20a   : > { %2395 = vst.msk [vmem:[%s4503_s18 + $0x10] sm:$0xff] %vm482_vm2, %v2359_v54  ;;  %v2740_v57 = vadd.f32 %v2704_v56, %v2598_v48  ;;  %4103 = vmatmul.msk.f32.gmra.mxu1 %vm244_vm1, %v2445_v23  ;;  %4141 = vmatmul.msk.f32.gmra.mxu2 %vm244_vm1, %v2447_v53  ;;  %v2327_v54 = vld [vmem:[%s4503_s18 + $0x30] sm:$0xff] }
 0x20b   : > { %v3085_v60 = vld [vmem:[%s4503_s18] sm:$0xff]  ;;  %4179 = vmatmul.msk.f32.gmra.mxu3 %vm244_vm1, %v2829_v55  ;;  %4217 = vmatmul.msk.f32.gmra.mxu0 %vm244_vm1, %v3211_v59  ;;  %v5562_v55 = vld [vmem:[%s4359_s29 + $0xd4] sm:$0xff] }
 0x20c   : > { %2776 = vst.msk [vmem:[%s4503_s18 + $0x8] sm:$0xff] %vm482_vm2, %v2740_v57  ;;  %v3121_v61 = vadd.f32 %v3085_v60, %v2977_v35  ;;  %v2326_v35 = vld [vmem:[%s4503_s18 + $0x28] sm:$0xff]  ;;  %v2833_v59 = vld [vmem:[%s4359_s29 + $0xd5] sm:$0xff] }
 0x20d   : > { %v1974_v62 = vld [vmem:[%s4503_s18 + $0x118] sm:$0xff]  ;;  %v2601_v63 = vpop.f32.mrf.mxu2 }
 0x20e   : > { %3157 = vst.msk [vmem:[%s4503_s18] sm:$0xff] %vm482_vm2, %v3121_v61  ;;  %v2010_v0 = vadd.f32 %v1974_v62, %v5400_v13  ;;  %v2983_v1 = vpop.f32.mrf.mxu3 }
 0x20f   : > { %v2222_v2 = vpop.f32.mrf.mxu1 }
 0x210   : > { %2046 = vst.msk [vmem:[%s4503_s18 + $0x118] sm:$0xff] %vm482_vm2, %v2010_v0  ;;  %v2360_v5 = vadd.f32 %v2324_v3, %v2222_v2  ;;  %v5488_v9 = vpop.f32.mrf.mxu0 }
 0x211   : > { %v2705_v7 = vld [vmem:[%s4503_s18 + $0x10] sm:$0xff] }
 0x212   : > { %2396 = vst.msk [vmem:[%s4503_s18 + $0x18] sm:$0xff] %vm482_vm2, %v2360_v5  ;;  %v2741_v8 = vadd.f32 %v2705_v7, %v2601_v63  ;;  %4104 = vmatmul.msk.f32.gmra.mxu1 %vm244_vm1, %v2446_v38  ;;  %4142 = vmatmul.msk.f32.gmra.mxu2 %vm244_vm1, %v2448_v4  ;;  %v3215_v63 = vld [vmem:[%s4359_s29 + $0xd6] sm:$0xff] }
 0x213   : > { %v3086_v11 = vld [vmem:[%s4503_s18 + $0x8] sm:$0xff]  ;;  %4180 = vmatmul.msk.f32.gmra.mxu3 %vm244_vm1, %v2830_v6  ;;  %4218 = vmatmul.msk.f32.gmra.mxu0 %vm244_vm1, %v3212_v10  ;;  %v2328_v10 = vld [vmem:[%s4503_s18 + $0x38] sm:$0xff] }
 0x214   : > { %2777 = vst.msk [vmem:[%s4503_s18 + $0x10] sm:$0xff] %vm482_vm2, %v2741_v8  ;;  %v3122_v12 = vadd.f32 %v3086_v11, %v2980_v50  ;;  %v5592_v11 = vld [vmem:[%s4359_s29 + $0xdc] sm:$0xff] }
 0x215   : > { %v3467_v13 = vld [vmem:[%s4503_s18] sm:$0xff]  ;;  %v2604_v14 = vpop.f32.mrf.mxu2 }
 0x216   : > { %3158 = vst.msk [vmem:[%s4503_s18 + $0x8] sm:$0xff] %vm482_vm2, %v3122_v12  ;;  %v3503_v15 = vadd.f32 %v3467_v13, %v5422_v28  ;;  %v2986_v16 = vpop.f32.mrf.mxu3 }
 0x217   : > { %v2225_v17 = vpop.f32.mrf.mxu1 }
 0x218   : > { %3539 = vst.msk [vmem:[%s4503_s18] sm:$0xff] %vm482_vm2, %v3503_v15  ;;  %v2361_v20 = vadd.f32 %v2325_v18, %v2225_v17  ;;  %v5513_v24 = vpop.f32.mrf.mxu0  ;;  %v3216_v18 = vld [vmem:[%s4359_s29 + $0xde] sm:$0xff] }
 0x219   : > { %v2706_v22 = vld [vmem:[%s4503_s18 + $0x18] sm:$0xff] }
 0x21a   : > { %2397 = vst.msk [vmem:[%s4503_s18 + $0x20] sm:$0xff] %vm482_vm2, %v2361_v20  ;;  %v2742_v23 = vadd.f32 %v2706_v22, %v2604_v14  ;;  %4105 = vmatmul.msk.f32.gmra.mxu1 %vm244_vm1, %v2447_v53  ;;  %4143 = vmatmul.msk.f32.gmra.mxu2 %vm244_vm1, %v5502_v19  ;;  %v2834_v14 = vld [vmem:[%s4359_s29 + $0xdd] sm:$0xff] }
 0x21b   : > { %v3087_v26 = vld [vmem:[%s4503_s18 + $0x10] sm:$0xff]  ;;  %4181 = vmatmul.msk.f32.gmra.mxu3 %vm244_vm1, %v2831_v21  ;;  %4219 = vmatmul.msk.f32.gmra.mxu0 %vm244_vm1, %v3213_v25 }
 0x21c   : > { %2778 = vst.msk [vmem:[%s4503_s18 + $0x18] sm:$0xff] %vm482_vm2, %v2742_v23  ;;  %v3123_v28 = vadd.f32 %v3087_v26, %v2983_v1 }
 0x21d   : > { %v3468_v29 = vld [vmem:[%s4503_s18 + $0x8] sm:$0xff]  ;;  %v2607_v30 = vpop.f32.mrf.mxu2 }
 0x21e   : > { %3159 = vst.msk [vmem:[%s4503_s18 + $0x10] sm:$0xff] %vm482_vm2, %v3123_v28  ;;  %v3504_v31 = vadd.f32 %v3468_v29, %v5444_v43  ;;  %v2989_v32 = vpop.f32.mrf.mxu3 }
 0x21f   : > { %v3575_v33 = vld [vmem:[%s4503_s18] sm:$0xff]  ;;  %v2228_v34 = vpop.f32.mrf.mxu1 }
 0x220   : > { %v3615_v37 = vadd.f32 %v5521_v27, %v3575_v33  ;;  %3540 = vst.msk [vmem:[%s4503_s18 + $0x8] sm:$0xff] %vm482_vm2, %v3504_v31  ;;  %v2362_v38 = vadd.f32 %v2326_v35, %v2228_v34  ;;  %v5545_v43 = vpop.f32.mrf.mxu0  ;;  %v5622_v31 = vld [vmem:[%s4359_s29 + $0xe4] sm:$0xff] }
 0x221   : > { %v2707_v40 = vld [vmem:[%s4503_s18 + $0x20] sm:$0xff] }
 0x222   : > { %vm3651_vm3 = vcmp.ge.f32.partialorder %v3615_v37, 0.0  ;;  %v3687_v41 = vmul.f32 0.2, %v3615_v37  ;;  %2398 = vst.msk [vmem:[%s4503_s18 + $0x28] sm:$0xff] %vm482_vm2, %v2362_v38  ;;  %v2743_v42 = vadd.f32 %v2707_v40, %v2607_v30  ;;  %4106 = vmatmul.msk.f32.gmra.mxu1 %vm244_vm1, %v2448_v4  ;;  %4144 = vmatmul.msk.f32.gmra.mxu2 %vm244_vm1, %v5533_v36  ;;  %v2329_v30 = vld [vmem:[%s4503_s18 + $0x40] sm:$0xff] }
 0x223   : > { %v3088_v45 = vld [vmem:[%s4503_s18 + $0x18] sm:$0xff]  ;;  %4182 = vmatmul.msk.f32.gmra.mxu3 %vm244_vm1, %v2832_v39  ;;  %4220 = vmatmul.msk.f32.gmra.mxu0 %vm244_vm1, %v3214_v44  ;;  %v2835_v34 = vld [vmem:[%s4359_s29 + $0xe5] sm:$0xff] }
 0x224   : > { %v3723_v46 = vsel %vm3651_vm3, %v3615_v37, %v3687_v41  ;;  %2779 = vst.msk [vmem:[%s4503_s18 + $0x20] sm:$0xff] %vm482_vm2, %v2743_v42  ;;  %v3124_v47 = vadd.f32 %v3088_v45, %v2986_v16  ;;  %v3217_v38 = vld [vmem:[%s4359_s29 + $0xe6] sm:$0xff] }
 0x225   : > { %3759 = vst.msk [vmem:[%s4503_s18] sm:$0xff] %vm482_vm2, %v3723_v46  ;;  %v3469_v48 = vld [vmem:[%s4503_s18 + $0x10] sm:$0xff]  ;;  %v2610_v49 = vpop.f32.mrf.mxu2 }
 0x226   : > { %3160 = vst.msk [vmem:[%s4503_s18 + $0x18] sm:$0xff] %vm482_vm2, %v3124_v47  ;;  %v3505_v50 = vadd.f32 %v3469_v48, %v5466_v58  ;;  %v2992_v51 = vpop.f32.mrf.mxu3 }
 0x227   : > { %v3576_v52 = vld [vmem:[%s4503_s18 + $0x8] sm:$0xff]  ;;  %v2231_v53 = vpop.f32.mrf.mxu1 }
 0x228   : > { %v3616_v56 = vadd.f32 %v5521_v27, %v3576_v52  ;;  %3541 = vst.msk [vmem:[%s4503_s18 + $0x10] sm:$0xff] %vm482_vm2, %v3505_v50  ;;  %v2363_v57 = vadd.f32 %v2327_v54, %v2231_v53  ;;  %v5575_v62 = vpop.f32.mrf.mxu0  ;;  %v5652_v50 = vld [vmem:[%s4359_s29 + $0xec] sm:$0xff] }
 0x229   : > { %v2708_v60 = vld [vmem:[%s4503_s18 + $0x28] sm:$0xff] }
 0x22a   : > { %vm3652_vm4 = vcmp.ge.f32.partialorder %v3616_v56, 0.0  ;;  %v3688_v58 = vmul.f32 0.2, %v3616_v56  ;;  %2399 = vst.msk [vmem:[%s4503_s18 + $0x30] sm:$0xff] %vm482_vm2, %v2363_v57  ;;  %v2744_v61 = vadd.f32 %v2708_v60, %v2610_v49  ;;  %4107 = vmatmul.msk.f32.gmra.mxu1 %vm244_vm1, %v5502_v19  ;;  %4145 = vmatmul.msk.f32.gmra.mxu2 %vm244_vm1, %v5562_v55  ;;  %v2330_v49 = vld [vmem:[%s4503_s18 + $0x48] sm:$0xff] }
 0x22b   : > { %v3089_v0 = vld [vmem:[%s4503_s18 + $0x20] sm:$0xff]  ;;  %4183 = vmatmul.msk.f32.gmra.mxu3 %vm244_vm1, %v2833_v59  ;;  %4221 = vmatmul.msk.f32.gmra.mxu0 %vm244_vm1, %v3215_v63  ;;  %v2836_v53 = vld [vmem:[%s4359_s29 + $0xed] sm:$0xff] }
 0x22c   : > { %v3724_v1 = vsel %vm3652_vm4, %v3616_v56, %v3688_v58  ;;  %2780 = vst.msk [vmem:[%s4503_s18 + $0x28] sm:$0xff] %vm482_vm2, %v2744_v61  ;;  %v3125_v2 = vadd.f32 %v3089_v0, %v2989_v32  ;;  %v3218_v57 = vld [vmem:[%s4359_s29 + $0xee] sm:$0xff] }
 0x22d   : > { %3760 = vst.msk [vmem:[%s4503_s18 + $0x8] sm:$0xff] %vm482_vm2, %v3724_v1  ;;  %v3470_v3 = vld [vmem:[%s4503_s18 + $0x18] sm:$0xff]  ;;  %v2613_v4 = vpop.f32.mrf.mxu2 }
 0x22e   : > { %3161 = vst.msk [vmem:[%s4503_s18 + $0x20] sm:$0xff] %vm482_vm2, %v3125_v2  ;;  %v3506_v5 = vadd.f32 %v3470_v3, %v5488_v9  ;;  %v2995_v6 = vpop.f32.mrf.mxu3 }
 0x22f   : > { %v3577_v7 = vld [vmem:[%s4503_s18 + $0x10] sm:$0xff]  ;;  %v2234_v8 = vpop.f32.mrf.mxu1 }
 0x230   : > { %v3617_v12 = vadd.f32 %v5521_v27, %v3577_v7  ;;  %3542 = vst.msk [vmem:[%s4503_s18 + $0x18] sm:$0xff] %vm482_vm2, %v3506_v5  ;;  %v2364_v13 = vadd.f32 %v2328_v10, %v2234_v8  ;;  %v5605_v17 = vpop.f32.mrf.mxu0  ;;  %v5682_v5 = vld [vmem:[%s4359_s29 + $0xf4] sm:$0xff] }
 0x231   : > { %v2709_v15 = vld [vmem:[%s4503_s18 + $0x30] sm:$0xff] }
 0x232   : > { %vm3653_vm5 = vcmp.ge.f32.partialorder %v3617_v12, 0.0  ;;  %v3689_v9 = vmul.f32 0.2, %v3617_v12  ;;  %2400 = vst.msk [vmem:[%s4503_s18 + $0x38] sm:$0xff] %vm482_vm2, %v2364_v13  ;;  %v2745_v16 = vadd.f32 %v2709_v15, %v2613_v4  ;;  %4108 = vmatmul.msk.f32.gmra.mxu1 %vm244_vm1, %v5533_v36  ;;  %4146 = vmatmul.msk.f32.gmra.mxu2 %vm244_vm1, %v5592_v11  ;;  %v2331_v4 = vld [vmem:[%s4503_s18 + $0x50] sm:$0xff] }
 0x233   : > { %v3090_v19 = vld [vmem:[%s4503_s18 + $0x28] sm:$0xff]  ;;  %4184 = vmatmul.msk.f32.gmra.mxu3 %vm244_vm1, %v2834_v14  ;;  %4222 = vmatmul.msk.f32.gmra.mxu0 %vm244_vm1, %v3216_v18  ;;  %v2837_v8 = vld [vmem:[%s4359_s29 + $0xf5] sm:$0xff] }
 0x234   : > { %v3725_v20 = vsel %vm3653_vm5, %v3617_v12, %v3689_v9  ;;  %2781 = vst.msk [vmem:[%s4503_s18 + $0x30] sm:$0xff] %vm482_vm2, %v2745_v16  ;;  %v3126_v21 = vadd.f32 %v3090_v19, %v2992_v51  ;;  %v3219_v13 = vld [vmem:[%s4359_s29 + $0xf6] sm:$0xff] }
 0x235   : > { %3761 = vst.msk [vmem:[%s4503_s18 + $0x10] sm:$0xff] %vm482_vm2, %v3725_v20  ;;  %v3471_v22 = vld [vmem:[%s4503_s18 + $0x20] sm:$0xff]  ;;  %v2616_v23 = vpop.f32.mrf.mxu2 }
 0x236   : > { %3162 = vst.msk [vmem:[%s4503_s18 + $0x28] sm:$0xff] %vm482_vm2, %v3126_v21  ;;  %v3507_v25 = vadd.f32 %v3471_v22, %v5513_v24  ;;  %v2998_v26 = vpop.f32.mrf.mxu3 }
 0x237   : > { %v3578_v28 = vld [vmem:[%s4503_s18 + $0x18] sm:$0xff]  ;;  %v2237_v29 = vpop.f32.mrf.mxu1 }
 0x238   : > { %v3618_v32 = vadd.f32 %v5521_v27, %v3578_v28  ;;  %3543 = vst.msk [vmem:[%s4503_s18 + $0x20] sm:$0xff] %vm482_vm2, %v3507_v25  ;;  %v2365_v33 = vadd.f32 %v2329_v30, %v2237_v29  ;;  %v5635_v37 = vpop.f32.mrf.mxu0  ;;  %v5712_v25 = vld [vmem:[%s4359_s29 + $0xfc] sm:$0xff] }
 0x239   : > { %v2710_v35 = vld [vmem:[%s4503_s18 + $0x38] sm:$0xff] }
 0x23a   : > { %vm3654_vm6 = vcmp.ge.f32.partialorder %v3618_v32, 0.0  ;;  %v3690_v24 = vmul.f32 0.2, %v3618_v32  ;;  %2401 = vst.msk [vmem:[%s4503_s18 + $0x40] sm:$0xff] %vm482_vm2, %v2365_v33  ;;  %v2746_v36 = vadd.f32 %v2710_v35, %v2616_v23  ;;  %4109 = vmatmul.msk.f32.gmra.mxu1 %vm244_vm1, %v5562_v55  ;;  %4147 = vmatmul.msk.f32.gmra.mxu2 %vm244_vm1, %v5622_v31  ;;  %v2332_v23 = vld [vmem:[%s4503_s18 + $0x58] sm:$0xff] }
 0x23b   : > { %v3091_v39 = vld [vmem:[%s4503_s18 + $0x30] sm:$0xff]  ;;  %4185 = vmatmul.msk.f32.gmra.mxu3 %vm244_vm1, %v2835_v34  ;;  %4223 = vmatmul.msk.f32.gmra.mxu0 %vm244_vm1, %v3217_v38  ;;  %v2838_v29 = vld [vmem:[%s4359_s29 + $0xfd] sm:$0xff] }
 0x23c   : > { %v3726_v40 = vsel %vm3654_vm6, %v3618_v32, %v3690_v24  ;;  %2782 = vst.msk [vmem:[%s4503_s18 + $0x38] sm:$0xff] %vm482_vm2, %v2746_v36  ;;  %v3127_v41 = vadd.f32 %v3091_v39, %v2995_v6  ;;  %v3220_v33 = vld [vmem:[%s4359_s29 + $0xfe] sm:$0xff] }
 0x23d   : > { %3762 = vst.msk [vmem:[%s4503_s18 + $0x18] sm:$0xff] %vm482_vm2, %v3726_v40  ;;  %v3472_v42 = vld [vmem:[%s4503_s18 + $0x28] sm:$0xff]  ;;  %v2619_v44 = vpop.f32.mrf.mxu2 }
 0x23e   : > { %3163 = vst.msk [vmem:[%s4503_s18 + $0x30] sm:$0xff] %vm482_vm2, %v3127_v41  ;;  %v3508_v45 = vadd.f32 %v3472_v42, %v5545_v43  ;;  %v3001_v46 = vpop.f32.mrf.mxu3 }
 0x23f   : > { %v3579_v47 = vld [vmem:[%s4503_s18 + $0x20] sm:$0xff]  ;;  %v2240_v48 = vpop.f32.mrf.mxu1 }
 0x240   : > { %v3619_v51 = vadd.f32 %v5521_v27, %v3579_v47  ;;  %3544 = vst.msk [vmem:[%s4503_s18 + $0x28] sm:$0xff] %vm482_vm2, %v3508_v45  ;;  %v2366_v52 = vadd.f32 %v2330_v49, %v2240_v48  ;;  %v5665_v56 = vpop.f32.mrf.mxu0  ;;  %v5742_v45 = vld [vmem:[%s4359_s29 + $0x104] sm:$0xff] }
 0x241   : > { %v2711_v54 = vld [vmem:[%s4503_s18 + $0x40] sm:$0xff] }
 0x242   : > { %vm3655_vm7 = vcmp.ge.f32.partialorder %v3619_v51, 0.0  ;;  %v3691_v43 = vmul.f32 0.2, %v3619_v51  ;;  %2402 = vst.msk [vmem:[%s4503_s18 + $0x48] sm:$0xff] %vm482_vm2, %v2366_v52  ;;  %v2747_v55 = vadd.f32 %v2711_v54, %v2619_v44  ;;  %4110 = vmatmul.msk.f32.gmra.mxu1 %vm244_vm1, %v5592_v11  ;;  %4148 = vmatmul.msk.f32.gmra.mxu2 %vm244_vm1, %v5652_v50  ;;  %v2333_v44 = vld [vmem:[%s4503_s18 + $0x60] sm:$0xff] }
 0x243   : > { %v3092_v59 = vld [vmem:[%s4503_s18 + $0x38] sm:$0xff]  ;;  %4186 = vmatmul.msk.f32.gmra.mxu3 %vm244_vm1, %v2836_v53  ;;  %4224 = vmatmul.msk.f32.gmra.mxu0 %vm244_vm1, %v3218_v57  ;;  %v2839_v48 = vld [vmem:[%s4359_s29 + $0x105] sm:$0xff] }
 0x244   : > { %v3727_v60 = vsel %vm3655_vm7, %v3619_v51, %v3691_v43  ;;  %2783 = vst.msk [vmem:[%s4503_s18 + $0x40] sm:$0xff] %vm482_vm2, %v2747_v55  ;;  %v3128_v58 = vadd.f32 %v3092_v59, %v2998_v26  ;;  %v3221_v52 = vld [vmem:[%s4359_s29 + $0x106] sm:$0xff] }
 0x245   : > { %3763 = vst.msk [vmem:[%s4503_s18 + $0x20] sm:$0xff] %vm482_vm2, %v3727_v60  ;;  %v3473_v61 = vld [vmem:[%s4503_s18 + $0x30] sm:$0xff]  ;;  %v2622_v63 = vpop.f32.mrf.mxu2 }
 0x246   : > { %3164 = vst.msk [vmem:[%s4503_s18 + $0x38] sm:$0xff] %vm482_vm2, %v3128_v58  ;;  %v3509_v0 = vadd.f32 %v3473_v61, %v5575_v62  ;;  %v3004_v1 = vpop.f32.mrf.mxu3 }
 0x247   : > { %v3580_v2 = vld [vmem:[%s4503_s18 + $0x28] sm:$0xff]  ;;  %v2243_v3 = vpop.f32.mrf.mxu1 }
 0x248   : > { %v3620_v6 = vadd.f32 %v5521_v27, %v3580_v2  ;;  %3545 = vst.msk [vmem:[%s4503_s18 + $0x30] sm:$0xff] %vm482_vm2, %v3509_v0  ;;  %v2367_v7 = vadd.f32 %v2331_v4, %v2243_v3  ;;  %v5695_v12 = vpop.f32.mrf.mxu0  ;;  %v5772_v0 = vld [vmem:[%s4359_s29 + $0x10c] sm:$0xff] }
 0x249   : > { %v2712_v10 = vld [vmem:[%s4503_s18 + $0x48] sm:$0xff] }
 0x24a   : > { %vm3656_vm8 = vcmp.ge.f32.partialorder %v3620_v6, 0.0  ;;  %v3692_v62 = vmul.f32 0.2, %v3620_v6  ;;  %2403 = vst.msk [vmem:[%s4503_s18 + $0x50] sm:$0xff] %vm482_vm2, %v2367_v7  ;;  %v2748_v11 = vadd.f32 %v2712_v10, %v2622_v63  ;;  %4111 = vmatmul.msk.f32.gmra.mxu1 %vm244_vm1, %v5622_v31  ;;  %4149 = vmatmul.msk.f32.gmra.mxu2 %vm244_vm1, %v5682_v5  ;;  %v2334_v63 = vld [vmem:[%s4503_s18 + $0x68] sm:$0xff] }
 0x24b   : > { %v3093_v14 = vld [vmem:[%s4503_s18 + $0x40] sm:$0xff]  ;;  %4187 = vmatmul.msk.f32.gmra.mxu3 %vm244_vm1, %v2837_v8  ;;  %4225 = vmatmul.msk.f32.gmra.mxu0 %vm244_vm1, %v3219_v13  ;;  %v2840_v3 = vld [vmem:[%s4359_s29 + $0x10d] sm:$0xff] }
 0x24c   : > { %v3728_v15 = vsel %vm3656_vm8, %v3620_v6, %v3692_v62  ;;  %2784 = vst.msk [vmem:[%s4503_s18 + $0x48] sm:$0xff] %vm482_vm2, %v2748_v11  ;;  %v3129_v9 = vadd.f32 %v3093_v14, %v3001_v46  ;;  %v3222_v7 = vld [vmem:[%s4359_s29 + $0x10e] sm:$0xff] }
 0x24d   : > { %3764 = vst.msk [vmem:[%s4503_s18 + $0x28] sm:$0xff] %vm482_vm2, %v3728_v15  ;;  %v3474_v16 = vld [vmem:[%s4503_s18 + $0x38] sm:$0xff]  ;;  %v2625_v18 = vpop.f32.mrf.mxu2 }
 0x24e   : > { %3165 = vst.msk [vmem:[%s4503_s18 + $0x40] sm:$0xff] %vm482_vm2, %v3129_v9  ;;  %v3510_v19 = vadd.f32 %v3474_v16, %v5605_v17  ;;  %v3007_v20 = vpop.f32.mrf.mxu3 }
 0x24f   : > { %v3581_v21 = vld [vmem:[%s4503_s18 + $0x30] sm:$0xff]  ;;  %v2246_v22 = vpop.f32.mrf.mxu1 }
 0x250   : > { %v3621_v26 = vadd.f32 %v5521_v27, %v3581_v21  ;;  %3546 = vst.msk [vmem:[%s4503_s18 + $0x38] sm:$0xff] %vm482_vm2, %v3510_v19  ;;  %v2368_v28 = vadd.f32 %v2332_v23, %v2246_v22  ;;  %v5725_v32 = vpop.f32.mrf.mxu0  ;;  %v5802_v19 = vld [vmem:[%s4359_s29 + $0x114] sm:$0xff] }
 0x251   : > { %v2713_v30 = vld [vmem:[%s4503_s18 + $0x50] sm:$0xff] }
 0x252   : > { %vm3657_vm9 = vcmp.ge.f32.partialorder %v3621_v26, 0.0  ;;  %v3693_v17 = vmul.f32 0.2, %v3621_v26  ;;  %2404 = vst.msk [vmem:[%s4503_s18 + $0x58] sm:$0xff] %vm482_vm2, %v2368_v28  ;;  %v2749_v31 = vadd.f32 %v2713_v30, %v2625_v18  ;;  %4112 = vmatmul.msk.f32.gmra.mxu1 %vm244_vm1, %v5652_v50  ;;  %4150 = vmatmul.msk.f32.gmra.mxu2 %vm244_vm1, %v5712_v25  ;;  %v2335_v18 = vld [vmem:[%s4503_s18 + $0x70] sm:$0xff] }
 0x253   : > { %v3094_v34 = vld [vmem:[%s4503_s18 + $0x48] sm:$0xff]  ;;  %4188 = vmatmul.msk.f32.gmra.mxu3 %vm244_vm1, %v2838_v29  ;;  %4226 = vmatmul.msk.f32.gmra.mxu0 %vm244_vm1, %v3220_v33  ;;  %v2841_v22 = vld [vmem:[%s4359_s29 + $0x115] sm:$0xff] }
 0x254   : > { %v3729_v35 = vsel %vm3657_vm9, %v3621_v26, %v3693_v17  ;;  %2785 = vst.msk [vmem:[%s4503_s18 + $0x50] sm:$0xff] %vm482_vm2, %v2749_v31  ;;  %v3130_v24 = vadd.f32 %v3094_v34, %v3004_v1  ;;  %v3223_v28 = vld [vmem:[%s4359_s29 + $0x116] sm:$0xff] }
 0x255   : > { %3765 = vst.msk [vmem:[%s4503_s18 + $0x30] sm:$0xff] %vm482_vm2, %v3729_v35  ;;  %v3475_v36 = vld [vmem:[%s4503_s18 + $0x40] sm:$0xff]  ;;  %v2628_v38 = vpop.f32.mrf.mxu2 }
 0x256   : > { %3166 = vst.msk [vmem:[%s4503_s18 + $0x48] sm:$0xff] %vm482_vm2, %v3130_v24  ;;  %v3511_v39 = vadd.f32 %v3475_v36, %v5635_v37  ;;  %v3010_v40 = vpop.f32.mrf.mxu3 }
 0x257   : > { %v3582_v41 = vld [vmem:[%s4503_s18 + $0x38] sm:$0xff]  ;;  %v2249_v42 = vpop.f32.mrf.mxu1 }
 0x258   : > { %v3622_v46 = vadd.f32 %v5521_v27, %v3582_v41  ;;  %3547 = vst.msk [vmem:[%s4503_s18 + $0x40] sm:$0xff] %vm482_vm2, %v3511_v39  ;;  %v2369_v47 = vadd.f32 %v2333_v44, %v2249_v42  ;;  %v5755_v51 = vpop.f32.mrf.mxu0  ;;  %v5832_v39 = vld [vmem:[%s4359_s29 + $0x11c] sm:$0xff] }
 0x259   : > { %v2714_v49 = vld [vmem:[%s4503_s18 + $0x58] sm:$0xff] }
 0x25a   : > { %vm3658_vm10 = vcmp.ge.f32.partialorder %v3622_v46, 0.0  ;;  %v3694_v37 = vmul.f32 0.2, %v3622_v46  ;;  %2405 = vst.msk [vmem:[%s4503_s18 + $0x60] sm:$0xff] %vm482_vm2, %v2369_v47  ;;  %v2750_v50 = vadd.f32 %v2714_v49, %v2628_v38  ;;  %4113 = vmatmul.msk.f32.gmra.mxu1 %vm244_vm1, %v5682_v5  ;;  %4151 = vmatmul.msk.f32.gmra.mxu2 %vm244_vm1, %v5742_v45  ;;  %v2336_v38 = vld [vmem:[%s4503_s18 + $0x78] sm:$0xff] }
 0x25b   : > { %v3095_v53 = vld [vmem:[%s4503_s18 + $0x50] sm:$0xff]  ;;  %4189 = vmatmul.msk.f32.gmra.mxu3 %vm244_vm1, %v2839_v48  ;;  %4227 = vmatmul.msk.f32.gmra.mxu0 %vm244_vm1, %v3221_v52  ;;  %v2842_v42 = vld [vmem:[%s4359_s29 + $0x11d] sm:$0xff] }
 0x25c   : > { %v3730_v54 = vsel %vm3658_vm10, %v3622_v46, %v3694_v37  ;;  %2786 = vst.msk [vmem:[%s4503_s18 + $0x58] sm:$0xff] %vm482_vm2, %v2750_v50  ;;  %v3131_v43 = vadd.f32 %v3095_v53, %v3007_v20  ;;  %v3224_v47 = vld [vmem:[%s4359_s29 + $0x11e] sm:$0xff] }
 0x25d   : > { %3766 = vst.msk [vmem:[%s4503_s18 + $0x38] sm:$0xff] %vm482_vm2, %v3730_v54  ;;  %v3476_v55 = vld [vmem:[%s4503_s18 + $0x48] sm:$0xff]  ;;  %v2631_v57 = vpop.f32.mrf.mxu2 }
 0x25e   : > { %3167 = vst.msk [vmem:[%s4503_s18 + $0x50] sm:$0xff] %vm482_vm2, %v3131_v43  ;;  %v3512_v59 = vadd.f32 %v3476_v55, %v5665_v56  ;;  %v3013_v60 = vpop.f32.mrf.mxu3 }
 0x25f   : > { %v3583_v58 = vld [vmem:[%s4503_s18 + $0x40] sm:$0xff]  ;;  %v2252_v61 = vpop.f32.mrf.mxu1 }
 0x260   : > { %v3623_v1 = vadd.f32 %v5521_v27, %v3583_v58  ;;  %3548 = vst.msk [vmem:[%s4503_s18 + $0x48] sm:$0xff] %vm482_vm2, %v3512_v59  ;;  %v2370_v2 = vadd.f32 %v2334_v63, %v2252_v61  ;;  %v5785_v6 = vpop.f32.mrf.mxu0  ;;  %v5862_v59 = vld [vmem:[%s4359_s29 + $0x124] sm:$0xff] }
 0x261   : > { %v2715_v4 = vld [vmem:[%s4503_s18 + $0x60] sm:$0xff] }
 0x262   : > { %vm3659_vm11 = vcmp.ge.f32.partialorder %v3623_v1, 0.0  ;;  %v3695_v56 = vmul.f32 0.2, %v3623_v1  ;;  %2406 = vst.msk [vmem:[%s4503_s18 + $0x68] sm:$0xff] %vm482_vm2, %v2370_v2  ;;  %v2751_v5 = vadd.f32 %v2715_v4, %v2631_v57  ;;  %4114 = vmatmul.msk.f32.gmra.mxu1 %vm244_vm1, %v5712_v25  ;;  %4152 = vmatmul.msk.f32.gmra.mxu2 %vm244_vm1, %v5772_v0  ;;  %v2337_v57 = vld [vmem:[%s4503_s18 + $0x80] sm:$0xff] }
 0x263   : > { %v3096_v8 = vld [vmem:[%s4503_s18 + $0x58] sm:$0xff]  ;;  %4190 = vmatmul.msk.f32.gmra.mxu3 %vm244_vm1, %v2840_v3  ;;  %4228 = vmatmul.msk.f32.gmra.mxu0 %vm244_vm1, %v3222_v7  ;;  %v2843_v61 = vld [vmem:[%s4359_s29 + $0x125] sm:$0xff] }
 0x264   : > { %v3731_v10 = vsel %vm3659_vm11, %v3623_v1, %v3695_v56  ;;  %2787 = vst.msk [vmem:[%s4503_s18 + $0x60] sm:$0xff] %vm482_vm2, %v2751_v5  ;;  %v3132_v62 = vadd.f32 %v3096_v8, %v3010_v40  ;;  %v3225_v2 = vld [vmem:[%s4359_s29 + $0x126] sm:$0xff] }
 0x265   : > { %3767 = vst.msk [vmem:[%s4503_s18 + $0x40] sm:$0xff] %vm482_vm2, %v3731_v10  ;;  %v3477_v11 = vld [vmem:[%s4503_s18 + $0x50] sm:$0xff]  ;;  %v2634_v13 = vpop.f32.mrf.mxu2 }
 0x266   : > { %3168 = vst.msk [vmem:[%s4503_s18 + $0x58] sm:$0xff] %vm482_vm2, %v3132_v62  ;;  %v3513_v14 = vadd.f32 %v3477_v11, %v5695_v12  ;;  %v3016_v15 = vpop.f32.mrf.mxu3 }
 0x267   : > { %v3584_v9 = vld [vmem:[%s4503_s18 + $0x48] sm:$0xff]  ;;  %v2255_v16 = vpop.f32.mrf.mxu1 }
 0x268   : > { %v3624_v20 = vadd.f32 %v5521_v27, %v3584_v9  ;;  %3549 = vst.msk [vmem:[%s4503_s18 + $0x50] sm:$0xff] %vm482_vm2, %v3513_v14  ;;  %v2371_v21 = vadd.f32 %v2335_v18, %v2255_v16  ;;  %v5815_v26 = vpop.f32.mrf.mxu0  ;;  %v5892_v14 = vld [vmem:[%s4359_s29 + $0x12c] sm:$0xff] }
 0x269   : > { %v2716_v23 = vld [vmem:[%s4503_s18 + $0x68] sm:$0xff] }
 0x26a   : > { %vm3660_vm12 = vcmp.ge.f32.partialorder %v3624_v20, 0.0  ;;  %v3696_v12 = vmul.f32 0.2, %v3624_v20  ;;  %2407 = vst.msk [vmem:[%s4503_s18 + $0x70] sm:$0xff] %vm482_vm2, %v2371_v21  ;;  %v2752_v25 = vadd.f32 %v2716_v23, %v2634_v13  ;;  %4115 = vmatmul.msk.f32.gmra.mxu1 %vm244_vm1, %v5742_v45  ;;  %4153 = vmatmul.msk.f32.gmra.mxu2 %vm244_vm1, %v5802_v19  ;;  %v2338_v13 = vld [vmem:[%s4503_s18 + $0x88] sm:$0xff] }
 0x26b   : > { %v3097_v29 = vld [vmem:[%s4503_s18 + $0x60] sm:$0xff]  ;;  %4191 = vmatmul.msk.f32.gmra.mxu3 %vm244_vm1, %v2841_v22  ;;  %4229 = vmatmul.msk.f32.gmra.mxu0 %vm244_vm1, %v3223_v28  ;;  %v2844_v16 = vld [vmem:[%s4359_s29 + $0x12d] sm:$0xff] }
 0x26c   : > { %v3732_v30 = vsel %vm3660_vm12, %v3624_v20, %v3696_v12  ;;  %2788 = vst.msk [vmem:[%s4503_s18 + $0x68] sm:$0xff] %vm482_vm2, %v2752_v25  ;;  %v3133_v17 = vadd.f32 %v3097_v29, %v3013_v60  ;;  %v3226_v21 = vld [vmem:[%s4359_s29 + $0x12e] sm:$0xff] }
 0x26d   : > { %3768 = vst.msk [vmem:[%s4503_s18 + $0x48] sm:$0xff] %vm482_vm2, %v3732_v30  ;;  %v3478_v31 = vld [vmem:[%s4503_s18 + $0x58] sm:$0xff]  ;;  %v2637_v33 = vpop.f32.mrf.mxu2 }
 0x26e   : > { %3169 = vst.msk [vmem:[%s4503_s18 + $0x60] sm:$0xff] %vm482_vm2, %v3133_v17  ;;  %v3514_v34 = vadd.f32 %v3478_v31, %v5725_v32  ;;  %v3019_v35 = vpop.f32.mrf.mxu3 }
 0x26f   : > { %v3585_v24 = vld [vmem:[%s4503_s18 + $0x50] sm:$0xff]  ;;  %v2258_v36 = vpop.f32.mrf.mxu1 }
 0x270   : > { %v3625_v40 = vadd.f32 %v5521_v27, %v3585_v24  ;;  %3550 = vst.msk [vmem:[%s4503_s18 + $0x58] sm:$0xff] %vm482_vm2, %v3514_v34  ;;  %v2372_v41 = vadd.f32 %v2336_v38, %v2258_v36  ;;  %v5845_v46 = vpop.f32.mrf.mxu0  ;;  %v2463_v34 = vld [vmem:[%s4359_s29 + $0x134] sm:$0xff] }
 0x271   : > { %v2717_v44 = vld [vmem:[%s4503_s18 + $0x70] sm:$0xff] }
 0x272   : > { %vm3661_vm13 = vcmp.ge.f32.partialorder %v3625_v40, 0.0  ;;  %v3697_v32 = vmul.f32 0.2, %v3625_v40  ;;  %2408 = vst.msk [vmem:[%s4503_s18 + $0x78] sm:$0xff] %vm482_vm2, %v2372_v41  ;;  %v2753_v45 = vadd.f32 %v2717_v44, %v2637_v33  ;;  %4116 = vmatmul.msk.f32.gmra.mxu1 %vm244_vm1, %v5772_v0  ;;  %4154 = vmatmul.msk.f32.gmra.mxu2 %vm244_vm1, %v5832_v39  ;;  %v2339_v33 = vld [vmem:[%s4503_s18 + $0x90] sm:$0xff] }
 0x273   : > { %v3098_v48 = vld [vmem:[%s4503_s18 + $0x68] sm:$0xff]  ;;  %4192 = vmatmul.msk.f32.gmra.mxu3 %vm244_vm1, %v2842_v42  ;;  %4230 = vmatmul.msk.f32.gmra.mxu0 %vm244_vm1, %v3224_v47  ;;  %v2845_v36 = vld [vmem:[%s4359_s29 + $0x135] sm:$0xff] }
 0x274   : > { %v3733_v49 = vsel %vm3661_vm13, %v3625_v40, %v3697_v32  ;;  %2789 = vst.msk [vmem:[%s4503_s18 + $0x70] sm:$0xff] %vm482_vm2, %v2753_v45  ;;  %v3134_v37 = vadd.f32 %v3098_v48, %v3016_v15  ;;  %v3227_v41 = vld [vmem:[%s4359_s29 + $0x136] sm:$0xff] }
 0x275   : > { %3769 = vst.msk [vmem:[%s4503_s18 + $0x50] sm:$0xff] %vm482_vm2, %v3733_v49  ;;  %v3479_v50 = vld [vmem:[%s4503_s18 + $0x60] sm:$0xff]  ;;  %v2640_v52 = vpop.f32.mrf.mxu2 }
 0x276   : > { %3170 = vst.msk [vmem:[%s4503_s18 + $0x68] sm:$0xff] %vm482_vm2, %v3134_v37  ;;  %v3515_v53 = vadd.f32 %v3479_v50, %v5755_v51  ;;  %v3022_v54 = vpop.f32.mrf.mxu3 }
 0x277   : > { %v3586_v43 = vld [vmem:[%s4503_s18 + $0x58] sm:$0xff]  ;;  %v2261_v55 = vpop.f32.mrf.mxu1 }
 0x278   : > { %v3626_v60 = vadd.f32 %v5521_v27, %v3586_v43  ;;  %3551 = vst.msk [vmem:[%s4503_s18 + $0x60] sm:$0xff] %vm482_vm2, %v3515_v53  ;;  %v2373_v58 = vadd.f32 %v2337_v57, %v2261_v55  ;;  %v5875_v1 = vpop.f32.mrf.mxu0  ;;  %v2464_v53 = vld [vmem:[%s4359_s29 + $0x13c] sm:$0xff] }
 0x279   : > { %v2718_v63 = vld [vmem:[%s4503_s18 + $0x78] sm:$0xff] }
 0x27a   : > { %vm3662_vm14 = vcmp.ge.f32.partialorder %v3626_v60, 0.0  ;;  %v3698_v51 = vmul.f32 0.2, %v3626_v60  ;;  %2409 = vst.msk [vmem:[%s4503_s18 + $0x80] sm:$0xff] %vm482_vm2, %v2373_v58  ;;  %v2754_v0 = vadd.f32 %v2718_v63, %v2640_v52  ;;  %4117 = vmatmul.msk.f32.gmra.mxu1 %vm244_vm1, %v5802_v19  ;;  %4155 = vmatmul.msk.f32.gmra.mxu2 %vm244_vm1, %v5862_v59  ;;  %v2340_v52 = vld [vmem:[%s4503_s18 + $0x98] sm:$0xff] }
 0x27b   : > { %v3099_v3 = vld [vmem:[%s4503_s18 + $0x70] sm:$0xff]  ;;  %4193 = vmatmul.msk.f32.gmra.mxu3 %vm244_vm1, %v2843_v61  ;;  %4231 = vmatmul.msk.f32.gmra.mxu0 %vm244_vm1, %v3225_v2  ;;  %v2846_v55 = vld [vmem:[%s4359_s29 + $0x13d] sm:$0xff] }
 0x27c   : > { %v3734_v4 = vsel %vm3662_vm14, %v3626_v60, %v3698_v51  ;;  %2790 = vst.msk [vmem:[%s4503_s18 + $0x78] sm:$0xff] %vm482_vm2, %v2754_v0  ;;  %v3135_v56 = vadd.f32 %v3099_v3, %v3019_v35  ;;  %v3228_v58 = vld [vmem:[%s4359_s29 + $0x13e] sm:$0xff] }
 0x27d   : > { %3770 = vst.msk [vmem:[%s4503_s18 + $0x58] sm:$0xff] %vm482_vm2, %v3734_v4  ;;  %v3480_v5 = vld [vmem:[%s4503_s18 + $0x68] sm:$0xff]  ;;  %v2643_v7 = vpop.f32.mrf.mxu2 }
 0x27e   : > { %3171 = vst.msk [vmem:[%s4503_s18 + $0x70] sm:$0xff] %vm482_vm2, %v3135_v56  ;;  %v3516_v8 = vadd.f32 %v3480_v5, %v5785_v6  ;;  %v3025_v10 = vpop.f32.mrf.mxu3 }
 0x27f   : > { %v3587_v62 = vld [vmem:[%s4503_s18 + $0x60] sm:$0xff]  ;;  %v2264_v11 = vpop.f32.mrf.mxu1 }
 0x280   : > { %v3627_v15 = vadd.f32 %v5521_v27, %v3587_v62  ;;  %3552 = vst.msk [vmem:[%s4503_s18 + $0x68] sm:$0xff] %vm482_vm2, %v3516_v8  ;;  %v2374_v9 = vadd.f32 %v2338_v13, %v2264_v11  ;;  %v5905_v20 = vpop.f32.mrf.mxu0 }
 0x281   : > { %v2719_v18 = vld [vmem:[%s4503_s18 + $0x80] sm:$0xff] }
 0x282   : > { %vm3663_vm15 = vcmp.ge.f32.partialorder %v3627_v15, 0.0  ;;  %v3699_v6 = vmul.f32 0.2, %v3627_v15  ;;  %2410 = vst.msk [vmem:[%s4503_s18 + $0x88] sm:$0xff] %vm482_vm2, %v2374_v9  ;;  %v2755_v19 = vadd.f32 %v2719_v18, %v2643_v7  ;;  %4118 = vmatmul.msk.f32.gmra.mxu1 %vm244_vm1, %v5832_v39  ;;  %4156 = vmatmul.msk.f32.gmra.mxu2 %vm244_vm1, %v5892_v14  ;;  %v2341_v7 = vld [vmem:[%s4503_s18 + $0xa0] sm:$0xff] }
 0x283   : > { %v3100_v22 = vld [vmem:[%s4503_s18 + $0x78] sm:$0xff]  ;;  %4194 = vmatmul.msk.f32.gmra.mxu3 %vm244_vm1, %v2844_v16  ;;  %4232 = vmatmul.msk.f32.gmra.mxu0 %vm244_vm1, %v3226_v21 }
 0x284   : > { %v3735_v23 = vsel %vm3663_vm15, %v3627_v15, %v3699_v6  ;;  %2791 = vst.msk [vmem:[%s4503_s18 + $0x80] sm:$0xff] %vm482_vm2, %v2755_v19  ;;  %v3136_v12 = vadd.f32 %v3100_v22, %v3022_v54 }
 0x285   : > { %3771 = vst.msk [vmem:[%s4503_s18 + $0x60] sm:$0xff] %vm482_vm2, %v3735_v23  ;;  %v3481_v25 = vld [vmem:[%s4503_s18 + $0x70] sm:$0xff]  ;;  %v2646_v28 = vpop.f32.mrf.mxu2  ;;  %v2342_v23 = vld [vmem:[%s4503_s18 + $0xa8] sm:$0xff] }
 0x286   : > { %3172 = vst.msk [vmem:[%s4503_s18 + $0x78] sm:$0xff] %vm482_vm2, %v3136_v12  ;;  %v3517_v29 = vadd.f32 %v3481_v25, %v5815_v26  ;;  %v3028_v30 = vpop.f32.mrf.mxu3 }
 0x287   : > { %v3588_v17 = vld [vmem:[%s4503_s18 + $0x68] sm:$0xff]  ;;  %v2267_v31 = vpop.f32.mrf.mxu1 }
 0x288   : > { %v3628_v35 = vadd.f32 %v5521_v27, %v3588_v17  ;;  %3553 = vst.msk [vmem:[%s4503_s18 + $0x70] sm:$0xff] %vm482_vm2, %v3517_v29  ;;  %v2375_v24 = vadd.f32 %v2339_v33, %v2267_v31  ;;  %v5932_v40 = vpop.f32.mrf.mxu0 }
 0x289   : > { %v2720_v38 = vld [vmem:[%s4503_s18 + $0x88] sm:$0xff] }
 0x28a   : > { %vm3664_vm0 = vcmp.ge.f32.partialorder %v3628_v35, 0.0  ;;  %v3700_v39 = vmul.f32 0.2, %v3628_v35  ;;  %2411 = vst.msk [vmem:[%s4503_s18 + $0x90] sm:$0xff] %vm482_vm2, %v2375_v24  ;;  %v2756_v26 = vadd.f32 %v2720_v38, %v2646_v28  ;;  %4119 = vmatmul.msk.f32.gmra.mxu1 %vm244_vm1, %v5862_v59  ;;  %4157 = vmatmul.msk.f32.gmra.mxu2 %vm244_vm1, %v2463_v34 }
 0x28b   : > { %v3101_v42 = vld [vmem:[%s4503_s18 + $0x80] sm:$0xff]  ;;  %4195 = vmatmul.msk.f32.gmra.mxu3 %vm244_vm1, %v2845_v36  ;;  %4233 = vmatmul.msk.f32.gmra.mxu0 %vm244_vm1, %v3227_v41 }
 0x28c   : > { %v3736_v44 = vsel %vm3664_vm0, %v3628_v35, %v3700_v39  ;;  %2792 = vst.msk [vmem:[%s4503_s18 + $0x88] sm:$0xff] %vm482_vm2, %v2756_v26  ;;  %v3137_v32 = vadd.f32 %v3101_v42, %v3025_v10  ;;  %v2343_v26 = vld [vmem:[%s4503_s18 + $0xb0] sm:$0xff] }
 0x28d   : > { %3772 = vst.msk [vmem:[%s4503_s18 + $0x68] sm:$0xff] %vm482_vm2, %v3736_v44  ;;  %v3482_v45 = vld [vmem:[%s4503_s18 + $0x78] sm:$0xff]  ;;  %v2649_v47 = vpop.f32.mrf.mxu2 }
 0x28e   : > { %3173 = vst.msk [vmem:[%s4503_s18 + $0x80] sm:$0xff] %vm482_vm2, %v3137_v32  ;;  %v3518_v48 = vadd.f32 %v3482_v45, %v5845_v46  ;;  %v3031_v49 = vpop.f32.mrf.mxu3 }
 0x28f   : > { %v3589_v37 = vld [vmem:[%s4503_s18 + $0x70] sm:$0xff]  ;;  %v2270_v50 = vpop.f32.mrf.mxu1 }
 0x290   : > { %v3629_v54 = vadd.f32 %v5521_v27, %v3589_v37  ;;  %3554 = vst.msk [vmem:[%s4503_s18 + $0x78] sm:$0xff] %vm482_vm2, %v3518_v48  ;;  %v2376_v43 = vadd.f32 %v2340_v52, %v2270_v50  ;;  %v5959_v60 = vpop.f32.mrf.mxu0 }
 0x291   : > { %v2721_v57 = vld [vmem:[%s4503_s18 + $0x90] sm:$0xff] }
 0x292   : > { %vm3665_vm3 = vcmp.ge.f32.partialorder %v3629_v54, 0.0  ;;  %v3701_v59 = vmul.f32 0.2, %v3629_v54  ;;  %2412 = vst.msk [vmem:[%s4503_s18 + $0x98] sm:$0xff] %vm482_vm2, %v2376_v43  ;;  %v2757_v46 = vadd.f32 %v2721_v57, %v2649_v47  ;;  %4120 = vmatmul.msk.f32.gmra.mxu1 %vm244_vm1, %v5892_v14  ;;  %4158 = vmatmul.msk.f32.gmra.mxu2 %vm244_vm1, %v2464_v53  ;;  %v2344_v43 = vld [vmem:[%s4503_s18 + $0xb8] sm:$0xff] }
 0x293   : > { %v3102_v61 = vld [vmem:[%s4503_s18 + $0x88] sm:$0xff]  ;;  %4196 = vmatmul.msk.f32.gmra.mxu3 %vm244_vm1, %v2846_v55  ;;  %4234 = vmatmul.msk.f32.gmra.mxu0 %vm244_vm1, %v3228_v58  ;;  %v6035_v55 = vld [vmem:[%s6306_s2] ss:$0 sm:$0xff] }
 0x294   : > { %v3737_v63 = vsel %vm3665_vm3, %v3629_v54, %v3701_v59  ;;  %2793 = vst.msk [vmem:[%s4503_s18 + $0x90] sm:$0xff] %vm482_vm2, %v2757_v46  ;;  %v3138_v51 = vadd.f32 %v3102_v61, %v3028_v30 }
 0x295   : > { %3773 = vst.msk [vmem:[%s4503_s18 + $0x70] sm:$0xff] %vm482_vm2, %v3737_v63  ;;  %v3483_v0 = vld [vmem:[%s4503_s18 + $0x80] sm:$0xff]  ;;  %v2652_v2 = vpop.f32.mrf.mxu2 }
 0x296   : > { %3174 = vst.msk [vmem:[%s4503_s18 + $0x88] sm:$0xff] %vm482_vm2, %v3138_v51  ;;  %v3519_v3 = vadd.f32 %v3483_v0, %v5875_v1  ;;  %v3034_v4 = vpop.f32.mrf.mxu3 }
 0x297   : > { %v3590_v56 = vld [vmem:[%s4503_s18 + $0x78] sm:$0xff]  ;;  %v2273_v5 = vpop.f32.mrf.mxu1 }
 0x298   : > { %v3630_v8 = vadd.f32 %v5521_v27, %v3590_v56  ;;  %3555 = vst.msk [vmem:[%s4503_s18 + $0x80] sm:$0xff] %vm482_vm2, %v3519_v3  ;;  %v2377_v10 = vadd.f32 %v2341_v7, %v2273_v5  ;;  %v5981_v13 = vpop.f32.mrf.mxu0 }
 0x299   : > { %v2722_v62 = vld [vmem:[%s4503_s18 + $0x98] sm:$0xff] }
 0x29a   : > { %vm3666_vm1 = vcmp.ge.f32.partialorder %v3630_v8, 0.0  ;;  %v3702_v11 = vmul.f32 0.2, %v3630_v8  ;;  %2413 = vst.msk [vmem:[%s4503_s18 + $0xa0] sm:$0xff] %vm482_vm2, %v2377_v10  ;;  %v2758_v1 = vadd.f32 %v2722_v62, %v2652_v2 }
 0x29b   : > { %v3103_v14 = vld [vmem:[%s4503_s18 + $0x90] sm:$0xff] }
 0x29c   : > { %v3738_v15 = vsel %vm3666_vm1, %v3630_v8, %v3702_v11  ;;  %2794 = vst.msk [vmem:[%s4503_s18 + $0x98] sm:$0xff] %vm482_vm2, %v2758_v1  ;;  %v3139_v9 = vadd.f32 %v3103_v14, %v3031_v49  ;;  %v2345_v8 = vld [vmem:[%s4503_s18 + $0xc0] sm:$0xff] }
 0x29d   : > { %3774 = vst.msk [vmem:[%s4503_s18 + $0x78] sm:$0xff] %vm482_vm2, %v3738_v15  ;;  %v3484_v16 = vld [vmem:[%s4503_s18 + $0x88] sm:$0xff]  ;;  %v2655_v18 = vpop.f32.mrf.mxu2 }
 0x29e   : > { %3175 = vst.msk [vmem:[%s4503_s18 + $0x90] sm:$0xff] %vm482_vm2, %v3139_v9  ;;  %v3520_v6 = vadd.f32 %v3484_v16, %v5905_v20  ;;  %v3037_v19 = vpop.f32.mrf.mxu3 }
 0x29f   : > { %v3591_v21 = vld [vmem:[%s4503_s18 + $0x80] sm:$0xff]  ;;  %v2276_v22 = vpop.f32.mrf.mxu1 }
 0x2a0   : > { %v3631_v12 = vadd.f32 %v5521_v27, %v3591_v21  ;;  %3556 = vst.msk [vmem:[%s4503_s18 + $0x88] sm:$0xff] %vm482_vm2, %v3520_v6  ;;  %v2378_v25 = vadd.f32 %v2342_v23, %v2276_v22  ;;  %v6000_v30 = vpop.f32.mrf.mxu0 }
 0x2a1   : > { %v2723_v28 = vld [vmem:[%s4503_s18 + $0xa0] sm:$0xff] }
 0x2a2   : > { %vm3667_vm4 = vcmp.ge.f32.partialorder %v3631_v12, 0.0  ;;  %v3703_v29 = vmul.f32 0.2, %v3631_v12  ;;  %2414 = vst.msk [vmem:[%s4503_s18 + $0xa8] sm:$0xff] %vm482_vm2, %v2378_v25  ;;  %v2759_v20 = vadd.f32 %v2723_v28, %v2655_v18 }
 0x2a3   : > { %v3104_v17 = vld [vmem:[%s4503_s18 + $0x98] sm:$0xff] }
 0x2a4   : > { %v3739_v31 = vsel %vm3667_vm4, %v3631_v12, %v3703_v29  ;;  %2795 = vst.msk [vmem:[%s4503_s18 + $0xa0] sm:$0xff] %vm482_vm2, %v2759_v20  ;;  %v3140_v33 = vadd.f32 %v3104_v17, %v3034_v4  ;;  %v2346_v12 = vld [vmem:[%s4503_s18 + $0xc8] sm:$0xff] }
 0x2a5   : > { %3775 = vst.msk [vmem:[%s4503_s18 + $0x80] sm:$0xff] %vm482_vm2, %v3739_v31  ;;  %v3485_v34 = vld [vmem:[%s4503_s18 + $0x90] sm:$0xff]  ;;  %v2658_v35 = vpop.f32.mrf.mxu2 }
 0x2a6   : > { %3176 = vst.msk [vmem:[%s4503_s18 + $0x98] sm:$0xff] %vm482_vm2, %v3140_v33  ;;  %v3521_v24 = vadd.f32 %v3485_v34, %v5932_v40  ;;  %v3040_v36 = vpop.f32.mrf.mxu3 }
 0x2a7   : > { %v3592_v38 = vld [vmem:[%s4503_s18 + $0x88] sm:$0xff]  ;;  %v2279_v39 = vpop.f32.mrf.mxu1 }
 0x2a8   : > { %v3632_v41 = vadd.f32 %v5521_v27, %v3592_v38  ;;  %3557 = vst.msk [vmem:[%s4503_s18 + $0x90] sm:$0xff] %vm482_vm2, %v3521_v24  ;;  %v2379_v42 = vadd.f32 %v2343_v26, %v2279_v39  ;;  %v6019_v45 = vpop.f32.mrf.mxu0 }
 0x2a9   : > { %v2724_v44 = vld [vmem:[%s4503_s18 + $0xa8] sm:$0xff] }
 0x2aa   : > { %vm3668_vm5 = vcmp.ge.f32.partialorder %v3632_v41, 0.0  ;;  %v3704_v32 = vmul.f32 0.2, %v3632_v41  ;;  %2415 = vst.msk [vmem:[%s4503_s18 + $0xb0] sm:$0xff] %vm482_vm2, %v2379_v42  ;;  %v2760_v40 = vadd.f32 %v2724_v44, %v2658_v35 }
 0x2ab   : > { %v3105_v47 = vld [vmem:[%s4503_s18 + $0xa0] sm:$0xff] }
 0x2ac   : > { %v3740_v48 = vsel %vm3668_vm5, %v3632_v41, %v3704_v32  ;;  %2796 = vst.msk [vmem:[%s4503_s18 + $0xa8] sm:$0xff] %vm482_vm2, %v2760_v40  ;;  %v3141_v27 = vadd.f32 %v3105_v47, %v3037_v19  ;;  %v2347_v41 = vld [vmem:[%s4503_s18 + $0xd0] sm:$0xff] }
 0x2ad   : > { %3776 = vst.msk [vmem:[%s4503_s18 + $0x88] sm:$0xff] %vm482_vm2, %v3740_v48  ;;  %v3486_v49 = vld [vmem:[%s4503_s18 + $0x98] sm:$0xff]  ;;  %v2661_v37 = vpop.f32.mrf.mxu2 }
 0x2ae   : > { %3177 = vst.msk [vmem:[%s4503_s18 + $0xa0] sm:$0xff] %vm482_vm2, %v3141_v27  ;;  %v3522_v50 = vadd.f32 %v3486_v49, %v5959_v60  ;;  %v3043_v52 = vpop.f32.mrf.mxu3 }
 0x2af   : > { %v3593_v53 = vld [vmem:[%s4503_s18 + $0x90] sm:$0xff]  ;;  %v2282_v54 = vpop.f32.mrf.mxu1 }
 0x2b0   : > { %v3633_v57 = vadd.f32 %v6035_v55, %v3593_v53  ;;  %3558 = vst.msk [vmem:[%s4503_s18 + $0x98] sm:$0xff] %vm482_vm2, %v3522_v50  ;;  %v2380_v59 = vadd.f32 %v2344_v43, %v2282_v54  ;;  %v6043_v61 = vpop.f32.mrf.mxu0  ;;  %v2348_v43 = vld [vmem:[%s4503_s18 + $0xd8] sm:$0xff] }
 0x2b1   : > { %v2725_v46 = vld [vmem:[%s4503_s18 + $0xb0] sm:$0xff] }
 0x2b2   : > { %vm3669_vm6 = vcmp.ge.f32.partialorder %v3633_v57, 0.0  ;;  %v3705_v60 = vmul.f32 0.2, %v3633_v57  ;;  %2416 = vst.msk [vmem:[%s4503_s18 + $0xb8] sm:$0xff] %vm482_vm2, %v2380_v59  ;;  %v2761_v58 = vadd.f32 %v2725_v46, %v2661_v37 }
 0x2b3   : > { %v3106_v63 = vld [vmem:[%s4503_s18 + $0xa8] sm:$0xff] }
 0x2b4   : > { %v3741_v51 = vsel %vm3669_vm6, %v3633_v57, %v3705_v60  ;;  %2797 = vst.msk [vmem:[%s4503_s18 + $0xb0] sm:$0xff] %vm482_vm2, %v2761_v58  ;;  %v3142_v0 = vadd.f32 %v3106_v63, %v3040_v36 }
 0x2b5   : > { %3777 = vst.msk [vmem:[%s4503_s18 + $0x90] sm:$0xff] %vm482_vm2, %v3741_v51  ;;  %v3487_v2 = vld [vmem:[%s4503_s18 + $0xa0] sm:$0xff]  ;;  %v2664_v3 = vpop.f32.mrf.mxu2 }
 0x2b6   : > { %3178 = vst.msk [vmem:[%s4503_s18 + $0xa8] sm:$0xff] %vm482_vm2, %v3142_v0  ;;  %v3523_v4 = vadd.f32 %v3487_v2, %v5981_v13  ;;  %v3046_v56 = vpop.f32.mrf.mxu3 }
 0x2b7   : > { %v3594_v5 = vld [vmem:[%s4503_s18 + $0x98] sm:$0xff]  ;;  %v2285_v7 = vpop.f32.mrf.mxu1 }
 0x2b8   : > { %v3634_v10 = vadd.f32 %v6035_v55, %v3594_v5  ;;  %3559 = vst.msk [vmem:[%s4503_s18 + $0xa0] sm:$0xff] %vm482_vm2, %v3523_v4  ;;  %v2381_v62 = vadd.f32 %v2345_v8, %v2285_v7  ;;  %v6065_v16 = vpop.f32.mrf.mxu0  ;;  %v2349_v8 = vld [vmem:[%s4503_s18 + $0xe0] sm:$0xff] }
 0x2b9   : > { %v2726_v11 = vld [vmem:[%s4503_s18 + $0xb8] sm:$0xff] }
 0x2ba   : > { %vm3670_vm7 = vcmp.ge.f32.partialorder %v3634_v10, 0.0  ;;  %v3706_v1 = vmul.f32 0.2, %v3634_v10  ;;  %2417 = vst.msk [vmem:[%s4503_s18 + $0xc0] sm:$0xff] %vm482_vm2, %v2381_v62  ;;  %v2762_v13 = vadd.f32 %v2726_v11, %v2664_v3 }
 0x2bb   : > { %v3107_v14 = vld [vmem:[%s4503_s18 + $0xb0] sm:$0xff] }
 0x2bc   : > { %v3742_v15 = vsel %vm3670_vm7, %v3634_v10, %v3706_v1  ;;  %2798 = vst.msk [vmem:[%s4503_s18 + $0xb8] sm:$0xff] %vm482_vm2, %v2762_v13  ;;  %v3143_v9 = vadd.f32 %v3107_v14, %v3043_v52 }
 0x2bd   : > { %3778 = vst.msk [vmem:[%s4503_s18 + $0x98] sm:$0xff] %vm482_vm2, %v3742_v15  ;;  %v3488_v18 = vld [vmem:[%s4503_s18 + $0xa8] sm:$0xff]  ;;  %v2667_v6 = vpop.f32.mrf.mxu2 }
 0x2be   : > { %3179 = vst.msk [vmem:[%s4503_s18 + $0xb0] sm:$0xff] %vm482_vm2, %v3143_v9  ;;  %v3524_v19 = vadd.f32 %v3488_v18, %v6000_v30  ;;  %v3049_v21 = vpop.f32.mrf.mxu3 }
 0x2bf   : > { %v3595_v22 = vld [vmem:[%s4503_s18 + $0xa0] sm:$0xff]  ;;  %v2288_v23 = vpop.f32.mrf.mxu1 }
 0x2c0   : > { %v3635_v25 = vadd.f32 %v6035_v55, %v3595_v22  ;;  %3560 = vst.msk [vmem:[%s4503_s18 + $0xa8] sm:$0xff] %vm482_vm2, %v3524_v19  ;;  %v2382_v28 = vadd.f32 %v2346_v12, %v2288_v23  ;;  %v6090_v38 = vpop.f32.mrf.mxu0  ;;  %v2350_v12 = vld [vmem:[%s4503_s18 + $0xe8] sm:$0xff] }
 0x2c1   : > { %v2727_v29 = vld [vmem:[%s4503_s18 + $0xc0] sm:$0xff] }
 0x2c2   : > { %vm3671_vm8 = vcmp.ge.f32.partialorder %v3635_v25, 0.0  ;;  %v3707_v20 = vmul.f32 0.2, %v3635_v25  ;;  %2418 = vst.msk [vmem:[%s4503_s18 + $0xc8] sm:$0xff] %vm482_vm2, %v2382_v28  ;;  %v2763_v30 = vadd.f32 %v2727_v29, %v2667_v6 }
 0x2c3   : > { %v3108_v17 = vld [vmem:[%s4503_s18 + $0xb8] sm:$0xff] }
 0x2c4   : > { %v3743_v31 = vsel %vm3671_vm8, %v3635_v25, %v3707_v20  ;;  %2799 = vst.msk [vmem:[%s4503_s18 + $0xc0] sm:$0xff] %vm482_vm2, %v2763_v30  ;;  %v3144_v33 = vadd.f32 %v3108_v17, %v3046_v56 }
 0x2c5   : > { %3779 = vst.msk [vmem:[%s4503_s18 + $0xa0] sm:$0xff] %vm482_vm2, %v3743_v31  ;;  %v3489_v34 = vld [vmem:[%s4503_s18 + $0xb0] sm:$0xff]  ;;  %v2670_v35 = vpop.f32.mrf.mxu2 }
 0x2c6   : > { %3180 = vst.msk [vmem:[%s4503_s18 + $0xb8] sm:$0xff] %vm482_vm2, %v3144_v33  ;;  %v3525_v24 = vadd.f32 %v3489_v34, %v6019_v45  ;;  %v3052_v36 = vpop.f32.mrf.mxu3 }
 0x2c7   : > { %v3596_v39 = vld [vmem:[%s4503_s18 + $0xa8] sm:$0xff]  ;;  %v2291_v26 = vpop.f32.mrf.mxu1 }
 0x2c8   : > { %v3636_v42 = vadd.f32 %v6035_v55, %v3596_v39  ;;  %3561 = vst.msk [vmem:[%s4503_s18 + $0xb0] sm:$0xff] %vm482_vm2, %v3525_v24  ;;  %v2383_v44 = vadd.f32 %v2347_v41, %v2291_v26  ;;  %v3437_v46 = vpop.f32.mrf.mxu0  ;;  %v2351_v41 = vld [vmem:[%s4503_s18 + $0xf0] sm:$0xff] }
 0x2c9   : > { %v2728_v32 = vld [vmem:[%s4503_s18 + $0xc8] sm:$0xff] }
 0x2ca   : > { %vm3672_vm9 = vcmp.ge.f32.partialorder %v3636_v42, 0.0  ;;  %v3708_v40 = vmul.f32 0.2, %v3636_v42  ;;  %2419 = vst.msk [vmem:[%s4503_s18 + $0xd0] sm:$0xff] %vm482_vm2, %v2383_v44  ;;  %v2764_v45 = vadd.f32 %v2728_v32, %v2670_v35 }
 0x2cb   : > { %v3109_v47 = vld [vmem:[%s4503_s18 + $0xc0] sm:$0xff] }
 0x2cc   : > { %v3744_v48 = vsel %vm3672_vm9, %v3636_v42, %v3708_v40  ;;  %2800 = vst.msk [vmem:[%s4503_s18 + $0xc8] sm:$0xff] %vm482_vm2, %v2764_v45  ;;  %v3145_v27 = vadd.f32 %v3109_v47, %v3049_v21 }
 0x2cd   : > { %3780 = vst.msk [vmem:[%s4503_s18 + $0xa8] sm:$0xff] %vm482_vm2, %v3744_v48  ;;  %v3490_v49 = vld [vmem:[%s4503_s18 + $0xb8] sm:$0xff]  ;;  %v2673_v37 = vpop.f32.mrf.mxu2 }
 0x2ce   : > { %3181 = vst.msk [vmem:[%s4503_s18 + $0xc0] sm:$0xff] %vm482_vm2, %v3145_v27  ;;  %v3526_v50 = vadd.f32 %v3490_v49, %v6043_v61  ;;  %v3055_v52 = vpop.f32.mrf.mxu3 }
 0x2cf   : > { %v3597_v53 = vld [vmem:[%s4503_s18 + $0xb0] sm:$0xff]  ;;  %v2294_v54 = vpop.f32.mrf.mxu1 }
 0x2d0   : > { %v3637_v57 = vadd.f32 %v6035_v55, %v3597_v53  ;;  %3562 = vst.msk [vmem:[%s4503_s18 + $0xb8] sm:$0xff] %vm482_vm2, %v3526_v50  ;;  %v2384_v59 = vadd.f32 %v2348_v43, %v2294_v54  ;;  %v3440_v14 = vpop.f32.mrf.mxu0  ;;  %v2352_v43 = vld [vmem:[%s4503_s18 + $0xf8] sm:$0xff] }
 0x2d1   : > { %v2729_v60 = vld [vmem:[%s4503_s18 + $0xd0] sm:$0xff] }
 0x2d2   : > { %vm3673_vm10 = vcmp.ge.f32.partialorder %v3637_v57, 0.0  ;;  %v3709_v58 = vmul.f32 0.2, %v3637_v57  ;;  %2420 = vst.msk [vmem:[%s4503_s18 + $0xd8] sm:$0xff] %vm482_vm2, %v2384_v59  ;;  %v2765_v61 = vadd.f32 %v2729_v60, %v2673_v37 }
 0x2d3   : > { %v3110_v63 = vld [vmem:[%s4503_s18 + $0xc8] sm:$0xff] }
 0x2d4   : > { %v3745_v51 = vsel %vm3673_vm10, %v3637_v57, %v3709_v58  ;;  %2801 = vst.msk [vmem:[%s4503_s18 + $0xd0] sm:$0xff] %vm482_vm2, %v2765_v61  ;;  %v3146_v0 = vadd.f32 %v3110_v63, %v3052_v36 }
 0x2d5   : > { %3781 = vst.msk [vmem:[%s4503_s18 + $0xb0] sm:$0xff] %vm482_vm2, %v3745_v51  ;;  %v3491_v2 = vld [vmem:[%s4503_s18 + $0xc0] sm:$0xff]  ;;  %v2676_v3 = vpop.f32.mrf.mxu2 }
 0x2d6   : > { %3182 = vst.msk [vmem:[%s4503_s18 + $0xc8] sm:$0xff] %vm482_vm2, %v3146_v0  ;;  %v3527_v4 = vadd.f32 %v3491_v2, %v6065_v16  ;;  %v3058_v56 = vpop.f32.mrf.mxu3 }
 0x2d7   : > { %v3598_v5 = vld [vmem:[%s4503_s18 + $0xb8] sm:$0xff]  ;;  %v2297_v7 = vpop.f32.mrf.mxu1 }
 0x2d8   : > { %v3638_v10 = vadd.f32 %v6035_v55, %v3598_v5  ;;  %3563 = vst.msk [vmem:[%s4503_s18 + $0xc0] sm:$0xff] %vm482_vm2, %v3527_v4  ;;  %v2385_v62 = vadd.f32 %v2349_v8, %v2297_v7  ;;  %v3443_v34 = vpop.f32.mrf.mxu0  ;;  %v2353_v7 = vld [vmem:[%s4503_s18 + $0x100] sm:$0xff] }
 0x2d9   : > { %v2730_v11 = vld [vmem:[%s4503_s18 + $0xd8] sm:$0xff] }
 0x2da   : > { %vm3674_vm11 = vcmp.ge.f32.partialorder %v3638_v10, 0.0  ;;  %v3710_v1 = vmul.f32 0.2, %v3638_v10  ;;  %2421 = vst.msk [vmem:[%s4503_s18 + $0xe0] sm:$0xff] %vm482_vm2, %v2385_v62  ;;  %v2766_v13 = vadd.f32 %v2730_v11, %v2676_v3 }
 0x2db   : > { %v3111_v15 = vld [vmem:[%s4503_s18 + $0xd0] sm:$0xff] }
 0x2dc   : > { %v3746_v9 = vsel %vm3674_vm11, %v3638_v10, %v3710_v1  ;;  %2802 = vst.msk [vmem:[%s4503_s18 + $0xd8] sm:$0xff] %vm482_vm2, %v2766_v13  ;;  %v3147_v16 = vadd.f32 %v3111_v15, %v3055_v52 }
 0x2dd   : > { %3782 = vst.msk [vmem:[%s4503_s18 + $0xb8] sm:$0xff] %vm482_vm2, %v3746_v9  ;;  %v3492_v18 = vld [vmem:[%s4503_s18 + $0xc8] sm:$0xff]  ;;  %v2679_v6 = vpop.f32.mrf.mxu2 }
 0x2de   : > { %3183 = vst.msk [vmem:[%s4503_s18 + $0xd0] sm:$0xff] %vm482_vm2, %v3147_v16  ;;  %v3528_v19 = vadd.f32 %v3492_v18, %v6090_v38  ;;  %v3061_v21 = vpop.f32.mrf.mxu3 }
 0x2df   : > { %v3599_v22 = vld [vmem:[%s4503_s18 + $0xc0] sm:$0xff]  ;;  %v2300_v23 = vpop.f32.mrf.mxu1 }
 0x2e0   : > { %v3639_v25 = vadd.f32 %v6035_v55, %v3599_v22  ;;  %3564 = vst.msk [vmem:[%s4503_s18 + $0xc8] sm:$0xff] %vm482_vm2, %v3528_v19  ;;  %v2386_v28 = vadd.f32 %v2350_v12, %v2300_v23  ;;  %v3446_v52 = vpop.f32.mrf.mxu0  ;;  %v2354_v23 = vld [vmem:[%s4503_s18 + $0x108] sm:$0xff] }
 0x2e1   : > { %v2731_v29 = vld [vmem:[%s4503_s18 + $0xe0] sm:$0xff] }
 0x2e2   : > { %vm3675_vm12 = vcmp.ge.f32.partialorder %v3639_v25, 0.0  ;;  %v3711_v20 = vmul.f32 0.2, %v3639_v25  ;;  %2422 = vst.msk [vmem:[%s4503_s18 + $0xe8] sm:$0xff] %vm482_vm2, %v2386_v28  ;;  %v2767_v30 = vadd.f32 %v2731_v29, %v2679_v6 }
 0x2e3   : > { %v3112_v17 = vld [vmem:[%s4503_s18 + $0xd8] sm:$0xff] }
 0x2e4   : > { %v3747_v31 = vsel %vm3675_vm12, %v3639_v25, %v3711_v20  ;;  %2803 = vst.msk [vmem:[%s4503_s18 + $0xe0] sm:$0xff] %vm482_vm2, %v2767_v30  ;;  %v3148_v33 = vadd.f32 %v3112_v17, %v3058_v56 }
 0x2e5   : > { %3783 = vst.msk [vmem:[%s4503_s18 + $0xc0] sm:$0xff] %vm482_vm2, %v3747_v31  ;;  %v3493_v35 = vld [vmem:[%s4503_s18 + $0xd0] sm:$0xff]  ;;  %v2682_v24 = vpop.f32.mrf.mxu2 }
 0x2e6   : > { %3184 = vst.msk [vmem:[%s4503_s18 + $0xd8] sm:$0xff] %vm482_vm2, %v3148_v33  ;;  %v3529_v36 = vadd.f32 %v3493_v35, %v3437_v46  ;;  %v3064_v38 = vpop.f32.mrf.mxu3 }
 0x2e7   : > { %v3600_v39 = vld [vmem:[%s4503_s18 + $0xc8] sm:$0xff]  ;;  %v2303_v26 = vpop.f32.mrf.mxu1 }
 0x2e8   : > { %v3640_v42 = vadd.f32 %v6035_v55, %v3600_v39  ;;  %3565 = vst.msk [vmem:[%s4503_s18 + $0xd0] sm:$0xff] %vm482_vm2, %v3529_v36  ;;  %v2387_v44 = vadd.f32 %v2351_v41, %v2303_v26  ;;  %v3449_v62 = vpop.f32.mrf.mxu0  ;;  %v2355_v26 = vld [vmem:[%s4503_s18 + $0x110] sm:$0xff] }
 0x2e9   : > { %v2732_v32 = vld [vmem:[%s4503_s18 + $0xe8] sm:$0xff] }
 0x2ea   : > { %vm3676_vm13 = vcmp.ge.f32.partialorder %v3640_v42, 0.0  ;;  %v3712_v40 = vmul.f32 0.2, %v3640_v42  ;;  %2423 = vst.msk [vmem:[%s4503_s18 + $0xf0] sm:$0xff] %vm482_vm2, %v2387_v44  ;;  %v2768_v45 = vadd.f32 %v2732_v32, %v2682_v24 }
 0x2eb   : > { %v3113_v47 = vld [vmem:[%s4503_s18 + $0xe0] sm:$0xff] }
 0x2ec   : > { %v3748_v48 = vsel %vm3676_vm13, %v3640_v42, %v3712_v40  ;;  %2804 = vst.msk [vmem:[%s4503_s18 + $0xe8] sm:$0xff] %vm482_vm2, %v2768_v45  ;;  %v3149_v27 = vadd.f32 %v3113_v47, %v3061_v21 }
 0x2ed   : > { %3784 = vst.msk [vmem:[%s4503_s18 + $0xc8] sm:$0xff] %vm482_vm2, %v3748_v48  ;;  %v3494_v49 = vld [vmem:[%s4503_s18 + $0xd8] sm:$0xff]  ;;  %v2685_v37 = vpop.f32.mrf.mxu2 }
 0x2ee   : > { %3185 = vst.msk [vmem:[%s4503_s18 + $0xe0] sm:$0xff] %vm482_vm2, %v3149_v27  ;;  %v3530_v50 = vadd.f32 %v3494_v49, %v3440_v14  ;;  %v3067_v57 = vpop.f32.mrf.mxu3 }
 0x2ef   : > { %v3601_v53 = vld [vmem:[%s4503_s18 + $0xd0] sm:$0xff]  ;;  %v2306_v54 = vpop.f32.mrf.mxu1 }
 0x2f0   : > { %v3641_v59 = vadd.f32 %v6035_v55, %v3601_v53  ;;  %3566 = vst.msk [vmem:[%s4503_s18 + $0xd8] sm:$0xff] %vm482_vm2, %v3530_v50  ;;  %v2388_v46 = vadd.f32 %v2352_v43, %v2306_v54  ;;  %v3452_v30 = vpop.f32.mrf.mxu0  ;;  %v2356_v43 = vld [vmem:[%s4503_s18 + $0x118] sm:$0xff] }
 0x2f1   : > { %v2733_v60 = vld [vmem:[%s4503_s18 + $0xf0] sm:$0xff] }
 0x2f2   : > { %vm3677_vm14 = vcmp.ge.f32.partialorder %v3641_v59, 0.0  ;;  %v3713_v58 = vmul.f32 0.2, %v3641_v59  ;;  %2424 = vst.msk [vmem:[%s4503_s18 + $0xf8] sm:$0xff] %vm482_vm2, %v2388_v46  ;;  %v2769_v61 = vadd.f32 %v2733_v60, %v2685_v37 }
 0x2f3   : > { %v3114_v63 = vld [vmem:[%s4503_s18 + $0xe8] sm:$0xff] }
 0x2f4   : > { %v3749_v51 = vsel %vm3677_vm14, %v3641_v59, %v3713_v58  ;;  %2805 = vst.msk [vmem:[%s4503_s18 + $0xf0] sm:$0xff] %vm482_vm2, %v2769_v61  ;;  %v3150_v0 = vadd.f32 %v3114_v63, %v3064_v38 }
 0x2f5   : > { %3785 = vst.msk [vmem:[%s4503_s18 + $0xd0] sm:$0xff] %vm482_vm2, %v3749_v51  ;;  %v3495_v2 = vld [vmem:[%s4503_s18 + $0xe0] sm:$0xff]  ;;  %v2688_v3 = vpop.f32.mrf.mxu2 }
 0x2f6   : > { %3186 = vst.msk [vmem:[%s4503_s18 + $0xe8] sm:$0xff] %vm482_vm2, %v3150_v0  ;;  %v3531_v4 = vadd.f32 %v3495_v2, %v3443_v34  ;;  %v3070_v1 = vpop.f32.mrf.mxu3 }
 0x2f7   : > { %v3602_v56 = vld [vmem:[%s4503_s18 + $0xd8] sm:$0xff]  ;;  %v2309_v5 = vpop.f32.mrf.mxu1 }
 0x2f8   : > { %v3642_v8 = vadd.f32 %v6035_v55, %v3602_v56  ;;  %3567 = vst.msk [vmem:[%s4503_s18 + $0xe0] sm:$0xff] %vm482_vm2, %v3531_v4  ;;  %v2389_v10 = vadd.f32 %v2353_v7, %v2309_v5  ;;  %v3455_v27 = vpop.f32.mrf.mxu0 }
 0x2f9   : > { %v2734_v11 = vld [vmem:[%s4503_s18 + $0xf8] sm:$0xff] }
 0x2fa   : > { %vm3678_vm15 = vcmp.ge.f32.partialorder %v3642_v8, 0.0  ;;  %v3714_v13 = vmul.f32 0.2, %v3642_v8  ;;  %2425 = vst.msk [vmem:[%s4503_s18 + $0x100] sm:$0xff] %vm482_vm2, %v2389_v10  ;;  %v2770_v14 = vadd.f32 %v2734_v11, %v2688_v3 }
 0x2fb   : > { %v3115_v15 = vld [vmem:[%s4503_s18 + $0xf0] sm:$0xff] }
 0x2fc   : > { %v3750_v9 = vsel %vm3678_vm15, %v3642_v8, %v3714_v13  ;;  %2806 = vst.msk [vmem:[%s4503_s18 + $0xf8] sm:$0xff] %vm482_vm2, %v2770_v14  ;;  %v3151_v16 = vadd.f32 %v3115_v15, %v3067_v57 }
 0x2fd   : > { %3786 = vst.msk [vmem:[%s4503_s18 + $0xd8] sm:$0xff] %vm482_vm2, %v3750_v9  ;;  %v3496_v18 = vld [vmem:[%s4503_s18 + $0xe8] sm:$0xff]  ;;  %v2691_v6 = vpop.f32.mrf.mxu2 }
 0x2fe   : > { %3187 = vst.msk [vmem:[%s4503_s18 + $0xf0] sm:$0xff] %vm482_vm2, %v3151_v16  ;;  %v3532_v19 = vadd.f32 %v3496_v18, %v3446_v52  ;;  %v3073_v31 = vpop.f32.mrf.mxu3 }
 0x2ff   : > { %v3603_v21 = vld [vmem:[%s4503_s18 + $0xe0] sm:$0xff]  ;;  %v2312_v22 = vpop.f32.mrf.mxu1 }
 0x300   : > { %v3643_v12 = vadd.f32 %v6035_v55, %v3603_v21  ;;  %3568 = vst.msk [vmem:[%s4503_s18 + $0xe8] sm:$0xff] %vm482_vm2, %v3532_v19  ;;  %v2390_v25 = vadd.f32 %v2354_v23, %v2312_v22  ;;  %v3458_v3 = vpop.f32.mrf.mxu0 }
 0x301   : > { %v2735_v28 = vld [vmem:[%s4503_s18 + $0x100] sm:$0xff] }
 0x302   : > { %vm3679_vm0 = vcmp.ge.f32.partialorder %v3643_v12, 0.0  ;;  %v3715_v29 = vmul.f32 0.2, %v3643_v12  ;;  %2426 = vst.msk [vmem:[%s4503_s18 + $0x108] sm:$0xff] %vm482_vm2, %v2390_v25  ;;  %v2771_v20 = vadd.f32 %v2735_v28, %v2691_v6 }
 0x303   : > { %v3116_v17 = vld [vmem:[%s4503_s18 + $0xf8] sm:$0xff] }
 0x304   : > { %v3751_v33 = vsel %vm3679_vm0, %v3643_v12, %v3715_v29  ;;  %2807 = vst.msk [vmem:[%s4503_s18 + $0x100] sm:$0xff] %vm482_vm2, %v2771_v20  ;;  %v3152_v34 = vadd.f32 %v3116_v17, %v3070_v1 }
 0x305   : > { %3787 = vst.msk [vmem:[%s4503_s18 + $0xe0] sm:$0xff] %vm482_vm2, %v3751_v33  ;;  %v3497_v35 = vld [vmem:[%s4503_s18 + $0xf0] sm:$0xff]  ;;  %v2694_v24 = vpop.f32.mrf.mxu2 }
 0x306   : > { %3188 = vst.msk [vmem:[%s4503_s18 + $0xf8] sm:$0xff] %vm482_vm2, %v3152_v34  ;;  %v3533_v36 = vadd.f32 %v3497_v35, %v3449_v62  ;;  %v3076_v50 = vpop.f32.mrf.mxu3 }
 0x307   : > { %v3604_v38 = vld [vmem:[%s4503_s18 + $0xe8] sm:$0xff]  ;;  %v2315_v39 = vpop.f32.mrf.mxu1 }
 0x308   : > { %v3644_v41 = vadd.f32 %v6035_v55, %v3604_v38  ;;  %3569 = vst.msk [vmem:[%s4503_s18 + $0xf0] sm:$0xff] %vm482_vm2, %v3533_v36  ;;  %v2391_v42 = vadd.f32 %v2355_v26, %v2315_v39  ;;  %v3461_v6 = vpop.f32.mrf.mxu0 }
 0x309   : > { %v2736_v44 = vld [vmem:[%s4503_s18 + $0x108] sm:$0xff] }
 0x30a   : > { %vm3680_vm3 = vcmp.ge.f32.partialorder %v3644_v41, 0.0  ;;  %v3716_v32 = vmul.f32 0.2, %v3644_v41  ;;  %2427 = vst.msk [vmem:[%s4503_s18 + $0x110] sm:$0xff] %vm482_vm2, %v2391_v42  ;;  %v2772_v40 = vadd.f32 %v2736_v44, %v2694_v24 }
 0x30b   : > { %v3117_v45 = vld [vmem:[%s4503_s18 + $0x100] sm:$0xff] }
 0x30c   : > { %v3752_v47 = vsel %vm3680_vm3, %v3644_v41, %v3716_v32  ;;  %2808 = vst.msk [vmem:[%s4503_s18 + $0x108] sm:$0xff] %vm482_vm2, %v2772_v40  ;;  %v3153_v48 = vadd.f32 %v3117_v45, %v3073_v31 }
 0x30d   : > { %3788 = vst.msk [vmem:[%s4503_s18 + $0xe8] sm:$0xff] %vm482_vm2, %v3752_v47  ;;  %v3498_v49 = vld [vmem:[%s4503_s18 + $0xf8] sm:$0xff]  ;;  %v2697_v37 = vpop.f32.mrf.mxu2 }
 0x30e   : > { %3189 = vst.msk [vmem:[%s4503_s18 + $0x100] sm:$0xff] %vm482_vm2, %v3153_v48  ;;  %v3534_v52 = vadd.f32 %v3498_v49, %v3452_v30  ;;  %v3079_v5 = vpop.f32.mrf.mxu3 }
 0x30f   : > { %v3605_v53 = vld [vmem:[%s4503_s18 + $0xf0] sm:$0xff]  ;;  %v2318_v54 = vpop.f32.mrf.mxu1 }
 0x310   : > { %v3645_v57 = vadd.f32 %v6035_v55, %v3605_v53  ;;  %3570 = vst.msk [vmem:[%s4503_s18 + $0xf8] sm:$0xff] %vm482_vm2, %v3534_v52  ;;  %v2392_v59 = vadd.f32 %v2356_v43, %v2318_v54  ;;  %v3464_v30 = vpop.f32.mrf.mxu0 }
 0x311   : > { %v2737_v46 = vld [vmem:[%s4503_s18 + $0x110] sm:$0xff] }
 0x312   : > { %vm3681_vm1 = vcmp.ge.f32.partialorder %v3645_v57, 0.0  ;;  %v3717_v60 = vmul.f32 0.2, %v3645_v57  ;;  %2428 = vst.msk [vmem:[%s4503_s18 + $0x118] sm:$0xff] %vm482_vm2, %v2392_v59  ;;  %v2773_v58 = vadd.f32 %v2737_v46, %v2697_v37 }
 0x313   : > { %v3118_v61 = vld [vmem:[%s4503_s18 + $0x108] sm:$0xff] }
 0x314   : > { %v3753_v63 = vsel %vm3681_vm1, %v3645_v57, %v3717_v60  ;;  %2809 = vst.msk [vmem:[%s4503_s18 + $0x110] sm:$0xff] %vm482_vm2, %v2773_v58  ;;  %v3154_v51 = vadd.f32 %v3118_v61, %v3076_v50 }
 0x315   : > { %3789 = vst.msk [vmem:[%s4503_s18 + $0xf0] sm:$0xff] %vm482_vm2, %v3753_v63  ;;  %v3499_v0 = vld [vmem:[%s4503_s18 + $0x100] sm:$0xff]  ;;  %v2700_v56 = vpop.f32.mrf.mxu2 }
 0x316   : > { %3190 = vst.msk [vmem:[%s4503_s18 + $0x108] sm:$0xff] %vm482_vm2, %v3154_v51  ;;  %v3535_v2 = vadd.f32 %v3499_v0, %v3455_v27  ;;  %v3082_v18 = vpop.f32.mrf.mxu3 }
 0x317   : > { %v3606_v4 = vld [vmem:[%s4503_s18 + $0xf8] sm:$0xff] }
 0x318   : > { %v3646_v7 = vadd.f32 %v6035_v55, %v3606_v4  ;;  %3571 = vst.msk [vmem:[%s4503_s18 + $0x100] sm:$0xff] %vm482_vm2, %v3535_v2 }
 0x319   : > { %v2738_v8 = vld [vmem:[%s4503_s18 + $0x118] sm:$0xff] }
 0x31a   : > { %vm3682_vm4 = vcmp.ge.f32.partialorder %v3646_v7, 0.0  ;;  %v3718_v10 = vmul.f32 0.2, %v3646_v7  ;;  %v2774_v62 = vadd.f32 %v2738_v8, %v2700_v56 }
 0x31b   : > { %v3119_v11 = vld [vmem:[%s4503_s18 + $0x110] sm:$0xff] }
 0x31c   : > { %v3754_v1 = vsel %vm3682_vm4, %v3646_v7, %v3718_v10  ;;  %2810 = vst.msk [vmem:[%s4503_s18 + $0x118] sm:$0xff] %vm482_vm2, %v2774_v62  ;;  %v3155_v13 = vadd.f32 %v3119_v11, %v3079_v5 }
 0x31d   : > { %3790 = vst.msk [vmem:[%s4503_s18 + $0xf8] sm:$0xff] %vm482_vm2, %v3754_v1  ;;  %v3500_v14 = vld [vmem:[%s4503_s18 + $0x108] sm:$0xff] }
 0x31e   : > { %3191 = vst.msk [vmem:[%s4503_s18 + $0x110] sm:$0xff] %vm482_vm2, %v3155_v13  ;;  %v3536_v15 = vadd.f32 %v3500_v14, %v3458_v3 }
 0x31f   : > { %v3607_v9 = vld [vmem:[%s4503_s18 + $0x100] sm:$0xff] }
 0x320   : > { %v3647_v16 = vadd.f32 %v6035_v55, %v3607_v9  ;;  %3572 = vst.msk [vmem:[%s4503_s18 + $0x108] sm:$0xff] %vm482_vm2, %v3536_v15 }
 0x322   : > { %vm3683_vm5 = vcmp.ge.f32.partialorder %v3647_v16, 0.0  ;;  %v3719_v19 = vmul.f32 0.2, %v3647_v16 }
 0x323   : > { %v3120_v21 = vld [vmem:[%s4503_s18 + $0x118] sm:$0xff] }
 0x324   : > { %v3755_v22 = vsel %vm3683_vm5, %v3647_v16, %v3719_v19  ;;  %v3156_v23 = vadd.f32 %v3120_v21, %v3082_v18 }
 0x325   : > { %3791 = vst.msk [vmem:[%s4503_s18 + $0x100] sm:$0xff] %vm482_vm2, %v3755_v22  ;;  %v3501_v12 = vld [vmem:[%s4503_s18 + $0x110] sm:$0xff] }
 0x326   : > { %3192 = vst.msk [vmem:[%s4503_s18 + $0x118] sm:$0xff] %vm482_vm2, %v3156_v23  ;;  %v3537_v25 = vadd.f32 %v3501_v12, %v3461_v6 }
 0x327   : > { %v3608_v28 = vld [vmem:[%s4503_s18 + $0x108] sm:$0xff] }
 0x328   : > { %v3648_v29 = vadd.f32 %v6035_v55, %v3608_v28  ;;  %3573 = vst.msk [vmem:[%s4503_s18 + $0x110] sm:$0xff] %vm482_vm2, %v3537_v25 }
 0x32a   : > { %vm3684_vm6 = vcmp.ge.f32.partialorder %v3648_v29, 0.0  ;;  %v3720_v20 = vmul.f32 0.2, %v3648_v29 }
 0x32c   : > { %v3756_v17 = vsel %vm3684_vm6, %v3648_v29, %v3720_v20 }
 0x32d   : > { %3792 = vst.msk [vmem:[%s4503_s18 + $0x108] sm:$0xff] %vm482_vm2, %v3756_v17  ;;  %v3502_v31 = vld [vmem:[%s4503_s18 + $0x118] sm:$0xff] }
 0x32e   : > { %v3538_v33 = vadd.f32 %v3502_v31, %v3464_v30 }
 0x32f   : > { %v3609_v34 = vld [vmem:[%s4503_s18 + $0x110] sm:$0xff] }
 0x330   : > { %v3649_v35 = vadd.f32 %v6035_v55, %v3609_v34  ;;  %3574 = vst.msk [vmem:[%s4503_s18 + $0x118] sm:$0xff] %vm482_vm2, %v3538_v33 }
 0x332   : > { %vm3685_vm7 = vcmp.ge.f32.partialorder %v3649_v35, 0.0  ;;  %v3721_v24 = vmul.f32 0.2, %v3649_v35 }
 0x334   : > { %v3757_v36 = vsel %vm3685_vm7, %v3649_v35, %v3721_v24 }
 0x335   : > { %3793 = vst.msk [vmem:[%s4503_s18 + $0x110] sm:$0xff] %vm482_vm2, %v3757_v36 }
 0x337   : > { %v3610_v38 = vld [vmem:[%s4503_s18 + $0x118] sm:$0xff] }
 0x338   : > { %v3650_v39 = vadd.f32 %v6035_v55, %v3610_v38 }
 0x33a   : > { %vm3686_vm8 = vcmp.ge.f32.partialorder %v3650_v39, 0.0  ;;  %v3722_v26 = vmul.f32 0.2, %v3650_v39 }
 0x33c   : > { %v3758_v41 = vsel %vm3686_vm8, %v3650_v39, %v3722_v26 }
 0x33d   : > { %3794 = vst.msk [vmem:[%s4503_s18 + $0x118] sm:$0xff] %vm482_vm2, %v3758_v41 }
 0x33e PF: > { %s13_s14 = sadd.s32 1, %s4290_s14   ;;  %s6308_s12 = smov %s4286_s13 }
 0x33f   : > { %p10_p5 = scmp.ge.s32.totalorder %s13_s14, 4   ;;  %s6309_s13 = smov %s6311_s15 }
 0x341   :  { %12 = sbr.rel (!%p10_p5) target bundleno = 2 (0x2), region = 70 }

</bundles_post_ra>
